<compile_context>
chip_gen: v7x
topology: tpu7x:2x2x1
jax: 0.10.0
libtpu: 0.0.40
codegen_flags: <defaults>
</compile_context>

<pallas_src>
import functools
import math

import jax
import jax.numpy as jnp
import numpy as np
from jax import lax
from jax.experimental import pallas as pl
from jax.experimental.pallas import tpu as pltpu

_BF16 = jnp.bfloat16
_MASK_BIAS = -1e9     # additive attention-mask bias (masked key -> ~zero prob)
_LN_EPS = 1e-12       # BERT LayerNorm eps


# --------------------------------------------------------------------------- #
# Shared math helpers                                                          #
# --------------------------------------------------------------------------- #
def _mm(a, b):
    """bf16 MXU matmul, f32 accumulation."""
    return jnp.dot(a.astype(_BF16), b.astype(_BF16),
                   preferred_element_type=jnp.float32)


def _layer_norm(x, gamma, beta, eps=_LN_EPS):
    mu = jnp.mean(x, axis=-1, keepdims=True)
    var = jnp.mean((x - mu) ** 2, axis=-1, keepdims=True)
    return (x - mu) * lax.rsqrt(var + eps) * gamma + beta


def _gelu(x):
    # TODO(synk): BERT uses erf-GELU; the tanh approximation (EUP-friendly) is used.
    c = 0.7978845608028654  # sqrt(2/pi)
    return 0.5 * x * (1.0 + jnp.tanh(c * (x + 0.044715 * x * x * x)))


# --------------------------------------------------------------------------- #
# Single fused Pallas kernel: embed-LN + all encoder layers + pooler/mean-pool #
# grid = (batch_blocks ["parallel"], num_layers ["arbitrary", inner])          #
# tok_ref (the token-embedding output block) is the VMEM-resident activation   #
# carrier across the layer axis.                                               #
# --------------------------------------------------------------------------- #
def _rep_encoder_kernel(emb_ref, mrow_ref, mcol_ref, eg_ref, eb_ref,
                        wqkv_ref, bqkv_ref, wo_ref, bo_ref,
                        g1_ref, be1_ref, w1_ref, b1_ref,
                        w2_ref, b2_ref, g2_ref, be2_ref,
                        wp_ref, bp_ref,
                        tok_ref, cls_ref, mp_ref,
                        *, num_heads):
    layer = pl.program_id(1)
    n_layers = pl.num_programs(1)
    bB, S, H = tok_ref.shape
    nh = num_heads
    dh = H // nh
    scale = 1.0 / math.sqrt(dh)

    # --- layer 0: embedding LayerNorm initialises the resident activation ----
    @pl.when(layer == 0)
    def _():
        tok_ref[...] = _layer_norm(emb_ref[...], eg_ref[...], eb_ref[...])

    x = tok_ref[...]                                   # (bB, S, H) f32, VMEM-resident
    xf = x.reshape(bB * S, H)                          # flatten (B,S) -> M rows for MXU

    mrow = mrow_ref[...]                               # (bB, 1, S)
    bias = (1.0 - mrow) * _MASK_BIAS                   # hoisted once per layer step

    # ---- fused QKV projection over all bB*S rows -----------------------------
    qkv = _mm(xf, wqkv_ref[...]) + bqkv_ref[...]       # (bB*S, 3H) f32
    q = qkv[:, :H].reshape(bB, S, nh, dh)
    k = qkv[:, H:2 * H].reshape(bB, S, nh, dh)
    v = qkv[:, 2 * H:].reshape(bB, S, nh, dh)

    # ---- attention: head-batched einsums (static tiny loop over batch block) -
    ctx_parts = []
    for b in range(bB):
        qh = jnp.transpose(q[b], (1, 0, 2)).astype(_BF16)   # (nh, S, dh)
        kh = jnp.transpose(k[b], (1, 0, 2)).astype(_BF16)
        vh = jnp.transpose(v[b], (1, 0, 2)).astype(_BF16)
        s = jnp.einsum('hqd,hkd->hqk', qh, kh,
                       preferred_element_type=jnp.float32) * scale    # (nh, S, S)
        s = s + bias[b][None, :, :]                                   # (1,1,S) bcast
        s = s - jnp.max(s, axis=-1, keepdims=True)
        e = jnp.exp(s)
        p = e * pl.reciprocal(jnp.sum(e, axis=-1, keepdims=True), approx=True)
        c = jnp.einsum('hqk,hkd->hqd', p.astype(_BF16), vh,
                       preferred_element_type=jnp.float32)            # (nh, S, dh)
        ctx_parts.append(jnp.transpose(c, (1, 0, 2)).reshape(S, H))
    ctx = ctx_parts[0] if bB == 1 else jnp.concatenate(ctx_parts, axis=0)  # (bB*S, H)

    # ---- output projection + FFN (post-LN), all on the flattened rows --------
    x1 = _layer_norm(xf + _mm(ctx, wo_ref[...]) + bo_ref[...],
                     g1_ref[...], be1_ref[...])
    h1 = _gelu(_mm(x1, w1_ref[...]) + b1_ref[...])
    x2 = _layer_norm(x1 + _mm(h1, w2_ref[...]) + b2_ref[...],
                     g2_ref[...], be2_ref[...])
    tok_ref[...] = x2.reshape(bB, S, H)

    # ---- last layer: BERT pooler (CLS) + attention-mask mean pooling ---------
    @pl.when(layer == n_layers - 1)
    def _():
        xb = tok_ref[...]                                   # final hidden states
        cls_in = xb[:, 0, :]                                # (bB, H)  CLS token
        cls = jnp.tanh(_mm(cls_in, wp_ref[...]) + bp_ref[...])
        cls_ref[...] = cls.reshape(bB, 1, H)

        mcol = mcol_ref[...]                                # (bB, S, 1) f32
        msum = jnp.sum(xb * mcol, axis=1, keepdims=True)    # f32 VPU multiply+reduce
        denom = jnp.maximum(jnp.sum(mcol, axis=1, keepdims=True), 1e-9)  # (bB,1,1)
        mp_ref[...] = msum * pl.reciprocal(denom, approx=True)


# --------------------------------------------------------------------------- #
# Wrapper                                                                      #
# --------------------------------------------------------------------------- #
class RepEncoderPallas:
    """Pallas port of RepEncoder.

    # TODO(synk): the pretrained bert-base-chinese / chinese-roberta-wwm-ext
    #   checkpoints cannot be loaded in-script (no file/network access); a
    #   randomly-initialised BERT-style encoder with the same forward structure
    #   stands in for the HuggingFace backbone.
    # TODO(synk): `freeze_layers` only toggles requires_grad (training-time);
    #   it has no effect on the forward pass and is accepted but ignored.
    """

    def __init__(self, *, vocab_size=128, max_position=64, type_vocab=2,
                 hidden=128, num_layers=2, num_heads=2, ffn_dim=512,
                 freeze_layers=None, key=None):
        assert hidden % num_heads == 0 and hidden % 128 == 0, \
            "hidden kept 128-lane aligned"
        del freeze_layers
        self.hidden, self.ffn_dim = hidden, ffn_dim
        self.num_layers, self.num_heads = num_layers, num_heads

        key = jax.random.PRNGKey(0) if key is None else key
        keys = iter(jax.random.split(key, 32))

        def nrm(shape, dtype=jnp.float32, scale=0.02):
            return (scale * jax.random.normal(next(keys), shape, jnp.float32)
                    ).astype(dtype)

        H, F, L = hidden, ffn_dim, num_layers
        self.word_emb = nrm((vocab_size, H))
        self.pos_emb = nrm((max_position, H))
        self.type_emb = nrm((type_vocab, H))
        self.emb_ln_g = jnp.ones((1, H), jnp.float32)
        self.emb_ln_b = jnp.zeros((1, H), jnp.float32)

        # Per-layer weights stacked along a leading layer axis (streamed per
        # layer-grid step; bf16 for the MXU operands, f32 biases / LN params).
        self.wqkv = nrm((L, H, 3 * H), _BF16)
        self.bqkv = nrm((L, 1, 3 * H))
        self.wo = nrm((L, H, H), _BF16)
        self.bo = nrm((L, 1, H))
        self.ln1_g = jnp.ones((L, 1, H), jnp.float32)
        self.ln1_b = jnp.zeros((L, 1, H), jnp.float32)
        self.w1 = nrm((L, H, F), _BF16)
        self.b1 = nrm((L, 1, F))
        self.w2 = nrm((L, F, H), _BF16)
        self.b2 = nrm((L, 1, H))
        self.ln2_g = jnp.ones((L, 1, H), jnp.float32)
        self.ln2_b = jnp.zeros((L, 1, H), jnp.float32)

        self.pool_w = nrm((H, H), _BF16)     # BERT pooler dense
        self.pool_b = nrm((1, H))

    # ------------------------------------------------------------------ forward
    def __call__(self, input_ids, attention_mask, token_type_ids=None,
                 batch_block=None):
        """Returns (cls_embeddings, mp_embeddings, token_embeddings)."""
        B, S = input_ids.shape
        H, F, L = self.hidden, self.ffn_dim, self.num_layers
        if token_type_ids is None:
            token_type_ids = jnp.zeros_like(input_ids)

        # >=2 batch blocks when possible (both v7x TensorCores busy), while
        # flattening several sequences per block to feed more MXU rows.
        if batch_block is None:
            batch_block = B // 2 if (B % 2 == 0 and B >= 2) else B
        bB = batch_block
        assert B % bB == 0

        # TODO(synk): embedding-table gather has no clean Pallas tile equivalent on
        #   TPU; the three lookups stay in XLA, everything after runs in one kernel.
        emb = (jnp.take(self.word_emb, input_ids, axis=0)
               + jnp.take(self.pos_emb, jnp.arange(S), axis=0)[None, :, :]
               + jnp.take(self.type_emb, token_type_ids, axis=0))
        maskf = attention_mask.astype(jnp.float32)
        mask_row = maskf.reshape(B, 1, S)     # for the attention bias
        mask_col = maskf.reshape(B, S, 1)     # for the masked mean pooling

        kernel = functools.partial(_rep_encoder_kernel, num_heads=self.num_heads)

        def rep(shape):                        # replicated (layer-independent) params
            n = len(shape)
            return pl.BlockSpec(shape, lambda b, l, _n=n: (0,) * _n)

        def per_layer(shape):                  # streamed per layer step (leading L axis squeezed)
            n = len(shape)
            return pl.BlockSpec((None,) + shape, lambda b, l, _n=n: (l,) + (0,) * _n)

        in_specs = [
            pl.BlockSpec((bB, S, H), lambda b, l: (b, 0, 0)),   # embeddings
            pl.BlockSpec((bB, 1, S), lambda b, l: (b, 0, 0)),   # mask rows
            pl.BlockSpec((bB, S, 1), lambda b, l: (b, 0, 0)),   # mask cols
            rep((1, H)), rep((1, H)),                           # embedding LN
            per_layer((H, 3 * H)), per_layer((1, 3 * H)),       # Wqkv, bqkv
            per_layer((H, H)), per_layer((1, H)),               # Wo, bo
            per_layer((1, H)), per_layer((1, H)),               # ln1
            per_layer((H, F)), per_layer((1, F)),               # W1, b1
            per_layer((F, H)), per_layer((1, H)),               # W2, b2
            per_layer((1, H)), per_layer((1, H)),               # ln2
            rep((H, H)), rep((1, H)),                           # pooler
        ]
        out_specs = (
            pl.BlockSpec((bB, S, H), lambda b, l: (b, 0, 0)),   # token embeddings
            pl.BlockSpec((bB, 1, H), lambda b, l: (b, 0, 0)),   # cls embeddings
            pl.BlockSpec((bB, 1, H), lambda b, l: (b, 0, 0)),   # mean-pool embeddings
        )
        out_shapes = (
            jax.ShapeDtypeStruct((B, S, H), jnp.float32),
            jax.ShapeDtypeStruct((B, 1, H), jnp.float32),
            jax.ShapeDtypeStruct((B, 1, H), jnp.float32),
        )

        nh = self.num_heads
        proj_flops = 2 * B * S * H * (4 * H) + 4 * B * S * H * F
        attn_flops = 4 * B * S * S * H
        cost = pl.CostEstimate(
            flops=int(L * (proj_flops + attn_flops) + 2 * B * H * H),
            transcendentals=int(L * B * (nh * S * S + S * F) + B * H),
            bytes_accessed=int(4 * (2 * B * S * H + 2 * B * S + 3 * B * H)
                               + 2 * L * (4 * H * H + 2 * H * F) + 2 * H * H),
        )

        tok3, cls3, mp3 = pl.pallas_call(
            kernel,
            out_shape=out_shapes,
            grid=(B // bB, L),                      # layer axis innermost (activation carry)
            in_specs=in_specs,
            out_specs=out_specs,
            compiler_params=pltpu.CompilerParams(
                dimension_semantics=("parallel", "arbitrary"),
                vmem_limit_bytes=48 * 1024 * 1024),
            cost_estimate=cost,
        )(emb, mask_row, mask_col, self.emb_ln_g, self.emb_ln_b,
          self.wqkv, self.bqkv, self.wo, self.bo,
          self.ln1_g, self.ln1_b, self.w1, self.b1,
          self.w2, self.b2, self.ln2_g, self.ln2_b,
          self.pool_w, self.pool_b)

        return cls3[:, 0, :], mp3[:, 0, :], tok3


# --------------------------------------------------------------------------- #
# Pure-JAX reference (same math, no Pallas) for the correctness check          #
# --------------------------------------------------------------------------- #
def _reference_forward(enc, input_ids, attention_mask, token_type_ids=None):
    B, S = input_ids.shape
    H, nh = enc.hidden, enc.num_heads
    dh = H // nh
    scale = 1.0 / math.sqrt(dh)
    if token_type_ids is None:
        token_type_ids = jnp.zeros_like(input_ids)
    emb = (jnp.take(enc.word_emb, input_ids, axis=0)
           + jnp.take(enc.pos_emb, jnp.arange(S), axis=0)[None, :, :]
           + jnp.take(enc.type_emb, token_type_ids, axis=0))
    mask = attention_mask.astype(jnp.float32)

    cls_l, mp_l, tok_l = [], [], []
    for b in range(B):
        x = _layer_norm(emb[b], enc.emb_ln_g, enc.emb_ln_b)
        bias = (1.0 - mask[b:b + 1]) * _MASK_BIAS                # (1, S)
        for l in range(enc.num_layers):
            qkv = _mm(x, enc.wqkv[l]) + enc.bqkv[l]
            q, k, v = qkv[:, :H], qkv[:, H:2 * H], qkv[:, 2 * H:]
            ctx_parts = []
            for h in range(nh):
                sl = slice(h * dh, (h + 1) * dh)
                s = _mm(q[:, sl], k[:, sl].T) * scale + bias
                s = s - jnp.max(s, axis=-1, keepdims=True)
                e = jnp.exp(s)
                p = e / jnp.sum(e, axis=-1, keepdims=True)
                ctx_parts.append(_mm(p, v[:, sl]))
            ctx = jnp.concatenate(ctx_parts, axis=-1)
            x1 = _layer_norm(x + _mm(ctx, enc.wo[l]) + enc.bo[l],
                             enc.ln1_g[l], enc.ln1_b[l])
            ffn = _mm(_gelu(_mm(x1, enc.w1[l]) + enc.b1[l]), enc.w2[l]) + enc.b2[l]
            x = _layer_norm(x1 + ffn, enc.ln2_g[l], enc.ln2_b[l])
        cls = jnp.tanh(_mm(x[0:1, :], enc.pool_w) + enc.pool_b)
        msum = jnp.sum(x * mask[b][:, None], axis=0, keepdims=True)
        denom = jnp.maximum(jnp.sum(mask[b]), 1e-9)
        cls_l.append(cls)
        mp_l.append(msum / denom)
        tok_l.append(x)
    return (jnp.concatenate(cls_l, axis=0),
            jnp.concatenate(mp_l, axis=0),
            jnp.stack(tok_l, axis=0))


if __name__ == "__main__":
    B, S = 4, 16
    VOCAB, HIDDEN, LAYERS, HEADS, FFN = 128, 128, 2, 2, 512

    key = jax.random.PRNGKey(0)
    k_ids, k_model = jax.random.split(key)
    input_ids = jax.random.randint(k_ids, (B, S), 0, VOCAB, dtype=jnp.int32)
    attention_mask = (jnp.ones((B, S), jnp.int32)
                      .at[1, 11:].set(0)
                      .at[3, 5:].set(0))                         # ragged lengths
    token_type_ids = jnp.zeros((B, S), jnp.int32)

    enc = RepEncoderPallas(vocab_size=VOCAB, max_position=64, type_vocab=2,
                           hidden=HIDDEN, num_layers=LAYERS, num_heads=HEADS,
                           ffn_dim=FFN, key=k_model)

    cls_emb, mp_emb, tok_emb = enc(input_ids, attention_mask, token_type_ids)
    cls_emb = jax.block_until_ready(cls_emb)
    mp_emb = jax.block_until_ready(mp_emb)
    tok_emb = jax.block_until_ready(tok_emb)

    cls_ref, mp_ref, tok_ref = _reference_forward(enc, input_ids, attention_mask,
                                                  token_type_ids)
    np.testing.assert_allclose(np.asarray(tok_emb), np.asarray(tok_ref),
                               rtol=2e-2, atol=2e-2)
    np.testing.assert_allclose(np.asarray(cls_emb), np.asarray(cls_ref),
                               rtol=2e-2, atol=2e-2)
    np.testing.assert_allclose(np.asarray(mp_emb), np.asarray(mp_ref),
                               rtol=2e-2, atol=2e-2)
    assert cls_emb.shape == (B, HIDDEN) and mp_emb.shape == (B, HIDDEN)
    assert tok_emb.shape == (B, S, HIDDEN)
    print("KERNEL_OK")
</pallas_src>

<mosaic_0001>
module attributes {stable_mosaic.version = 11 : i64} {
  func.func @_rep_encoder_kernel(%arg0: i32, %arg1: i32, %arg2: memref<2x16x128xf32, #tpu.memory_space<vmem>>, %arg3: memref<2x1x16xf32, #tpu.memory_space<vmem>>, %arg4: memref<2x16x1xf32, #tpu.memory_space<vmem>>, %arg5: memref<1x128xf32, #tpu.memory_space<vmem>>, %arg6: memref<1x128xf32, #tpu.memory_space<vmem>>, %arg7: memref<1x128x384xbf16, #tpu.memory_space<vmem>>, %arg8: memref<1x1x384xf32, #tpu.memory_space<vmem>>, %arg9: memref<1x128x128xbf16, #tpu.memory_space<vmem>>, %arg10: memref<1x1x128xf32, #tpu.memory_space<vmem>>, %arg11: memref<1x1x128xf32, #tpu.memory_space<vmem>>, %arg12: memref<1x1x128xf32, #tpu.memory_space<vmem>>, %arg13: memref<1x128x512xbf16, #tpu.memory_space<vmem>>, %arg14: memref<1x1x512xf32, #tpu.memory_space<vmem>>, %arg15: memref<1x512x128xbf16, #tpu.memory_space<vmem>>, %arg16: memref<1x1x128xf32, #tpu.memory_space<vmem>>, %arg17: memref<1x1x128xf32, #tpu.memory_space<vmem>>, %arg18: memref<1x1x128xf32, #tpu.memory_space<vmem>>, %arg19: memref<128x128xbf16, #tpu.memory_space<vmem>>, %arg20: memref<1x128xf32, #tpu.memory_space<vmem>>, %arg21: memref<2x16x128xf32, #tpu.memory_space<vmem>>, %arg22: memref<2x1x128xf32, #tpu.memory_space<vmem>>, %arg23: memref<2x1x128xf32, #tpu.memory_space<vmem>>) attributes {dimension_semantics = [#tpu.dimension_semantics<parallel>, #tpu.dimension_semantics<arbitrary>], iteration_bounds = array<i64: 2, 2>, scalar_prefetch = 0 : i64, scratch_operands = 0 : i64, tpu.core_type = #tpu.core_type<tc>, window_params = [{transform_indices = @transform_0, window_bounds = array<i64: 2, 16, 128>}, {transform_indices = @transform_1, window_bounds = array<i64: 2, 1, 16>}, {transform_indices = @transform_2, window_bounds = array<i64: 2, 16, 1>}, {pipeline_mode = #tpu.pipeline_mode<synchronous>, transform_indices = @transform_3, window_bounds = array<i64: 1, 128>}, {pipeline_mode = #tpu.pipeline_mode<synchronous>, transform_indices = @transform_4, window_bounds = array<i64: 1, 128>}, {transform_indices = @transform_5, window_bounds = array<i64: 1, 128, 384>}, {transform_indices = @transform_6, window_bounds = array<i64: 1, 1, 384>}, {transform_indices = @transform_7, window_bounds = array<i64: 1, 128, 128>}, {transform_indices = @transform_8, window_bounds = array<i64: 1, 1, 128>}, {transform_indices = @transform_9, window_bounds = array<i64: 1, 1, 128>}, {transform_indices = @transform_10, window_bounds = array<i64: 1, 1, 128>}, {transform_indices = @transform_11, window_bounds = array<i64: 1, 128, 512>}, {transform_indices = @transform_12, window_bounds = array<i64: 1, 1, 512>}, {transform_indices = @transform_13, window_bounds = array<i64: 1, 512, 128>}, {transform_indices = @transform_14, window_bounds = array<i64: 1, 1, 128>}, {transform_indices = @transform_15, window_bounds = array<i64: 1, 1, 128>}, {transform_indices = @transform_16, window_bounds = array<i64: 1, 1, 128>}, {pipeline_mode = #tpu.pipeline_mode<synchronous>, transform_indices = @transform_17, window_bounds = array<i64: 128, 128>}, {pipeline_mode = #tpu.pipeline_mode<synchronous>, transform_indices = @transform_18, window_bounds = array<i64: 1, 128>}, {transform_indices = @transform_19, window_bounds = array<i64: 2, 16, 128>}, {transform_indices = @transform_20, window_bounds = array<i64: 2, 1, 128>}, {transform_indices = @transform_21, window_bounds = array<i64: 2, 1, 128>}]} {
    %c0_i32 = arith.constant 0 : i32
    %0 = arith.cmpi eq, %arg1, %c0_i32 : i32
    %1 = arith.extui %0 : i1 to i32
    %c0_i32_0 = arith.constant 0 : i32
    %2 = arith.cmpi ne, %1, %c0_i32_0 : i32
    scf.if %2 {
      %c0_75 = arith.constant 0 : index
      %c0_76 = arith.constant 0 : index
      %c0_77 = arith.constant 0 : index
      %189 = vector.load %arg2[%c0_75, %c0_76, %c0_77] : memref<2x16x128xf32, #tpu.memory_space<vmem>>, vector<2x16x128xf32>
      %c0_78 = arith.constant 0 : index
      %c0_79 = arith.constant 0 : index
      %190 = vector.load %arg5[%c0_78, %c0_79] : memref<1x128xf32, #tpu.memory_space<vmem>>, vector<1x128xf32>
      %c0_80 = arith.constant 0 : index
      %c0_81 = arith.constant 0 : index
      %191 = vector.load %arg6[%c0_80, %c0_81] : memref<1x128xf32, #tpu.memory_space<vmem>>, vector<1x128xf32>
      %cst_82 = arith.constant dense<0.000000e+00> : vector<2x16xf32>
      %192 = vector.multi_reduction <add>, %189, %cst_82 [2] : vector<2x16x128xf32> to vector<2x16xf32>
      %193 = vector.shape_cast %192 : vector<2x16xf32> to vector<2x16x1xf32>
      %cst_83 = arith.constant 1.280000e+02 : f32
      %194 = vector.broadcast %cst_83 : f32 to vector<2x16x1xf32>
      %195 = arith.divf %193, %194 : vector<2x16x1xf32>
      %196 = vector.broadcast %195 : vector<2x16x1xf32> to vector<2x16x128xf32>
      %197 = arith.subf %189, %196 : vector<2x16x128xf32>
      %198 = arith.mulf %197, %197 : vector<2x16x128xf32>
      %cst_84 = arith.constant dense<0.000000e+00> : vector<2x16xf32>
      %199 = vector.multi_reduction <add>, %198, %cst_84 [2] : vector<2x16x128xf32> to vector<2x16xf32>
      %200 = vector.shape_cast %199 : vector<2x16xf32> to vector<2x16x1xf32>
      %cst_85 = arith.constant 1.280000e+02 : f32
      %201 = vector.broadcast %cst_85 : f32 to vector<2x16x1xf32>
      %202 = arith.divf %200, %201 : vector<2x16x1xf32>
      %203 = vector.broadcast %195 : vector<2x16x1xf32> to vector<2x16x128xf32>
      %204 = arith.subf %189, %203 : vector<2x16x128xf32>
      %cst_86 = arith.constant 9.99999996E-13 : f32
      %205 = vector.broadcast %cst_86 : f32 to vector<2x16x1xf32>
      %206 = arith.addf %202, %205 : vector<2x16x1xf32>
      %207 = math.rsqrt %206 : vector<2x16x1xf32>
      %208 = vector.broadcast %207 : vector<2x16x1xf32> to vector<2x16x128xf32>
      %209 = arith.mulf %204, %208 : vector<2x16x128xf32>
      %210 = vector.shape_cast %190 : vector<1x128xf32> to vector<1x1x128xf32>
      %211 = vector.broadcast %210 : vector<1x1x128xf32> to vector<2x16x128xf32>
      %212 = arith.mulf %209, %211 : vector<2x16x128xf32>
      %213 = vector.shape_cast %191 : vector<1x128xf32> to vector<1x1x128xf32>
      %214 = vector.broadcast %213 : vector<1x1x128xf32> to vector<2x16x128xf32>
      %215 = arith.addf %212, %214 : vector<2x16x128xf32>
      %c0_87 = arith.constant 0 : index
      %c0_88 = arith.constant 0 : index
      %c0_89 = arith.constant 0 : index
      %216 = vector.load %arg21[%c0_87, %c0_88, %c0_89] : memref<2x16x128xf32, #tpu.memory_space<vmem>>, vector<2x16x128xf32>
      tpu.vector_store %arg21[%c0_87, %c0_88, %c0_89], %215 {strides = array<i32>} : memref<2x16x128xf32, #tpu.memory_space<vmem>>, vector<2x16x128xf32>,
    } else {
    }
    %c0 = arith.constant 0 : index
    %c0_1 = arith.constant 0 : index
    %c0_2 = arith.constant 0 : index
    %3 = vector.load %arg21[%c0, %c0_1, %c0_2] : memref<2x16x128xf32, #tpu.memory_space<vmem>>, vector<2x16x128xf32>
    %4 = vector.shape_cast %3 : vector<2x16x128xf32> to vector<32x128xf32>
    %c0_3 = arith.constant 0 : index
    %c0_4 = arith.constant 0 : index
    %c0_5 = arith.constant 0 : index
    %5 = vector.load %arg3[%c0_3, %c0_4, %c0_5] : memref<2x1x16xf32, #tpu.memory_space<vmem>>, vector<2x1x16xf32>
    %cst = arith.constant 1.000000e+00 : f32
    %6 = vector.broadcast %cst : f32 to vector<2x1x16xf32>
    %7 = arith.subf %6, %5 : vector<2x1x16xf32>
    %cst_6 = arith.constant -1.000000e+09 : f32
    %8 = vector.broadcast %cst_6 : f32 to vector<2x1x16xf32>
    %9 = arith.mulf %7, %8 : vector<2x1x16xf32>
    %c0_7 = arith.constant 0 : index
    %c0_8 = arith.constant 0 : index
    %c0_9 = arith.constant 0 : index
    %10 = vector.load %arg7[%c0_7, %c0_8, %c0_9] : memref<1x128x384xbf16, #tpu.memory_space<vmem>>, vector<1x128x384xbf16>
    %11 = vector.shape_cast %10 : vector<1x128x384xbf16> to vector<128x384xbf16>
    %12 = arith.truncf %4 : vector<32x128xf32> to vector<32x128xbf16>
    %cst_10 = arith.constant dense<0.000000e+00> : vector<32x384xf32>
    %13 = tpu.matmul %12, %11, %cst_10 {dimension_numbers = #tpu.dot_dimension_numbers<[1], [0], [0], [1], [0, 0, 1, 1], [], []>} : vector<32x128xbf16>, vector<128x384xbf16>, vector<32x384xf32> -> vector<32x384xf32>
    %c0_11 = arith.constant 0 : index
    %c0_12 = arith.constant 0 : index
    %c0_13 = arith.constant 0 : index
    %14 = vector.load %arg8[%c0_11, %c0_12, %c0_13] : memref<1x1x384xf32, #tpu.memory_space<vmem>>, vector<1x1x384xf32>
    %15 = vector.shape_cast %14 : vector<1x1x384xf32> to vector<1x384xf32>
    %16 = vector.broadcast %15 : vector<1x384xf32> to vector<32x384xf32>
    %17 = arith.addf %13, %16 : vector<32x384xf32>
    %18 = vector.extract_strided_slice %17 {offsets = [0, 0], sizes = [32, 128], strides = [1, 1]} : vector<32x384xf32> to vector<32x128xf32>
    %19 = vector.shape_cast %18 : vector<32x128xf32> to vector<2x16x2x64xf32>
    %20 = vector.extract_strided_slice %17 {offsets = [0, 128], sizes = [32, 128], strides = [1, 1]} : vector<32x384xf32> to vector<32x128xf32>
    %21 = vector.shape_cast %20 : vector<32x128xf32> to vector<2x16x2x64xf32>
    %22 = vector.extract_strided_slice %17 {offsets = [0, 256], sizes = [32, 128], strides = [1, 1]} : vector<32x384xf32> to vector<32x128xf32>
    %23 = vector.shape_cast %22 : vector<32x128xf32> to vector<2x16x2x64xf32>
    %24 = vector.extract_strided_slice %19 {offsets = [0, 0, 0, 0], sizes = [1, 16, 2, 64], strides = [1, 1, 1, 1]} : vector<2x16x2x64xf32> to vector<1x16x2x64xf32>
    %25 = vector.shape_cast %24 : vector<1x16x2x64xf32> to vector<16x2x64xf32>
    %26 = tpu.transpose %25, [1, 0, 2] : vector<16x2x64xf32> -> vector<2x16x64xf32>
    %27 = arith.truncf %26 : vector<2x16x64xf32> to vector<2x16x64xbf16>
    %28 = vector.extract_strided_slice %21 {offsets = [0, 0, 0, 0], sizes = [1, 16, 2, 64], strides = [1, 1, 1, 1]} : vector<2x16x2x64xf32> to vector<1x16x2x64xf32>
    %29 = vector.shape_cast %28 : vector<1x16x2x64xf32> to vector<16x2x64xf32>
    %30 = tpu.transpose %29, [1, 0, 2] : vector<16x2x64xf32> -> vector<2x16x64xf32>
    %31 = arith.truncf %30 : vector<2x16x64xf32> to vector<2x16x64xbf16>
    %32 = vector.extract_strided_slice %23 {offsets = [0, 0, 0, 0], sizes = [1, 16, 2, 64], strides = [1, 1, 1, 1]} : vector<2x16x2x64xf32> to vector<1x16x2x64xf32>
    %33 = vector.shape_cast %32 : vector<1x16x2x64xf32> to vector<16x2x64xf32>
    %34 = tpu.transpose %33, [1, 0, 2] : vector<16x2x64xf32> -> vector<2x16x64xf32>
    %35 = arith.truncf %34 : vector<2x16x64xf32> to vector<2x16x64xbf16>
    "tpu.trace_start"() <{level = 10 : i32, message = "hqd,hkd->hqk"}> : () -> ()
    %cst_14 = arith.constant dense<0.000000e+00> : vector<2x16x16xf32>
    %36 = tpu.matmul %27, %31, %cst_14 {dimension_numbers = #tpu.dot_dimension_numbers<[2], [2], [1], [1], [0, 0, 0, 1, 1, 1], [0], [0]>} : vector<2x16x64xbf16>, vector<2x16x64xbf16>, vector<2x16x16xf32> -> vector<2x16x16xf32>
    "tpu.trace_stop"() : () -> ()
    %cst_15 = arith.constant 1.250000e-01 : f32
    %37 = vector.broadcast %cst_15 : f32 to vector<2x16x16xf32>
    %38 = arith.mulf %36, %37 : vector<2x16x16xf32>
    %39 = vector.extract_strided_slice %9 {offsets = [0, 0, 0], sizes = [1, 1, 16], strides = [1, 1, 1]} : vector<2x1x16xf32> to vector<1x1x16xf32>
    %40 = vector.shape_cast %39 : vector<1x1x16xf32> to vector<1x16xf32>
    %41 = vector.shape_cast %40 : vector<1x16xf32> to vector<1x1x16xf32>
    %42 = vector.broadcast %41 : vector<1x1x16xf32> to vector<2x16x16xf32>
    %43 = arith.addf %38, %42 : vector<2x16x16xf32>
    %cst_16 = arith.constant dense<0xFF800000> : vector<2x16xf32>
    %44 = vector.multi_reduction <maximumf>, %43, %cst_16 [2] : vector<2x16x16xf32> to vector<2x16xf32>
    %45 = vector.shape_cast %44 : vector<2x16xf32> to vector<2x16x1xf32>
    %46 = vector.broadcast %45 : vector<2x16x1xf32> to vector<2x16x16xf32>
    %47 = arith.subf %43, %46 : vector<2x16x16xf32>
    %48 = math.exp %47 : vector<2x16x16xf32>
    %cst_17 = arith.constant dense<0.000000e+00> : vector<2x16xf32>
    %49 = vector.multi_reduction <add>, %48, %cst_17 [2] : vector<2x16x16xf32> to vector<2x16xf32>
    %50 = vector.shape_cast %49 : vector<2x16xf32> to vector<2x16x1xf32>
    %51 = tpu.reciprocal %50 {approx = true} : vector<2x16x1xf32> -> vector<2x16x1xf32>
    %52 = vector.broadcast %51 : vector<2x16x1xf32> to vector<2x16x16xf32>
    %53 = arith.mulf %48, %52 : vector<2x16x16xf32>
    %54 = arith.truncf %53 : vector<2x16x16xf32> to vector<2x16x16xbf16>
    "tpu.trace_start"() <{level = 10 : i32, message = "hqk,hkd->hqd"}> : () -> ()
    %cst_18 = arith.constant dense<0.000000e+00> : vector<2x16x64xf32>
    %55 = tpu.matmul %54, %35, %cst_18 {dimension_numbers = #tpu.dot_dimension_numbers<[2], [1], [1], [2], [0, 0, 0, 1, 1, 2], [0], [0]>} : vector<2x16x16xbf16>, vector<2x16x64xbf16>, vector<2x16x64xf32> -> vector<2x16x64xf32>
    "tpu.trace_stop"() : () -> ()
    %56 = tpu.transpose %55, [1, 0, 2] : vector<2x16x64xf32> -> vector<16x2x64xf32>
    %57 = vector.shape_cast %56 : vector<16x2x64xf32> to vector<16x128xf32>
    %58 = vector.extract_strided_slice %19 {offsets = [1, 0, 0, 0], sizes = [1, 16, 2, 64], strides = [1, 1, 1, 1]} : vector<2x16x2x64xf32> to vector<1x16x2x64xf32>
    %59 = vector.shape_cast %58 : vector<1x16x2x64xf32> to vector<16x2x64xf32>
    %60 = tpu.transpose %59, [1, 0, 2] : vector<16x2x64xf32> -> vector<2x16x64xf32>
    %61 = arith.truncf %60 : vector<2x16x64xf32> to vector<2x16x64xbf16>
    %62 = vector.extract_strided_slice %21 {offsets = [1, 0, 0, 0], sizes = [1, 16, 2, 64], strides = [1, 1, 1, 1]} : vector<2x16x2x64xf32> to vector<1x16x2x64xf32>
    %63 = vector.shape_cast %62 : vector<1x16x2x64xf32> to vector<16x2x64xf32>
    %64 = tpu.transpose %63, [1, 0, 2] : vector<16x2x64xf32> -> vector<2x16x64xf32>
    %65 = arith.truncf %64 : vector<2x16x64xf32> to vector<2x16x64xbf16>
    %66 = vector.extract_strided_slice %23 {offsets = [1, 0, 0, 0], sizes = [1, 16, 2, 64], strides = [1, 1, 1, 1]} : vector<2x16x2x64xf32> to vector<1x16x2x64xf32>
    %67 = vector.shape_cast %66 : vector<1x16x2x64xf32> to vector<16x2x64xf32>
    %68 = tpu.transpose %67, [1, 0, 2] : vector<16x2x64xf32> -> vector<2x16x64xf32>
    %69 = arith.truncf %68 : vector<2x16x64xf32> to vector<2x16x64xbf16>
    "tpu.trace_start"() <{level = 10 : i32, message = "hqd,hkd->hqk"}> : () -> ()
    %cst_19 = arith.constant dense<0.000000e+00> : vector<2x16x16xf32>
    %70 = tpu.matmul %61, %65, %cst_19 {dimension_numbers = #tpu.dot_dimension_numbers<[2], [2], [1], [1], [0, 0, 0, 1, 1, 1], [0], [0]>} : vector<2x16x64xbf16>, vector<2x16x64xbf16>, vector<2x16x16xf32> -> vector<2x16x16xf32>
    "tpu.trace_stop"() : () -> ()
    %cst_20 = arith.constant 1.250000e-01 : f32
    %71 = vector.broadcast %cst_20 : f32 to vector<2x16x16xf32>
    %72 = arith.mulf %70, %71 : vector<2x16x16xf32>
    %73 = vector.extract_strided_slice %9 {offsets = [1, 0, 0], sizes = [1, 1, 16], strides = [1, 1, 1]} : vector<2x1x16xf32> to vector<1x1x16xf32>
    %74 = vector.shape_cast %73 : vector<1x1x16xf32> to vector<1x16xf32>
    %75 = vector.shape_cast %74 : vector<1x16xf32> to vector<1x1x16xf32>
    %76 = vector.broadcast %75 : vector<1x1x16xf32> to vector<2x16x16xf32>
    %77 = arith.addf %72, %76 : vector<2x16x16xf32>
    %cst_21 = arith.constant dense<0xFF800000> : vector<2x16xf32>
    %78 = vector.multi_reduction <maximumf>, %77, %cst_21 [2] : vector<2x16x16xf32> to vector<2x16xf32>
    %79 = vector.shape_cast %78 : vector<2x16xf32> to vector<2x16x1xf32>
    %80 = vector.broadcast %79 : vector<2x16x1xf32> to vector<2x16x16xf32>
    %81 = arith.subf %77, %80 : vector<2x16x16xf32>
    %82 = math.exp %81 : vector<2x16x16xf32>
    %cst_22 = arith.constant dense<0.000000e+00> : vector<2x16xf32>
    %83 = vector.multi_reduction <add>, %82, %cst_22 [2] : vector<2x16x16xf32> to vector<2x16xf32>
    %84 = vector.shape_cast %83 : vector<2x16xf32> to vector<2x16x1xf32>
    %85 = tpu.reciprocal %84 {approx = true} : vector<2x16x1xf32> -> vector<2x16x1xf32>
    %86 = vector.broadcast %85 : vector<2x16x1xf32> to vector<2x16x16xf32>
    %87 = arith.mulf %82, %86 : vector<2x16x16xf32>
    %88 = arith.truncf %87 : vector<2x16x16xf32> to vector<2x16x16xbf16>
    "tpu.trace_start"() <{level = 10 : i32, message = "hqk,hkd->hqd"}> : () -> ()
    %cst_23 = arith.constant dense<0.000000e+00> : vector<2x16x64xf32>
    %89 = tpu.matmul %88, %69, %cst_23 {dimension_numbers = #tpu.dot_dimension_numbers<[2], [1], [1], [2], [0, 0, 0, 1, 1, 2], [0], [0]>} : vector<2x16x16xbf16>, vector<2x16x64xbf16>, vector<2x16x64xf32> -> vector<2x16x64xf32>
    "tpu.trace_stop"() : () -> ()
    %90 = tpu.transpose %89, [1, 0, 2] : vector<2x16x64xf32> -> vector<16x2x64xf32>
    %91 = vector.shape_cast %90 : vector<16x2x64xf32> to vector<16x128xf32>
    %92 = tpu.concatenate %57, %91 in 0 : vector<16x128xf32>, vector<16x128xf32> -> vector<32x128xf32>
    %c0_24 = arith.constant 0 : index
    %c0_25 = arith.constant 0 : index
    %c0_26 = arith.constant 0 : index
    %93 = vector.load %arg9[%c0_24, %c0_25, %c0_26] : memref<1x128x128xbf16, #tpu.memory_space<vmem>>, vector<1x128x128xbf16>
    %94 = vector.shape_cast %93 : vector<1x128x128xbf16> to vector<128x128xbf16>
    %95 = arith.truncf %92 : vector<32x128xf32> to vector<32x128xbf16>
    %cst_27 = arith.constant dense<0.000000e+00> : vector<32x128xf32>
    %96 = tpu.matmul %95, %94, %cst_27 {dimension_numbers = #tpu.dot_dimension_numbers<[1], [0], [0], [1], [0, 0, 1, 1], [], []>} : vector<32x128xbf16>, vector<128x128xbf16>, vector<32x128xf32> -> vector<32x128xf32>
    %97 = arith.addf %4, %96 : vector<32x128xf32>
    %c0_28 = arith.constant 0 : index
    %c0_29 = arith.constant 0 : index
    %c0_30 = arith.constant 0 : index
    %98 = vector.load %arg10[%c0_28, %c0_29, %c0_30] : memref<1x1x128xf32, #tpu.memory_space<vmem>>, vector<1x1x128xf32>
    %99 = vector.shape_cast %98 : vector<1x1x128xf32> to vector<1x128xf32>
    %100 = vector.broadcast %99 : vector<1x128xf32> to vector<32x128xf32>
    %101 = arith.addf %97, %100 : vector<32x128xf32>
    %c0_31 = arith.constant 0 : index
    %c0_32 = arith.constant 0 : index
    %c0_33 = arith.constant 0 : index
    %102 = vector.load %arg11[%c0_31, %c0_32, %c0_33] : memref<1x1x128xf32, #tpu.memory_space<vmem>>, vector<1x1x128xf32>
    %103 = vector.shape_cast %102 : vector<1x1x128xf32> to vector<1x128xf32>
    %c0_34 = arith.constant 0 : index
    %c0_35 = arith.constant 0 : index
    %c0_36 = arith.constant 0 : index
    %104 = vector.load %arg12[%c0_34, %c0_35, %c0_36] : memref<1x1x128xf32, #tpu.memory_space<vmem>>, vector<1x1x128xf32>
    %105 = vector.shape_cast %104 : vector<1x1x128xf32> to vector<1x128xf32>
    %cst_37 = arith.constant dense<0.000000e+00> : vector<32xf32>
    %106 = vector.multi_reduction <add>, %101, %cst_37 [1] : vector<32x128xf32> to vector<32xf32>
    %107 = vector.shape_cast %106 : vector<32xf32> to vector<32x1xf32>
    %cst_38 = arith.constant 1.280000e+02 : f32
    %108 = vector.broadcast %cst_38 : f32 to vector<32x1xf32>
    %109 = arith.divf %107, %108 : vector<32x1xf32>
    %110 = vector.broadcast %109 : vector<32x1xf32> to vector<32x128xf32>
    %111 = arith.subf %101, %110 : vector<32x128xf32>
    %112 = arith.mulf %111, %111 : vector<32x128xf32>
    %cst_39 = arith.constant dense<0.000000e+00> : vector<32xf32>
    %113 = vector.multi_reduction <add>, %112, %cst_39 [1] : vector<32x128xf32> to vector<32xf32>
    %114 = vector.shape_cast %113 : vector<32xf32> to vector<32x1xf32>
    %cst_40 = arith.constant 1.280000e+02 : f32
    %115 = vector.broadcast %cst_40 : f32 to vector<32x1xf32>
    %116 = arith.divf %114, %115 : vector<32x1xf32>
    %117 = vector.broadcast %109 : vector<32x1xf32> to vector<32x128xf32>
    %118 = arith.subf %101, %117 : vector<32x128xf32>
    %cst_41 = arith.constant 9.99999996E-13 : f32
    %119 = vector.broadcast %cst_41 : f32 to vector<32x1xf32>
    %120 = arith.addf %116, %119 : vector<32x1xf32>
    %121 = math.rsqrt %120 : vector<32x1xf32>
    %122 = vector.broadcast %121 : vector<32x1xf32> to vector<32x128xf32>
    %123 = arith.mulf %118, %122 : vector<32x128xf32>
    %124 = vector.broadcast %103 : vector<1x128xf32> to vector<32x128xf32>
    %125 = arith.mulf %123, %124 : vector<32x128xf32>
    %126 = vector.broadcast %105 : vector<1x128xf32> to vector<32x128xf32>
    %127 = arith.addf %125, %126 : vector<32x128xf32>
    %c0_42 = arith.constant 0 : index
    %c0_43 = arith.constant 0 : index
    %c0_44 = arith.constant 0 : index
    %128 = vector.load %arg13[%c0_42, %c0_43, %c0_44] : memref<1x128x512xbf16, #tpu.memory_space<vmem>>, vector<1x128x512xbf16>
    %129 = vector.shape_cast %128 : vector<1x128x512xbf16> to vector<128x512xbf16>
    %130 = arith.truncf %127 : vector<32x128xf32> to vector<32x128xbf16>
    %cst_45 = arith.constant dense<0.000000e+00> : vector<32x512xf32>
    %131 = tpu.matmul %130, %129, %cst_45 {dimension_numbers = #tpu.dot_dimension_numbers<[1], [0], [0], [1], [0, 0, 1, 1], [], []>} : vector<32x128xbf16>, vector<128x512xbf16>, vector<32x512xf32> -> vector<32x512xf32>
    %c0_46 = arith.constant 0 : index
    %c0_47 = arith.constant 0 : index
    %c0_48 = arith.constant 0 : index
    %132 = vector.load %arg14[%c0_46, %c0_47, %c0_48] : memref<1x1x512xf32, #tpu.memory_space<vmem>>, vector<1x1x512xf32>
    %133 = vector.shape_cast %132 : vector<1x1x512xf32> to vector<1x512xf32>
    %134 = vector.broadcast %133 : vector<1x512xf32> to vector<32x512xf32>
    %135 = arith.addf %131, %134 : vector<32x512xf32>
    %cst_49 = arith.constant 5.000000e-01 : f32
    %136 = vector.broadcast %cst_49 : f32 to vector<32x512xf32>
    %137 = arith.mulf %136, %135 : vector<32x512xf32>
    %cst_50 = arith.constant 4.471500e-02 : f32
    %138 = vector.broadcast %cst_50 : f32 to vector<32x512xf32>
    %139 = arith.mulf %138, %135 : vector<32x512xf32>
    %140 = arith.mulf %139, %135 : vector<32x512xf32>
    %141 = arith.mulf %140, %135 : vector<32x512xf32>
    %142 = arith.addf %135, %141 : vector<32x512xf32>
    %cst_51 = arith.constant 0.797884583 : f32
    %143 = vector.broadcast %cst_51 : f32 to vector<32x512xf32>
    %144 = arith.mulf %143, %142 : vector<32x512xf32>
    %145 = math.tanh %144 : vector<32x512xf32>
    %cst_52 = arith.constant 1.000000e+00 : f32
    %146 = vector.broadcast %cst_52 : f32 to vector<32x512xf32>
    %147 = arith.addf %146, %145 : vector<32x512xf32>
    %148 = arith.mulf %137, %147 : vector<32x512xf32>
    %c0_53 = arith.constant 0 : index
    %c0_54 = arith.constant 0 : index
    %c0_55 = arith.constant 0 : index
    %149 = vector.load %arg15[%c0_53, %c0_54, %c0_55] : memref<1x512x128xbf16, #tpu.memory_space<vmem>>, vector<1x512x128xbf16>
    %150 = vector.shape_cast %149 : vector<1x512x128xbf16> to vector<512x128xbf16>
    %151 = arith.truncf %148 : vector<32x512xf32> to vector<32x512xbf16>
    %cst_56 = arith.constant dense<0.000000e+00> : vector<32x128xf32>
    %152 = tpu.matmul %151, %150, %cst_56 {dimension_numbers = #tpu.dot_dimension_numbers<[1], [0], [0], [1], [0, 0, 1, 1], [], []>} : vector<32x512xbf16>, vector<512x128xbf16>, vector<32x128xf32> -> vector<32x128xf32>
    %153 = arith.addf %127, %152 : vector<32x128xf32>
    %c0_57 = arith.constant 0 : index
    %c0_58 = arith.constant 0 : index
    %c0_59 = arith.constant 0 : index
    %154 = vector.load %arg16[%c0_57, %c0_58, %c0_59] : memref<1x1x128xf32, #tpu.memory_space<vmem>>, vector<1x1x128xf32>
    %155 = vector.shape_cast %154 : vector<1x1x128xf32> to vector<1x128xf32>
    %156 = vector.broadcast %155 : vector<1x128xf32> to vector<32x128xf32>
    %157 = arith.addf %153, %156 : vector<32x128xf32>
    %c0_60 = arith.constant 0 : index
    %c0_61 = arith.constant 0 : index
    %c0_62 = arith.constant 0 : index
    %158 = vector.load %arg17[%c0_60, %c0_61, %c0_62] : memref<1x1x128xf32, #tpu.memory_space<vmem>>, vector<1x1x128xf32>
    %159 = vector.shape_cast %158 : vector<1x1x128xf32> to vector<1x128xf32>
    %c0_63 = arith.constant 0 : index
    %c0_64 = arith.constant 0 : index
    %c0_65 = arith.constant 0 : index
    %160 = vector.load %arg18[%c0_63, %c0_64, %c0_65] : memref<1x1x128xf32, #tpu.memory_space<vmem>>, vector<1x1x128xf32>
    %161 = vector.shape_cast %160 : vector<1x1x128xf32> to vector<1x128xf32>
    %cst_66 = arith.constant dense<0.000000e+00> : vector<32xf32>
    %162 = vector.multi_reduction <add>, %157, %cst_66 [1] : vector<32x128xf32> to vector<32xf32>
    %163 = vector.shape_cast %162 : vector<32xf32> to vector<32x1xf32>
    %cst_67 = arith.constant 1.280000e+02 : f32
    %164 = vector.broadcast %cst_67 : f32 to vector<32x1xf32>
    %165 = arith.divf %163, %164 : vector<32x1xf32>
    %166 = vector.broadcast %165 : vector<32x1xf32> to vector<32x128xf32>
    %167 = arith.subf %157, %166 : vector<32x128xf32>
    %168 = arith.mulf %167, %167 : vector<32x128xf32>
    %cst_68 = arith.constant dense<0.000000e+00> : vector<32xf32>
    %169 = vector.multi_reduction <add>, %168, %cst_68 [1] : vector<32x128xf32> to vector<32xf32>
    %170 = vector.shape_cast %169 : vector<32xf32> to vector<32x1xf32>
    %cst_69 = arith.constant 1.280000e+02 : f32
    %171 = vector.broadcast %cst_69 : f32 to vector<32x1xf32>
    %172 = arith.divf %170, %171 : vector<32x1xf32>
    %173 = vector.broadcast %165 : vector<32x1xf32> to vector<32x128xf32>
    %174 = arith.subf %157, %173 : vector<32x128xf32>
    %cst_70 = arith.constant 9.99999996E-13 : f32
    %175 = vector.broadcast %cst_70 : f32 to vector<32x1xf32>
    %176 = arith.addf %172, %175 : vector<32x1xf32>
    %177 = math.rsqrt %176 : vector<32x1xf32>
    %178 = vector.broadcast %177 : vector<32x1xf32> to vector<32x128xf32>
    %179 = arith.mulf %174, %178 : vector<32x128xf32>
    %180 = vector.broadcast %159 : vector<1x128xf32> to vector<32x128xf32>
    %181 = arith.mulf %179, %180 : vector<32x128xf32>
    %182 = vector.broadcast %161 : vector<1x128xf32> to vector<32x128xf32>
    %183 = arith.addf %181, %182 : vector<32x128xf32>
    %184 = vector.shape_cast %183 : vector<32x128xf32> to vector<2x16x128xf32>
    %c0_71 = arith.constant 0 : index
    %c0_72 = arith.constant 0 : index
    %c0_73 = arith.constant 0 : index
    %185 = vector.load %arg21[%c0_71, %c0_72, %c0_73] : memref<2x16x128xf32, #tpu.memory_space<vmem>>, vector<2x16x128xf32>
    tpu.vector_store %arg21[%c0_71, %c0_72, %c0_73], %184 {strides = array<i32>} : memref<2x16x128xf32, #tpu.memory_space<vmem>>, vector<2x16x128xf32>,
    %c1_i32 = arith.constant 1 : i32
    %186 = arith.cmpi eq, %arg1, %c1_i32 : i32
    %187 = arith.extui %186 : i1 to i32
    %c0_i32_74 = arith.constant 0 : i32
    %188 = arith.cmpi ne, %187, %c0_i32_74 : i32
    scf.if %188 {
      %c0_75 = arith.constant 0 : index
      %c0_76 = arith.constant 0 : index
      %c0_77 = arith.constant 0 : index
      %189 = vector.load %arg21[%c0_75, %c0_76, %c0_77] : memref<2x16x128xf32, #tpu.memory_space<vmem>>, vector<2x16x128xf32>
      %190 = vector.extract_strided_slice %189 {offsets = [0, 0, 0], sizes = [2, 1, 128], strides = [1, 1, 1]} : vector<2x16x128xf32> to vector<2x1x128xf32>
      %191 = vector.shape_cast %190 : vector<2x1x128xf32> to vector<2x128xf32>
      %c0_78 = arith.constant 0 : index
      %c0_79 = arith.constant 0 : index
      %192 = vector.load %arg19[%c0_78, %c0_79] : memref<128x128xbf16, #tpu.memory_space<vmem>>, vector<128x128xbf16>
      %193 = arith.truncf %191 : vector<2x128xf32> to vector<2x128xbf16>
      %cst_80 = arith.constant dense<0.000000e+00> : vector<2x128xf32>
      %194 = tpu.matmul %193, %192, %cst_80 {dimension_numbers = #tpu.dot_dimension_numbers<[1], [0], [0], [1], [0, 0, 1, 1], [], []>} : vector<2x128xbf16>, vector<128x128xbf16>, vector<2x128xf32> -> vector<2x128xf32>
      %c0_81 = arith.constant 0 : index
      %c0_82 = arith.constant 0 : index
      %195 = vector.load %arg20[%c0_81, %c0_82] : memref<1x128xf32, #tpu.memory_space<vmem>>, vector<1x128xf32>
      %196 = vector.broadcast %195 : vector<1x128xf32> to vector<2x128xf32>
      %197 = arith.addf %194, %196 : vector<2x128xf32>
      %198 = math.tanh %197 : vector<2x128xf32>
      %199 = vector.shape_cast %198 : vector<2x128xf32> to vector<2x1x128xf32>
      %c0_83 = arith.constant 0 : index
      %c0_84 = arith.constant 0 : index
      %c0_85 = arith.constant 0 : index
      %200 = vector.load %arg22[%c0_83, %c0_84, %c0_85] : memref<2x1x128xf32, #tpu.memory_space<vmem>>, vector<2x1x128xf32>
      tpu.vector_store %arg22[%c0_83, %c0_84, %c0_85], %199 {strides = array<i32>} : memref<2x1x128xf32, #tpu.memory_space<vmem>>, vector<2x1x128xf32>,
      %c0_86 = arith.constant 0 : index
      %c0_87 = arith.constant 0 : index
      %c0_88 = arith.constant 0 : index
      %201 = vector.load %arg4[%c0_86, %c0_87, %c0_88] : memref<2x16x1xf32, #tpu.memory_space<vmem>>, vector<2x16x1xf32>
      %202 = vector.broadcast %201 : vector<2x16x1xf32> to vector<2x16x128xf32>
      %203 = arith.mulf %189, %202 : vector<2x16x128xf32>
      %cst_89 = arith.constant dense<0.000000e+00> : vector<2x128xf32>
      %204 = vector.multi_reduction <add>, %203, %cst_89 [1] : vector<2x16x128xf32> to vector<2x128xf32>
      %205 = vector.shape_cast %204 : vector<2x128xf32> to vector<2x1x128xf32>
      %cst_90 = arith.constant dense<0.000000e+00> : vector<2x1xf32>
      %206 = vector.multi_reduction <add>, %201, %cst_90 [1] : vector<2x16x1xf32> to vector<2x1xf32>
      %207 = vector.shape_cast %206 : vector<2x1xf32> to vector<2x1x1xf32>
      %cst_91 = arith.constant 9.99999971E-10 : f32
      %208 = vector.broadcast %cst_91 : f32 to vector<2x1x1xf32>
      %209 = arith.maximumf %207, %208 : vector<2x1x1xf32>
      %210 = tpu.reciprocal %209 {approx = true} : vector<2x1x1xf32> -> vector<2x1x1xf32>
      %211 = vector.broadcast %210 : vector<2x1x1xf32> to vector<2x1x128xf32>
      %212 = arith.mulf %205, %211 : vector<2x1x128xf32>
      %c0_92 = arith.constant 0 : index
      %c0_93 = arith.constant 0 : index
      %c0_94 = arith.constant 0 : index
      %213 = vector.load %arg23[%c0_92, %c0_93, %c0_94] : memref<2x1x128xf32, #tpu.memory_space<vmem>>, vector<2x1x128xf32>
      tpu.vector_store %arg23[%c0_92, %c0_93, %c0_94], %212 {strides = array<i32>} : memref<2x1x128xf32, #tpu.memory_space<vmem>>, vector<2x1x128xf32>,
    } else {
    }
    return
  }
  func.func @transform_0(%arg0: i32, %arg1: i32) -> (i32, i32, i32) {
    %c0_i32 = arith.constant 0 : i32
    %c0_i32_0 = arith.constant 0 : i32
    %c0_i32_1 = arith.constant 0 : i32
    return %arg0, %c0_i32, %c0_i32_0 : i32, i32, i32
  }
  func.func @transform_1(%arg0: i32, %arg1: i32) -> (i32, i32, i32) {
    %c0_i32 = arith.constant 0 : i32
    %c0_i32_0 = arith.constant 0 : i32
    %c0_i32_1 = arith.constant 0 : i32
    return %arg0, %c0_i32, %c0_i32_0 : i32, i32, i32
  }
  func.func @transform_2(%arg0: i32, %arg1: i32) -> (i32, i32, i32) {
    %c0_i32 = arith.constant 0 : i32
    %c0_i32_0 = arith.constant 0 : i32
    %c0_i32_1 = arith.constant 0 : i32
    return %arg0, %c0_i32, %c0_i32_0 : i32, i32, i32
  }
  func.func @transform_3(%arg0: i32, %arg1: i32) -> (i32, i32) {
    %c0_i32 = arith.constant 0 : i32
    %c0_i32_0 = arith.constant 0 : i32
    %c0_i32_1 = arith.constant 0 : i32
    return %c0_i32, %c0_i32_0 : i32, i32
  }
  func.func @transform_4(%arg0: i32, %arg1: i32) -> (i32, i32) {
    %c0_i32 = arith.constant 0 : i32
    %c0_i32_0 = arith.constant 0 : i32
    %c0_i32_1 = arith.constant 0 : i32
    return %c0_i32, %c0_i32_0 : i32, i32
  }
  func.func @transform_5(%arg0: i32, %arg1: i32) -> (i32, i32, i32) {
    %c0_i32 = arith.constant 0 : i32
    %c0_i32_0 = arith.constant 0 : i32
    %c0_i32_1 = arith.constant 0 : i32
    return %arg1, %c0_i32, %c0_i32_0 : i32, i32, i32
  }
  func.func @transform_6(%arg0: i32, %arg1: i32) -> (i32, i32, i32) {
    %c0_i32 = arith.constant 0 : i32
    %c0_i32_0 = arith.constant 0 : i32
    %c0_i32_1 = arith.constant 0 : i32
    return %arg1, %c0_i32, %c0_i32_0 : i32, i32, i32
  }
  func.func @transform_7(%arg0: i32, %arg1: i32) -> (i32, i32, i32) {
    %c0_i32 = arith.constant 0 : i32
    %c0_i32_0 = arith.constant 0 : i32
    %c0_i32_1 = arith.constant 0 : i32
    return %arg1, %c0_i32, %c0_i32_0 : i32, i32, i32
  }
  func.func @transform_8(%arg0: i32, %arg1: i32) -> (i32, i32, i32) {
    %c0_i32 = arith.constant 0 : i32
    %c0_i32_0 = arith.constant 0 : i32
    %c0_i32_1 = arith.constant 0 : i32
    return %arg1, %c0_i32, %c0_i32_0 : i32, i32, i32
  }
  func.func @transform_9(%arg0: i32, %arg1: i32) -> (i32, i32, i32) {
    %c0_i32 = arith.constant 0 : i32
    %c0_i32_0 = arith.constant 0 : i32
    %c0_i32_1 = arith.constant 0 : i32
    return %arg1, %c0_i32, %c0_i32_0 : i32, i32, i32
  }
  func.func @transform_10(%arg0: i32, %arg1: i32) -> (i32, i32, i32) {
    %c0_i32 = arith.constant 0 : i32
    %c0_i32_0 = arith.constant 0 : i32
    %c0_i32_1 = arith.constant 0 : i32
    return %arg1, %c0_i32, %c0_i32_0 : i32, i32, i32
  }
  func.func @transform_11(%arg0: i32, %arg1: i32) -> (i32, i32, i32) {
    %c0_i32 = arith.constant 0 : i32
    %c0_i32_0 = arith.constant 0 : i32
    %c0_i32_1 = arith.constant 0 : i32
    return %arg1, %c0_i32, %c0_i32_0 : i32, i32, i32
  }
  func.func @transform_12(%arg0: i32, %arg1: i32) -> (i32, i32, i32) {
    %c0_i32 = arith.constant 0 : i32
    %c0_i32_0 = arith.constant 0 : i32
    %c0_i32_1 = arith.constant 0 : i32
    return %arg1, %c0_i32, %c0_i32_0 : i32, i32, i32
  }
  func.func @transform_13(%arg0: i32, %arg1: i32) -> (i32, i32, i32) {
    %c0_i32 = arith.constant 0 : i32
    %c0_i32_0 = arith.constant 0 : i32
    %c0_i32_1 = arith.constant 0 : i32
    return %arg1, %c0_i32, %c0_i32_0 : i32, i32, i32
  }
  func.func @transform_14(%arg0: i32, %arg1: i32) -> (i32, i32, i32) {
    %c0_i32 = arith.constant 0 : i32
    %c0_i32_0 = arith.constant 0 : i32
    %c0_i32_1 = arith.constant 0 : i32
    return %arg1, %c0_i32, %c0_i32_0 : i32, i32, i32
  }
  func.func @transform_15(%arg0: i32, %arg1: i32) -> (i32, i32, i32) {
    %c0_i32 = arith.constant 0 : i32
    %c0_i32_0 = arith.constant 0 : i32
    %c0_i32_1 = arith.constant 0 : i32
    return %arg1, %c0_i32, %c0_i32_0 : i32, i32, i32
  }
  func.func @transform_16(%arg0: i32, %arg1: i32) -> (i32, i32, i32) {
    %c0_i32 = arith.constant 0 : i32
    %c0_i32_0 = arith.constant 0 : i32
    %c0_i32_1 = arith.constant 0 : i32
    return %arg1, %c0_i32, %c0_i32_0 : i32, i32, i32
  }
  func.func @transform_17(%arg0: i32, %arg1: i32) -> (i32, i32) {
    %c0_i32 = arith.constant 0 : i32
    %c0_i32_0 = arith.constant 0 : i32
    %c0_i32_1 = arith.constant 0 : i32
    return %c0_i32, %c0_i32_0 : i32, i32
  }
  func.func @transform_18(%arg0: i32, %arg1: i32) -> (i32, i32) {
    %c0_i32 = arith.constant 0 : i32
    %c0_i32_0 = arith.constant 0 : i32
    %c0_i32_1 = arith.constant 0 : i32
    return %c0_i32, %c0_i32_0 : i32, i32
  }
  func.func @transform_19(%arg0: i32, %arg1: i32) -> (i32, i32, i32) {
    %c0_i32 = arith.constant 0 : i32
    %c0_i32_0 = arith.constant 0 : i32
    %c0_i32_1 = arith.constant 0 : i32
    return %arg0, %c0_i32, %c0_i32_0 : i32, i32, i32
  }
  func.func @transform_20(%arg0: i32, %arg1: i32) -> (i32, i32, i32) {
    %c0_i32 = arith.constant 0 : i32
    %c0_i32_0 = arith.constant 0 : i32
    %c0_i32_1 = arith.constant 0 : i32
    return %arg0, %c0_i32, %c0_i32_0 : i32, i32, i32
  }
  func.func @transform_21(%arg0: i32, %arg1: i32) -> (i32, i32, i32) {
    %c0_i32 = arith.constant 0 : i32
    %c0_i32_0 = arith.constant 0 : i32
    %c0_i32_1 = arith.constant 0 : i32
    return %arg0, %c0_i32, %c0_i32_0 : i32, i32, i32
  }
}

</mosaic_0001>

<bundles_post_ra>
// kernel: tpu_custom_call.1
= control target key start
LH: loop header
LB: loop body
LE: loop exit
PB: predicated region body
PF: predicated region fallthrough
CT: control target
= control target key end

     0   :  { %s9210_s0 = inlined_call_operand.vmem [shape: f32[4,16,128], index: 0, kind: input, shape index: {}]   ;;  %s9211_s1 = inlined_call_operand.hbm [shape: f32[4,1,16], index: 1, kind: input, shape index: {}]   ;;  %s9212_s2 = inlined_call_operand.vmem [shape: f32[4,16,1], index: 2, kind: input, shape index: {}]   ;;  %s9213_s3 = inlined_call_operand.hbm [shape: f32[1,128], index: 3, kind: input, shape index: {}]   ;;  %s9214_s4 = inlined_call_operand.hbm [shape: f32[1,128], index: 4, kind: input, shape index: {}]   ;;  %s9215_s5 = inlined_call_operand.hbm [shape: bf16[2,128,384], index: 5, kind: input, shape index: {}]   ;;  %s9216_s6 = inlined_call_operand.hbm [shape: f32[2,1,384], index: 6, kind: input, shape index: {}]   ;;  %s9217_s7 = inlined_call_operand.hbm [shape: bf16[2,128,128], index: 7, kind: input, shape index: {}]   ;;  %s9218_s8 = inlined_call_operand.hbm [shape: f32[2,1,128], index: 8, kind: input, shape index: {}]   ;;  %s9219_s9 = inlined_call_operand.hbm [shape: f32[2,1,128], index: 9, kind: input, shape index: {}]   ;;  %s9220_s10 = inlined_call_operand.hbm [shape: f32[2,1,128], index: 10, kind: input, shape index: {}]   ;;  %s9221_s11 = inlined_call_operand.hbm [shape: bf16[2,128,512], index: 11, kind: input, shape index: {}]   ;;  %s9222_s12 = inlined_call_operand.hbm [shape: f32[2,1,512], index: 12, kind: input, shape index: {}]   ;;  %s9223_s13 = inlined_call_operand.hbm [shape: bf16[2,512,128], index: 13, kind: input, shape index: {}]   ;;  %s9224_s14 = inlined_call_operand.hbm [shape: f32[2,1,128], index: 14, kind: input, shape index: {}]   ;;  %s9225_s15 = inlined_call_operand.hbm [shape: f32[2,1,128], index: 15, kind: input, shape index: {}]   ;;  %s9226_s16 = inlined_call_operand.hbm [shape: f32[2,1,128], index: 16, kind: input, shape index: {}]   ;;  %s9227_s17 = inlined_call_operand.vmem [shape: bf16[128,128], index: 17, kind: input, shape index: {}]   ;;  %s9228_s18 = inlined_call_operand.vmem [shape: f32[1,128], index: 18, kind: input, shape index: {}]   ;;  %s9229_s19 = inlined_call_operand.hbm [shape: f32[4,16,128], index: 19, kind: output, shape index: {0}]   ;;  %s9230_s20 = inlined_call_operand.hbm [shape: f32[4,1,128], index: 20, kind: output, shape index: {1}]   ;;  %s9231_s21 = inlined_call_operand.hbm [shape: f32[4,1,128], index: 21, kind: output, shape index: {2}]  }
   0x1   :  { %9293 = sst [smem:[#allocation54_spill]] %s9210_s0 }
   0x2   :  { %9294 = sst [smem:[#allocation55_spill]] %s9211_s1 }
   0x3   :  { %9295 = sst [smem:[#allocation56_spill]] %s9212_s2 }
   0x4   :  { %9296 = sst [smem:[#allocation57_spill]] %s9213_s3 }
   0x5   :  { %9297 = sst [smem:[#allocation58_spill]] %s9214_s4 }
   0x6   :  { %9298 = sst [smem:[#allocation59_spill]] %s9215_s5 }
   0x7   :  { %9299 = sst [smem:[#allocation60_spill]] %s9216_s6 }
   0x8   :  { %9300 = sst [smem:[#allocation61_spill]] %s9217_s7 }
   0x9   :  { %9301 = sst [smem:[#allocation62_spill]] %s9218_s8 }
   0xa   :  { %9302 = sst [smem:[#allocation63_spill]] %s9219_s9 }
   0xb   :  { %9303 = sst [smem:[#allocation64_spill]] %s9220_s10 }
   0xc   :  { %9304 = sst [smem:[#allocation65_spill]] %s9221_s11 }
   0xd   :  { %9305 = sst [smem:[#allocation66_spill]] %s9222_s12 }
   0xe   :  { %9306 = sst [smem:[#allocation67_spill]] %s9223_s13 }
   0xf   :  { %9307 = sst [smem:[#allocation68_spill]] %s9224_s14 }
  0x10   :  { %9308 = sst [smem:[#allocation69_spill]] %s9225_s15 }
  0x11   :  { %9309 = sst [smem:[#allocation70_spill]] %s9226_s16 }
  0x12   :  { %9310 = sst [smem:[#allocation71_spill]] %s9227_s17 }
  0x13   :  { %9311 = sst [smem:[#allocation72_spill]] %s9228_s18 }
  0x14   :  { %9312 = sst [smem:[#allocation73_spill]] %s9229_s19 }
  0x15   :  { %9313 = sst [smem:[#allocation74_spill]] %s9230_s20 }
  0x16   :  { %9314 = sst [smem:[#allocation75_spill]] %s9231_s21 }
  0x17   :  { %27 = vsyncpa [#allocation3], 0 }
  0x18   :  { %29 = vsyncpa [#allocation3 + $0x1], 0 }
  0x19   :  { %30 = vsyncpa [#allocation6], 0 }
  0x1a   :  { %31 = vsyncpa [#allocation9], 0 }
  0x1b   :  { %33 = vsyncpa [#allocation9 + $0x1], 0 }
  0x1c   :  { %34 = vsyncpa [#allocation12], 0 }
  0x1d   :  { %36 = vsyncpa [#allocation12 + $0x1], 0 }
  0x1e   :  { %37 = vsyncpa [#allocation15], 0 }
  0x1f   :  { %39 = vsyncpa [#allocation15 + $0x1], 0 }
  0x20   :  { %40 = vsyncpa [#allocation18], 0 }
  0x21   :  { %42 = vsyncpa [#allocation18 + $0x1], 0 }
  0x22   :  { %43 = vsyncpa [#allocation21], 0 }
  0x23   :  { %45 = vsyncpa [#allocation21 + $0x1], 0 }
  0x24   :  { %46 = vsyncpa [#allocation24], 0 }
  0x25   :  { %48 = vsyncpa [#allocation24 + $0x1], 0 }
  0x26   :  { %49 = vsyncpa [#allocation4], 0 }
  0x27   :  { %51 = vsyncpa [#allocation4 + $0x1], 0 }
  0x28   :  { %52 = vsyncpa [#allocation28], 0 }
  0x29   :  { %54 = vsyncpa [#allocation28 + $0x1], 0  ;;  %s7531_s2 = smov 0   ;;  %s7533_s25 = smov 0  }
  0x2a   :  { %s7535_s26 = smov 0   ;;  %s7537_s27 = smov 0  }
  0x2b   :  { %s7539_s3 = smov 0   ;;  %s7541_s28 = smov 0  }
  0x2c   :  { %s7543_s29 = smov 0   ;;  %s7545_s0 = smov 0  }
  0x2d   :  { %s7547_s4 = smov 0   ;;  %s7549_s30 = smov 0  }
  0x2e   :  { %s7551_s5 = smov 0  }
  0x2f LB: > { %9315 = sst [smem:[#allocation40_spill]] %s7344_s25  ;;  %s7585_s22 = sadd.s32 4294967295, %s7380_s5   ;;  %s7380_s5 = sphi %s7551_s5, %s60_s5   ;;  %s7376_s30 = sphi %s7549_s30, %s9426_s30   ;;  %s7372_s4 = sphi %s7547_s4, %s9425_s4   ;;  %s7368_s0 = sphi %s7545_s0, %s9424_s0   ;;  %s7364_s29 = sphi %s7543_s29, %s9423_s29   ;;  %s7360_s28 = sphi %s7541_s28, %s9422_s28   ;;  %s7356_s3 = sphi %s7539_s3, %s9430_s3   ;;  %s7352_s27 = sphi %s7537_s27, %s9429_s27   ;;  %s7348_s26 = sphi %s7535_s26, %s9428_s26   ;;  %s7344_s25 = sphi %s7533_s25, %s9427_s25   ;;  %s7340_s2 = sphi %s7531_s2, %s9419_s2  }
  0x30   : > { %9316 = sst [smem:[#allocation41_spill]] %s7352_s27  ;;  %p9253_p0 = scmp.eq.s32.totalorder %s7380_s5, 0 }
  0x31   : > { %9317 = sst [smem:[#allocation42_spill]] %s7360_s28  ;;  %p118_p1 = scmp.ne.s32.totalorder %s7356_s3, %s7352_s27 }
  0x32   : > { %9318 = sst [smem:[#allocation43_spill]] %s7364_s29  ;;  %p9250_p2 = scmp.eq.s32.totalorder %s7585_s22, 0 }
  0x33   : > { %9319 = sst [smem:[#allocation44_spill]] %s7368_s0  ;;  %p206_p3 = scmp.ne.s32.totalorder %s7348_s26, %s7344_s25 }
  0x34   : > { %9320 = sst [smem:[#allocation45_spill]] %s7372_s4  ;;  %p212_p4 = scmp.ne.s32.totalorder %s7344_s25, %s7340_s2 }
  0x35   : > { %9321 = sst [smem:[#allocation46_spill]] %s7376_s30  ;;  %p7598_p5 = por %p9250_p2, %p118_p1 }
  0x36   : > { %p7605_p7 = por %p206_p3, %p9253_p0  ;;  %p7611_p8 = por %p212_p4, %p9250_p2 }
  0x37   : > { %s9322_s24 = scalar_select %p7598_p5, 1, 0 }
  0x38   : > { %s9325_s1 = scalar_select %p7611_p8, 1, 0 }
  0x39   : > { %9323 = sst [smem:[#allocation47_spill]] %s9322_s24  ;;  %s9327_s2 = sadd.s32 4294967294, %s7380_s5  }
  0x3a   : > { %9326 = sst [smem:[#allocation48_spill]] %s9325_s1  ;;  %p570_p9 = scmp.eq.s32.totalorder %s9327_s2, 3 }
  0x3b   : > { %p5833_p10 = scmp.ge.s32.totalorder %s7380_s5, 1  ;;  %p629_p11 = scmp.lt.s32.totalorder %s7380_s5, 5 }
  0x3c   : > { %p7619_p12 = por %p570_p9, %p118_p1  ;;  %s7382_s21 = smov [#allocation5]  }
  0x3d   : > { %p7623_p13 = pnand %p5833_p10, %p629_p11  ;;  %s642_s20 = sshll.u32 %s7382_s21, 4  ;;  %s643_s20 = int_to_ptr.vmem [resolvable:$true] %s642_s20 }
  0x3e   : > { %s9328_s27 = scalar_select %p7619_p12, 1, 0 }
  0x3f   : > { %s9330_s19 = scalar_select %p7623_p13, 1, 0 }
  0x40   : > { %9329 = sst [smem:[#allocation49_spill]] %s9328_s27  ;;  %p6312_p3 = pneg %p7623_p13 }
  0x41   : > { %9331 = sst [smem:[#allocation50_spill]] %s9330_s19  ;;  %p9252_p4 = scmp.lt.s32.totalorder %s7380_s5, 4 }
  0x42   : > { %s7631_s18 = sand.u32 1, %s7348_s26   ;;  %p7635_p6 = pnand %p6312_p3, %p9250_p2 }
  0x43   : > { %p7643_p1 = pnand %p9252_p4, %p7605_p7  ;;  %s7648_s21 = sand.u32 1, %s7380_s5  }
  0x44   : > { %s9332_s2 = scalar_select %p7635_p6, 1, 0 }
  0x45   : > { %s9333_s27 = scalar_select %p7643_p1, 1, 0 }
  0x46   : > { %s9334_s0 = sld [smem:[#allocation57_spill]]  ;;  %p9259_p10 = pneg %p7635_p6 }
  0x4c   : > { %s9335_s1 = smov %s9334_s0  ;;  %s6724_s25 = scalar_lea.hbm %s9334_s0, 16 }
  0x4d   : > { %p6725_p9 = scmp.ne.s32.totalorder %s9335_s1, %s6724_s25  ;;  %p6731_p7 = scmp.lt.u32.totalorder %s6724_s25, %s9335_s1 }
  0x4f   : > { %p6727_p11 = pnand %p9259_p10, %p6725_p9 }
  0x51   : > { %p6728_p3 = pneg %p6727_p11 }
  0x53   : > { %p6733_p2 = pnand %p6731_p7, %p6728_p3 }
  0x55   : > { %6736 = shalt.err (!%p6733_p2)
}
  0x56   : > { %s6737_s14 = scalar_lea.vmem %s643_s20, 16  ;;  %s6744_s17 = scalar_lea.vmem %s643_s20, 32 }
  0x57   : > { %p6738_p4 = scmp.ne.s32.totalorder %s643_s20, %s6737_s14  ;;  %p6745_p8 = scmp.lt.s32.totalorder %s643_s20, %s643_s20 }
  0x58   : > { %p6746_p5 = scmp.lt.s32.totalorder %s6744_s17, %s6737_s14 }
  0x59   : > { %p6740_p0 = pnand %p6738_p4, %p9259_p10 }
  0x5a   : > { %p6747_p13 = por %p6746_p5, %p6745_p8 }
  0x5b   : > { %p6741_p12 = pneg %p6740_p0 }
  0x5d   : > { %p6748_p1 = pnand %p6747_p13, %p6741_p12 }
  0x5f   : > { %6751 = shalt.err (!%p6748_p1)
}
  0x60   : > { %6315 = dma.hbm_to_vmem [thread:$0]  (!%p7635_p6), %s9335_s1, 16, %s643_s20, [#allocation6]  }
  0x61   : > { %s6266_s25 = smul.u32 192, %s7631_s18  ;;  %s9336_s23 = sld [smem:[#allocation59_spill]] }
  0x62   : > { %s6267_s29 = smul.u32 3072, %s7372_s4  ;;  %p9337_p2 = scmp.ne.s32.totalorder %s9333_s27, 0 }
  0x63   : > { %s715_s14 = scalar_lea.vmem [#allocation8], %s6266_s25 }
  0x64   : > { %s722_s17 = sshll.u32 %s715_s14, 4  ;;  %p7686_p5 = pneg %p9337_p2  ;;  %s7679_s17 = int_to_ptr.vmem [resolvable:$true] %s722_s17 }
  0x66   : > { %s9338_s20 = scalar_select %p7686_p5, 1, 0 }
  0x67   : > { %s7677_s12 = scalar_lea.hbm %s9336_s23, %s6267_s29  ;;  %s6757_s24 = scalar_lea.hbm %s9336_s23, 6144 }
  0x68   : > { %s6752_s16 = scalar_lea.hbm %s7677_s12, 3072  ;;  %p6758_p13 = scmp.lt.u32.totalorder %s7677_s12, %s9336_s23 }
  0x69   : > { %p6753_p0 = scmp.ne.s32.totalorder %s7677_s12, %s6752_s16  ;;  %p6759_p4 = scmp.lt.u32.totalorder %s6757_s24, %s6752_s16 }
  0x6a   : > { %p6761_p9 = scmp.lt.u32.totalorder %s6752_s16, %s7677_s12 }
  0x6b   : > { %p6755_p8 = pnand %p7686_p5, %p6753_p0  ;;  %p6760_p1 = por %p6759_p4, %p6758_p13 }
  0x6d   : > { %p6756_p12 = pneg %p6755_p8  ;;  %p6762_p11 = por %p6761_p9, %p6760_p1 }
  0x6f   : > { %p6763_p3 = pnand %p6762_p11, %p6756_p12 }
  0x71   : > { %6766 = shalt.err (!%p6763_p3)
}
  0x72   : > { %s6767_s19 = scalar_lea.vmem %s7679_s17, 3072  ;;  %s7383_s29 = smov [#allocation8]  }
  0x73   : > { %p6768_p7 = scmp.ne.s32.totalorder %s7679_s17, %s6767_s19  ;;  %s6772_s0 = sshll.u32 %s7383_s29, 4  ;;  %s6773_s0 = int_to_ptr.vmem [resolvable:$false] %s6772_s0 }
  0x74   : > { %s6774_s25 = scalar_lea.vmem %s6773_s0, 6144  ;;  %p6775_p10 = scmp.lt.s32.totalorder %s7679_s17, %s6773_s0 }
  0x75   : > { %p6770_p0 = pnand %p6768_p7, %p7686_p5  ;;  %p6776_p6 = scmp.lt.s32.totalorder %s6774_s25, %s6767_s19 }
  0x77   : > { %p6771_p8 = pneg %p6770_p0  ;;  %p6777_p13 = por %p6776_p6, %p6775_p10 }
  0x79   : > { %p6778_p4 = pnand %p6777_p13, %p6771_p8 }
  0x7b   : > { %6781 = shalt.err (!%p6778_p4)
}
  0x7c   : > { %s7384_s16 = smov 192   ;;  %s7385_s24 = smov 12  }
  0x7d   : > { %s9339_s14 = scalar_lea.sflag [#allocation9], %s7648_s21  ;;  %s5842_s29 = sshll.u32 %s7631_s18, 6 }
  0x7e   : > { %6325 = dma.hbm_to_vmem [thread:$0]  (!%p9337_p2), %s7677_s12, 3072, %s7679_s17, %s9339_s14, %s7384_s16, %s7384_s16, %s7385_s24  }
  0x7f   : > { %s6047_s1 = sshll.u32 %s7372_s4, 10  ;;  %s9340_s7 = sld [smem:[#allocation61_spill]] }
  0x80   : > { %s755_s23 = scalar_lea.vmem [#allocation11], %s5842_s29  ;;  %s9267_s8 = scalar_lea.sflag [#allocation12], %s7648_s21 }
  0x81   : > { %s762_s10 = sshll.u32 %s755_s23, 4  ;;  %s7718_s10 = int_to_ptr.vmem [resolvable:$true] %s762_s10 }
  0x85   : > { %s7716_s25 = scalar_lea.hbm %s9340_s7, %s6047_s1  ;;  %s6787_s16 = scalar_lea.hbm %s9340_s7, 2048 }
  0x86   : > { %s6782_s6 = scalar_lea.hbm %s7716_s25, 1024  ;;  %p6788_p1 = scmp.lt.u32.totalorder %s7716_s25, %s9340_s7 }
  0x87   : > { %p6783_p6 = scmp.ne.s32.totalorder %s7716_s25, %s6782_s6  ;;  %p6789_p9 = scmp.lt.u32.totalorder %s6787_s16, %s6782_s6 }
  0x88   : > { %p6791_p3 = scmp.lt.u32.totalorder %s6782_s6, %s7716_s25 }
  0x89   : > { %p6785_p10 = pnand %p6783_p6, %p7686_p5  ;;  %p6790_p11 = por %p6789_p9, %p6788_p1 }
  0x8b   : > { %p6786_p12 = pneg %p6785_p10  ;;  %p6792_p7 = por %p6791_p3, %p6790_p11 }
  0x8d   : > { %p6793_p0 = pnand %p6792_p7, %p6786_p12 }
  0x8f   : > { %6796 = shalt.err (!%p6793_p0)
}
  0x90   : > { %s6797_s23 = scalar_lea.vmem %s7718_s10, 1024  ;;  %s7386_s14 = smov [#allocation11]  }
  0x91   : > { %p6798_p8 = scmp.ne.s32.totalorder %s7718_s10, %s6797_s23  ;;  %s6802_s29 = sshll.u32 %s7386_s14, 4  ;;  %s6803_s29 = int_to_ptr.vmem [resolvable:$false] %s6802_s29 }
  0x92   : > { %s6804_s0 = scalar_lea.vmem %s6803_s29, 2048  ;;  %p6805_p6 = scmp.lt.s32.totalorder %s7718_s10, %s6803_s29 }
  0x93   : > { %p6800_p13 = pnand %p6798_p8, %p7686_p5  ;;  %p6806_p10 = scmp.lt.s32.totalorder %s6804_s0, %s6797_s23 }
  0x95   : > { %p6801_p4 = pneg %p6800_p13  ;;  %p6807_p1 = por %p6806_p10, %p6805_p6 }
  0x97   : > { %p6808_p9 = pnand %p6807_p1, %p6801_p4 }
  0x99   : > { %6811 = shalt.err (!%p6808_p9)
}
  0x9a   : > { %s9268_s6 = smov 64   ;;  %s9271_s19 = smov 4  }
  0x9b   : > { %6331 = dma.hbm_to_vmem [thread:$0]  (!%p9337_p2), %s7716_s25, 1024, %s7718_s10, %s9267_s8, %s9268_s6, %s9268_s6, %s9271_s19  }
  0x9c   : > { %s7748_s12 = sshll.u32 %s7372_s4, 4  ;;  %s9341_s9 = sld [smem:[#allocation63_spill]] }
  0x9d   : > { %s792_s24 = scalar_lea.vmem [#allocation14], %s7631_s18  ;;  %s9270_s14 = scalar_lea.sflag [#allocation15], %s7648_s21 }
  0x9e   : > { %s799_s23 = sshll.u32 %s792_s24, 4  ;;  %s800_s23 = int_to_ptr.vmem [resolvable:$true] %s799_s23 }
  0xa2   : > { %s7754_s1 = scalar_lea.hbm %s9341_s9, %s7748_s12  ;;  %s6817_s0 = scalar_lea.hbm %s9341_s9, 32 }
  0xa3   : > { %s6812_s29 = scalar_lea.hbm %s7754_s1, 16  ;;  %p6818_p7 = scmp.lt.u32.totalorder %s7754_s1, %s9341_s9 }
  0xa4   : > { %p6813_p12 = scmp.ne.s32.totalorder %s7754_s1, %s6812_s29  ;;  %p6819_p0 = scmp.lt.u32.totalorder %s6817_s0, %s6812_s29 }
  0xa5   : > { %p6821_p13 = scmp.lt.u32.totalorder %s6812_s29, %s7754_s1 }
  0xa6   : > { %p6815_p11 = pnand %p6813_p12, %p7686_p5  ;;  %p6820_p8 = por %p6819_p0, %p6818_p7 }
  0xa8   : > { %p6816_p3 = pneg %p6815_p11  ;;  %p6822_p4 = por %p6821_p13, %p6820_p8 }
  0xaa   : > { %p6823_p6 = pnand %p6822_p4, %p6816_p3 }
  0xac   : > { %6826 = shalt.err (!%p6823_p6)
}
  0xad   : > { %s6827_s24 = scalar_lea.vmem %s800_s23, 16  ;;  %s7389_s8 = smov [#allocation14]  }
  0xae   : > { %p6828_p10 = scmp.ne.s32.totalorder %s800_s23, %s6827_s24  ;;  %s6832_s6 = sshll.u32 %s7389_s8, 4  ;;  %s6833_s6 = int_to_ptr.vmem [resolvable:$false] %s6832_s6 }
  0xaf   : > { %s6834_s10 = scalar_lea.vmem %s6833_s6, 32  ;;  %p6835_p12 = scmp.lt.s32.totalorder %s800_s23, %s6833_s6 }
  0xb0   : > { %p6830_p1 = pnand %p6828_p10, %p7686_p5  ;;  %p6836_p11 = scmp.lt.s32.totalorder %s6834_s10, %s6827_s24 }
  0xb2   : > { %p6831_p9 = pneg %p6830_p1  ;;  %p6837_p2 = por %p6836_p11, %p6835_p12 }
  0xb4   : > { %p6838_p0 = pnand %p6837_p2, %p6831_p9 }
  0xb6   : > { %6841 = shalt.err (!%p6838_p0)
}
  0xb7   : > { %p9342_p7 = scmp.ne.s32.totalorder %s9333_s27, 0  ;;  %s5848_s8 = sshll.u32 %s7631_s18, 8 }
  0xb8   : > { %s6048_s29 = sshll.u32 %s7372_s4, 12  ;;  %s9343_s11 = sld [smem:[#allocation65_spill]] }
  0xb9   : > { %6337 = dma.hbm_to_vmem [thread:$0]  (!%p9342_p7), %s7754_s1, 16, %s800_s23, %s9270_s14  }
  0xba   : > { %s827_s17 = scalar_lea.vmem [#allocation17], %s5848_s8  ;;  %s9272_s24 = scalar_lea.sflag [#allocation18], %s7648_s21 }
  0xbb   : > { %s834_s16 = sshll.u32 %s827_s17, 4  ;;  %s7788_s16 = int_to_ptr.vmem [resolvable:$true] %s834_s16 }
  0xbe   : > { %s7784_s0 = scalar_lea.hbm %s9343_s11, %s6048_s29  ;;  %s6847_s6 = scalar_lea.hbm %s9343_s11, 8192 }
  0xbf   : > { %s6842_s10 = scalar_lea.hbm %s7784_s0, 4096  ;;  %p6848_p13 = scmp.lt.u32.totalorder %s7784_s0, %s9343_s11 }
  0xc0   : > { %p6843_p2 = scmp.ne.s32.totalorder %s7784_s0, %s6842_s10  ;;  %p6849_p4 = scmp.lt.u32.totalorder %s6847_s6, %s6842_s10 }
  0xc1   : > { %p6851_p10 = scmp.lt.u32.totalorder %s6842_s10, %s7784_s0 }
  0xc2   : > { %p6845_p3 = pnand %p6843_p2, %p7686_p5  ;;  %p6850_p6 = por %p6849_p4, %p6848_p13 }
  0xc4   : > { %p6846_p8 = pneg %p6845_p3  ;;  %p6852_p1 = por %p6851_p10, %p6850_p6 }
  0xc6   : > { %p6853_p9 = pnand %p6852_p1, %p6846_p8 }
  0xc8   : > { %6856 = shalt.err (!%p6853_p9)
}
  0xc9   : > { %s6857_s17 = scalar_lea.vmem %s7788_s16, 4096  ;;  %s7390_s1 = smov [#allocation17]  }
  0xca   : > { %p6858_p12 = scmp.ne.s32.totalorder %s7788_s16, %s6857_s17  ;;  %s6862_s23 = sshll.u32 %s7390_s1, 4  ;;  %s6863_s23 = int_to_ptr.vmem [resolvable:$false] %s6862_s23 }
  0xcb   : > { %s6864_s14 = scalar_lea.vmem %s6863_s23, 8192  ;;  %p6865_p2 = scmp.lt.s32.totalorder %s7788_s16, %s6863_s23 }
  0xcc   : > { %p6860_p11 = pnand %p6858_p12, %p7686_p5  ;;  %p6866_p3 = scmp.lt.s32.totalorder %s6864_s14, %s6857_s17 }
  0xce   : > { %p6861_p0 = pneg %p6860_p11  ;;  %p6867_p13 = por %p6866_p3, %p6865_p2 }
  0xd0   : > { %p6868_p4 = pnand %p6867_p13, %p6861_p0 }
  0xd2   : > { %6871 = shalt.err (!%p6868_p4)
}
  0xd3   : > { %s7391_s10 = smov 256   ;;  %s9278_s6 = smov 16  }
  0xd4   : > { %6343 = dma.hbm_to_vmem [thread:$0]  (!%p9342_p7), %s7784_s0, 4096, %s7788_s16, %s9272_s24, %s7391_s10, %s7391_s10, %s9278_s6  }
  0xd5   : > { %s9344_s13 = sld [smem:[#allocation67_spill]]  ;;  %s867_s23 = scalar_lea.vmem [#allocation20], %s5848_s8 }
  0xd6   : > { %s874_s14 = sshll.u32 %s867_s23, 4  ;;  %s9274_s19 = scalar_lea.sflag [#allocation21], %s7648_s21  ;;  %s7824_s14 = int_to_ptr.vmem [resolvable:$true] %s874_s14 }
  0xdb   : > { %s7820_s1 = scalar_lea.hbm %s9344_s13, %s6048_s29  ;;  %s6877_s29 = scalar_lea.hbm %s9344_s13, 8192 }
  0xdc   : > { %s6872_s7 = scalar_lea.hbm %s7820_s1, 4096  ;;  %p6878_p1 = scmp.lt.u32.totalorder %s7820_s1, %s9344_s13 }
  0xdd   : > { %p6873_p8 = scmp.ne.s32.totalorder %s7820_s1, %s6872_s7  ;;  %p6879_p9 = scmp.lt.u32.totalorder %s6877_s29, %s6872_s7 }
  0xde   : > { %p6881_p11 = scmp.lt.u32.totalorder %s6872_s7, %s7820_s1 }
  0xdf   : > { %p6875_p6 = pnand %p6873_p8, %p7686_p5  ;;  %p6880_p12 = por %p6879_p9, %p6878_p1 }
  0xe1   : > { %p6876_p10 = pneg %p6875_p6  ;;  %p6882_p0 = por %p6881_p11, %p6880_p12 }
  0xe3   : > { %p6883_p2 = pnand %p6882_p0, %p6876_p10 }
  0xe5   : > { %6886 = shalt.err (!%p6883_p2)
}
  0xe6   : > { %s6887_s8 = scalar_lea.vmem %s7824_s14, 4096  ;;  %s7393_s17 = smov [#allocation20]  }
  0xe7   : > { %p6888_p3 = scmp.ne.s32.totalorder %s7824_s14, %s6887_s8  ;;  %s6892_s23 = sshll.u32 %s7393_s17, 4  ;;  %s6893_s23 = int_to_ptr.vmem [resolvable:$false] %s6892_s23 }
  0xe8   : > { %s6894_s0 = scalar_lea.vmem %s6893_s23, 8192  ;;  %p6895_p8 = scmp.lt.s32.totalorder %s7824_s14, %s6893_s23 }
  0xe9   : > { %p6890_p13 = pnand %p6888_p3, %p7686_p5  ;;  %p6896_p6 = scmp.lt.s32.totalorder %s6894_s0, %s6887_s8 }
  0xeb   : > { %p6891_p4 = pneg %p6890_p13  ;;  %p6897_p1 = por %p6896_p6, %p6895_p8 }
  0xed   : > { %p6898_p9 = pnand %p6897_p1, %p6891_p4 }
  0xef   : > { %6901 = shalt.err (!%p6898_p9)
}
  0xf0   : > { %s9345_s7 = smov 4   ;;  %s9346_s16 = smov 64  }
  0xf1   : > { %6349 = dma.hbm_to_vmem [thread:$0]  (!%p9342_p7), %s7820_s1, 4096, %s7824_s14, %s9274_s19, %s9346_s16, %s9346_s16, %s9345_s7  }
  0xf2   : > { %s9347_s15 = sld [smem:[#allocation69_spill]]  ;;  %s904_s8 = scalar_lea.vmem [#allocation23], %s7631_s18 }
  0xf3   : > { %s911_s17 = sshll.u32 %s904_s8, 4  ;;  %s9277_s23 = scalar_lea.sflag [#allocation24], %s7648_s21  ;;  %s912_s17 = int_to_ptr.vmem [resolvable:$true] %s911_s17 }
  0xf8   : > { %s7857_s25 = scalar_lea.hbm %s9347_s15, %s7748_s12  ;;  %s6907_s14 = scalar_lea.hbm %s9347_s15, 32 }
  0xf9   : > { %s6902_s0 = scalar_lea.hbm %s7857_s25, 16  ;;  %p6908_p0 = scmp.lt.u32.totalorder %s7857_s25, %s9347_s15 }
  0xfa   : > { %p6903_p10 = scmp.ne.s32.totalorder %s7857_s25, %s6902_s0  ;;  %p6909_p2 = scmp.lt.u32.totalorder %s6907_s14, %s6902_s0 }
  0xfb   : > { %p6911_p13 = scmp.lt.u32.totalorder %s6902_s0, %s7857_s25 }
  0xfc   : > { %p6905_p12 = pnand %p6903_p10, %p7686_p5  ;;  %p6910_p3 = por %p6909_p2, %p6908_p0 }
  0xfe   : > { %p6906_p11 = pneg %p6905_p12  ;;  %p6912_p4 = por %p6911_p13, %p6910_p3 }
 0x100   : > { %p6913_p8 = pnand %p6912_p4, %p6906_p11 }
 0x102   : > { %6916 = shalt.err (!%p6913_p8)
}
 0x103   : > { %s6917_s29 = scalar_lea.vmem %s912_s17, 16  ;;  %s7394_s10 = smov [#allocation23]  }
 0x104   : > { %p6918_p6 = scmp.ne.s32.totalorder %s912_s17, %s6917_s29  ;;  %s6922_s8 = sshll.u32 %s7394_s10, 4  ;;  %s6923_s8 = int_to_ptr.vmem [resolvable:$false] %s6922_s8 }
 0x105   : > { %s6924_s24 = scalar_lea.vmem %s6923_s8, 32  ;;  %p6925_p10 = scmp.lt.s32.totalorder %s912_s17, %s6923_s8 }
 0x106   : > { %p6920_p1 = pnand %p6918_p6, %p7686_p5  ;;  %p6926_p12 = scmp.lt.s32.totalorder %s6924_s24, %s6917_s29 }
 0x108   : > { %p6921_p9 = pneg %p6920_p1  ;;  %p6927_p7 = por %p6926_p12, %p6925_p10 }
 0x10a   : > { %p6928_p0 = pnand %p6927_p7, %p6921_p9 }
 0x10c   : > { %6931 = shalt.err (!%p6928_p0)
}
 0x10d   : > { %p9348_p2 = scmp.ne.s32.totalorder %s9333_s27, 0  ;;  %s7395_s0 = smov [#allocation7]  }
 0x10e   : > { %s653_s1 = sshll.u32 %s7395_s0, 4  ;;  %s9349_s16 = sld [smem:[#allocation58_spill]]  ;;  %s654_s1 = int_to_ptr.vmem [resolvable:$true] %s653_s1 }
 0x10f   : > { %6355 = dma.hbm_to_vmem [thread:$0]  (!%p9348_p2), %s7857_s25, 16, %s912_s17, %s9277_s23  }
 0x110   : > { %p9350_p7 = scmp.ne.s32.totalorder %s9332_s2, 0 }
 0x112   : > { %p9351_p3 = pneg %p9350_p7 }
 0x114   : > { %s6932_s10 = scalar_lea.hbm %s9349_s16, 16 }
 0x115   : > { %p6933_p11 = scmp.ne.s32.totalorder %s9349_s16, %s6932_s10  ;;  %p6939_p8 = scmp.lt.u32.totalorder %s6932_s10, %s9349_s16 }
 0x117   : > { %p6935_p13 = pnand %p6933_p11, %p9351_p3 }
 0x119   : > { %p6936_p4 = pneg %p6935_p13 }
 0x11b   : > { %p6941_p6 = pnand %p6939_p8, %p6936_p4 }
 0x11d   : > { %6944 = shalt.err (!%p6941_p6)
}
 0x11e   : > { %s6945_s25 = scalar_lea.vmem %s654_s1, 16  ;;  %p9352_p9 = pmov %p9351_p3 }
 0x11f   : > { %p6946_p1 = scmp.ne.s32.totalorder %s654_s1, %s6945_s25  ;;  %s6952_s17 = scalar_lea.vmem %s654_s1, 32 }
 0x120   : > { %p6953_p0 = scmp.lt.s32.totalorder %s654_s1, %s654_s1  ;;  %p6954_p2 = scmp.lt.s32.totalorder %s6952_s17, %s6945_s25 }
 0x121   : > { %p6948_p10 = pnand %p6946_p1, %p9352_p9 }
 0x122   : > { %p6955_p5 = por %p6954_p2, %p6953_p0 }
 0x123   : > { %p6949_p12 = pneg %p6948_p10 }
 0x125   : > { %p6956_p3 = pnand %p6955_p5, %p6949_p12 }
 0x127   : > { %6959 = shalt.err (!%p6956_p3)
}
 0x128   : > { %6318 = dma.hbm_to_vmem [thread:$0]  (!%p9350_p7), %s9349_s16, 16, %s654_s1, [#allocation6]  }
 0x129   : > { %s69_s14 = sadd.s32 1, %s7372_s4  ;;  %s72_s7 = sadd.s32 1, %s7376_s30 }
 0x12a   : > { %p70_p5 = scmp.ge.s32.totalorder %s69_s14, 2  ;;  %s105_s2 = sadd.s32 1, %s7360_s28 }
 0x12b   : > { %p112_p2 = scmp.ne.s32.totalorder %s7360_s28, %s7356_s3  ;;  %s680_s10 = sand.u32 1, %s7360_s28  }
 0x12c   : > { %s9432_s14 = smov (%p70_p5, %s69_s14), 0  ;;  %s9434_s7 = smov (!%p70_p5, %s72_s7), %s7376_s30 }
 0x12d   : > { %9353 = sst [smem:[#allocation51_spill]] %s9432_s14  ;;  %p9354_p11 = scmp.eq.s32.totalorder %s7380_s5, 0 }
 0x12e   : > { %s196_s1 = ssub.s32 %s7372_s4, %s9432_s14  ;;  %p74_p7 = scmp.ge.s32.totalorder %s9434_s7, 2 }
 0x12f   : > { %p7911_p13 = por %p9354_p11, %p112_p2  ;;  %p197_p4 = scmp.eq.s32.totalorder %s196_s1, 0 }
 0x130   : > { %p9356_p8 = scmp.eq.s32.totalorder %s7585_s22, 3  ;;  %s9436_s7 = smov (%p74_p7, %s9434_s7), 0 }
 0x131   : > { %9358 = sst [smem:[#allocation52_spill]] %s9436_s7  ;;  %s9359_s24 = sadd.s32 1, %s7348_s26 }
 0x132   : > { %p7919_p6 = por %p9356_p8, %p112_p2  ;;  %s102_s17 = ssub.s32 %s7376_s30, %s9436_s7 }
 0x133   : > { %s7928_s25 = scalar_select %p197_p4, %s7348_s26, %s9359_s24  }
 0x134   : > { %s9357_s29 = scalar_select %p7919_p6, 1, 0 }
 0x135   : > { %s5837_s19 = sshll.u32 %s680_s10, 1  ;;  %p103_p1 = scmp.eq.s32.totalorder %s102_s17, 0 }
 0x136   : > { %s6046_s0 = sshll.u32 %s7376_s30, 5  ;;  %s684_s23 = scalar_lea.vmem [#allocation2], %s5837_s19 }
 0x137   : > { %s691_s6 = sshll.u32 %s684_s23, 4  ;;  %s9361_s13 = sld [smem:[#allocation55_spill]]  ;;  %s7941_s6 = int_to_ptr.vmem [resolvable:$true] %s691_s6 }
 0x138   : > { %s7934_s9 = scalar_select %p103_p1, %s7360_s28, %s105_s2  }
 0x139   : > { %p9362_p9 = scmp.lt.s32.totalorder %s7380_s5, 4  ;;  %s6268_s23 = smul.u32 3, %s7631_s18 }
 0x13a   : > { %9360 = sst [smem:[#allocation53_spill]] %s7934_s9  ;;  %s6269_s2 = smul.u32 48, %s7372_s4 }
 0x13b   : > { %p7947_p10 = pnand %p9362_p9, %p7911_p13  ;;  %s7953_s17 = scalar_lea.sflag [#allocation3], %s680_s10 }
 0x13d   : > { %s7939_s15 = scalar_lea.hbm %s9361_s13, %s6046_s0  ;;  %p6962_p0 = pneg %p7947_p10 }
 0x13e   : > { %s6960_s11 = scalar_lea.hbm %s7939_s15, 32  ;;  %s6965_s0 = scalar_lea.hbm %s9361_s13, 64 }
 0x13f   : > { %p6961_p12 = scmp.ne.s32.totalorder %s7939_s15, %s6960_s11  ;;  %p6966_p2 = scmp.lt.u32.totalorder %s7939_s15, %s9361_s13 }
 0x140   : > { %p6967_p11 = scmp.lt.u32.totalorder %s6965_s0, %s6960_s11  ;;  %p6969_p7 = scmp.lt.u32.totalorder %s6960_s11, %s7939_s15 }
 0x141   : > { %p6963_p3 = pnand %p6962_p0, %p6961_p12 }
 0x142   : > { %p6968_p13 = por %p6967_p11, %p6966_p2 }
 0x143   : > { %p6964_p5 = pneg %p6963_p3 }
 0x144   : > { %p6970_p4 = por %p6969_p7, %p6968_p13 }
 0x146   : > { %p6971_p8 = pnand %p6970_p4, %p6964_p5 }
 0x148   : > { %6974 = shalt.err (!%p6971_p8)
}
 0x149   : > { %s6975_s10 = scalar_lea.vmem %s7941_s6, 32  ;;  %s7396_s8 = smov [#allocation2]  }
 0x14a   : > { %p6976_p1 = scmp.ne.s32.totalorder %s7941_s6, %s6975_s10  ;;  %s6980_s19 = sshll.u32 %s7396_s8, 4  ;;  %s6981_s19 = int_to_ptr.vmem [resolvable:$false] %s6980_s19 }
 0x14b   : > { %s6982_s16 = scalar_lea.vmem %s6981_s19, 64  ;;  %p6983_p3 = scmp.lt.s32.totalorder %s7941_s6, %s6981_s19 }
 0x14c   : > { %p6978_p9 = pnand %p6976_p1, %p6962_p0  ;;  %p6984_p2 = scmp.lt.s32.totalorder %s6982_s16, %s6975_s10 }
 0x14e   : > { %p6979_p12 = pneg %p6978_p9  ;;  %p6985_p11 = por %p6984_p2, %p6983_p3 }
 0x150   : > { %p6986_p13 = pnand %p6985_p11, %p6979_p12 }
 0x152   : > { %6989 = shalt.err (!%p6986_p13)
}
 0x153   : > { %s7397_s11 = smov 1   ;;  %s9364_s0 = smov 16  }
 0x154   : > { %6322 = dma.hbm_to_vmem [thread:$0]  (!%p7947_p10), %s7939_s15, 32, %s7941_s6, %s7953_s17, %s9364_s0, %s9364_s0, %s7397_s11  }
 0x155   : > { %s9365_s8 = sld [smem:[#allocation60_spill]]  ;;  %s736_s24 = scalar_lea.vmem [#allocation10], %s6268_s23 }
 0x156   : > { %s744_s16 = sshll.u32 %s736_s24, 4  ;;  %s9366_s14 = sld [smem:[#allocation62_spill]]  ;;  %s7998_s16 = int_to_ptr.vmem [resolvable:$true] %s744_s16 }
 0x157   : > { %s775_s15 = scalar_lea.vmem [#allocation13], %s7631_s18  ;;  %p9367_p0 = scmp.ne.s32.totalorder %s9338_s20, 0 }
 0x158   : > { %s782_s6 = sshll.u32 %s775_s15, 4  ;;  %s783_s6 = int_to_ptr.vmem [resolvable:$true] %s782_s6 }
 0x15b   : > { %s7988_s19 = scalar_lea.hbm %s9365_s8, %s6269_s2  ;;  %s6995_s0 = scalar_lea.hbm %s9365_s8, 96 }
 0x15c   : > { %s7996_s30 = scalar_lea.hbm %s9366_s14, %s7748_s12  ;;  %s6990_s17 = scalar_lea.hbm %s7988_s19, 48 }
 0x15d   : > { %p6991_p10 = scmp.ne.s32.totalorder %s7988_s19, %s6990_s17  ;;  %p6996_p4 = scmp.lt.u32.totalorder %s7988_s19, %s9365_s8 }
 0x15e   : > { %p6997_p8 = scmp.lt.u32.totalorder %s6995_s0, %s6990_s17  ;;  %p6999_p9 = scmp.lt.u32.totalorder %s6990_s17, %s7988_s19 }
 0x15f   : > { %p6993_p5 = pnand %p6991_p10, %p9367_p0 }
 0x160   : > { %p6998_p1 = por %p6997_p8, %p6996_p4 }
 0x161   : > { %p6994_p7 = pneg %p6993_p5 }
 0x162   : > { %p7000_p12 = por %p6999_p9, %p6998_p1 }
 0x164   : > { %p7001_p3 = pnand %p7000_p12, %p6994_p7 }
 0x166   : > { %7004 = shalt.err (!%p7001_p3)
}
 0x167   : > { %s7005_s13 = scalar_lea.vmem %s7998_s16, 48  ;;  %s7398_s7 = smov [#allocation10]  }
 0x168   : > { %p7006_p2 = scmp.ne.s32.totalorder %s7998_s16, %s7005_s13  ;;  %s7010_s10 = sshll.u32 %s7398_s7, 4  ;;  %s7011_s10 = int_to_ptr.vmem [resolvable:$false] %s7010_s10 }
 0x169   : > { %s7012_s24 = scalar_lea.vmem %s7011_s10, 96  ;;  %p7013_p10 = scmp.lt.s32.totalorder %s7998_s16, %s7011_s10 }
 0x16a   : > { %p7008_p11 = pnand %p7006_p2, %p9367_p0  ;;  %p7014_p5 = scmp.lt.s32.totalorder %s7012_s24, %s7005_s13 }
 0x16c   : > { %p7009_p13 = pneg %p7008_p11  ;;  %p7015_p4 = por %p7014_p5, %p7013_p10 }
 0x16e   : > { %p7016_p8 = pnand %p7015_p4, %p7009_p13 }
 0x170   : > { %7019 = shalt.err (!%p7016_p8)
}
 0x171   : > { %p9368_p7 = scmp.ne.s32.totalorder %s9333_s27, 0  ;;  %s9369_s15 = scalar_lea.sflag [#allocation9], %s7648_s21 }
 0x172   : > { %s7020_s17 = scalar_lea.hbm %s7996_s30, 16  ;;  %s7025_s0 = scalar_lea.hbm %s9366_s14, 32 }
 0x173   : > { %6328 = dma.hbm_to_vmem [thread:$0]  (!%p9368_p7), %s7988_s19, 48, %s7998_s16, %s9369_s15  }
 0x174   : > { %p7021_p1 = scmp.ne.s32.totalorder %s7996_s30, %s7020_s17  ;;  %p7026_p3 = scmp.lt.u32.totalorder %s7996_s30, %s9366_s14 }
 0x175   : > { %p7027_p2 = scmp.lt.u32.totalorder %s7025_s0, %s7020_s17  ;;  %p7029_p13 = scmp.lt.u32.totalorder %s7020_s17, %s7996_s30 }
 0x176   : > { %p7023_p9 = pnand %p7021_p1, %p9367_p0 }
 0x177   : > { %p7028_p11 = por %p7027_p2, %p7026_p3 }
 0x178   : > { %p7024_p12 = pneg %p7023_p9 }
 0x179   : > { %p7030_p10 = por %p7029_p13, %p7028_p11 }
 0x17b   : > { %p7031_p5 = pnand %p7030_p10, %p7024_p12 }
 0x17d   : > { %7034 = shalt.err (!%p7031_p5)
}
 0x17e   : > { %s7035_s19 = scalar_lea.vmem %s783_s6, 16  ;;  %s7399_s16 = smov [#allocation13]  }
 0x17f   : > { %p7036_p4 = scmp.ne.s32.totalorder %s783_s6, %s7035_s19  ;;  %s7040_s13 = sshll.u32 %s7399_s16, 4  ;;  %s7041_s13 = int_to_ptr.vmem [resolvable:$false] %s7040_s13 }
 0x180   : > { %s7042_s7 = scalar_lea.vmem %s7041_s13, 32  ;;  %p7043_p9 = scmp.lt.s32.totalorder %s783_s6, %s7041_s13 }
 0x181   : > { %p7038_p8 = pnand %p7036_p4, %p9367_p0  ;;  %p7044_p6 = scmp.lt.s32.totalorder %s7042_s7, %s7035_s19 }
 0x183   : > { %p7039_p1 = pneg %p7038_p8  ;;  %p7045_p7 = por %p7044_p6, %p7043_p9 }
 0x185   : > { %p7046_p2 = pnand %p7045_p7, %p7039_p1 }
 0x187   : > { %7049 = shalt.err (!%p7046_p2)
}
 0x188   : > { %p9370_p3 = scmp.ne.s32.totalorder %s9333_s27, 0  ;;  %s9371_s10 = scalar_lea.sflag [#allocation12], %s7648_s21 }
 0x189   : > { %s9372_s17 = sld [smem:[#allocation64_spill]]  ;;  %s809_s11 = scalar_lea.vmem [#allocation16], %s7631_s18 }
 0x18a   : > { %6334 = dma.hbm_to_vmem [thread:$0]  (!%p9370_p3), %s7996_s30, 16, %s783_s6, %s9371_s10  }
 0x18b   : > { %s816_s0 = sshll.u32 %s809_s11, 4  ;;  %s5851_s23 = sshll.u32 %s7631_s18, 2  ;;  %s817_s0 = int_to_ptr.vmem [resolvable:$true] %s816_s0 }
 0x18f   : > { %s8047_s2 = scalar_lea.hbm %s9372_s17, %s7748_s12  ;;  %s7055_s6 = scalar_lea.hbm %s9372_s17, 32 }
 0x190   : > { %s7050_s1 = scalar_lea.hbm %s8047_s2, 16  ;;  %p7056_p11 = scmp.lt.u32.totalorder %s8047_s2, %s9372_s17 }
 0x191   : > { %p7051_p6 = scmp.ne.s32.totalorder %s8047_s2, %s7050_s1  ;;  %p7057_p13 = scmp.lt.u32.totalorder %s7055_s6, %s7050_s1 }
 0x192   : > { %p7059_p5 = scmp.lt.u32.totalorder %s7050_s1, %s8047_s2 }
 0x193   : > { %p7053_p7 = pnand %p7051_p6, %p9367_p0  ;;  %p7058_p10 = por %p7057_p13, %p7056_p11 }
 0x195   : > { %p7054_p12 = pneg %p7053_p7  ;;  %p7060_p4 = por %p7059_p5, %p7058_p10 }
 0x197   : > { %p7061_p8 = pnand %p7060_p4, %p7054_p12 }
 0x199   : > { %7064 = shalt.err (!%p7061_p8)
}
 0x19a   : > { %s7065_s7 = scalar_lea.vmem %s817_s0, 16  ;;  %s7400_s10 = smov [#allocation16]  }
 0x19b   : > { %p7066_p1 = scmp.ne.s32.totalorder %s817_s0, %s7065_s7  ;;  %s7070_s24 = sshll.u32 %s7400_s10, 4  ;;  %s7071_s24 = int_to_ptr.vmem [resolvable:$false] %s7070_s24 }
 0x19c   : > { %s7072_s15 = scalar_lea.vmem %s7071_s24, 32  ;;  %p7073_p6 = scmp.lt.s32.totalorder %s817_s0, %s7071_s24 }
 0x19d   : > { %p7068_p9 = pnand %p7066_p1, %p9367_p0  ;;  %p7074_p7 = scmp.lt.s32.totalorder %s7072_s15, %s7065_s7 }
 0x19f   : > { %p7069_p2 = pneg %p7068_p9  ;;  %p7075_p3 = por %p7074_p7, %p7073_p6 }
 0x1a1   : > { %p7076_p11 = pnand %p7075_p3, %p7069_p2 }
 0x1a3   : > { %7079 = shalt.err (!%p7076_p11)
}
 0x1a4   : > { %p9373_p13 = scmp.ne.s32.totalorder %s9333_s27, 0  ;;  %s9374_s11 = scalar_lea.sflag [#allocation15], %s7648_s21 }
 0x1a5   : > { %s6049_s1 = sshll.u32 %s7372_s4, 6  ;;  %s9375_s6 = sld [smem:[#allocation66_spill]] }
 0x1a6   : > { %6340 = dma.hbm_to_vmem [thread:$0]  (!%p9373_p13), %s8047_s2, 16, %s817_s0, %s9374_s11  }
 0x1a7   : > { %s848_s13 = scalar_lea.vmem [#allocation19], %s5851_s23 }
 0x1a8   : > { %s856_s7 = sshll.u32 %s848_s13, 4  ;;  %s857_s7 = int_to_ptr.vmem [resolvable:$true] %s856_s7 }
 0x1ab   : > { %s8074_s16 = scalar_lea.hbm %s9375_s6, %s6049_s1  ;;  %s7085_s24 = scalar_lea.hbm %s9375_s6, 128 }
 0x1ac   : > { %s7080_s10 = scalar_lea.hbm %s8074_s16, 64  ;;  %p7086_p5 = scmp.lt.u32.totalorder %s8074_s16, %s9375_s6 }
 0x1ad   : > { %p7081_p3 = scmp.ne.s32.totalorder %s8074_s16, %s7080_s10  ;;  %p7087_p4 = scmp.lt.u32.totalorder %s7085_s24, %s7080_s10 }
 0x1ae   : > { %p7089_p1 = scmp.lt.u32.totalorder %s7080_s10, %s8074_s16 }
 0x1af   : > { %p7083_p12 = pnand %p7081_p3, %p9367_p0  ;;  %p7088_p8 = por %p7087_p4, %p7086_p5 }
 0x1b1   : > { %p7084_p10 = pneg %p7083_p12  ;;  %p7090_p9 = por %p7089_p1, %p7088_p8 }
 0x1b3   : > { %p7091_p2 = pnand %p7090_p9, %p7084_p10 }
 0x1b5   : > { %7094 = shalt.err (!%p7091_p2)
}
 0x1b6   : > { %s7095_s23 = scalar_lea.vmem %s857_s7, 64  ;;  %s7401_s1 = smov [#allocation19]  }
 0x1b7   : > { %p7096_p6 = scmp.ne.s32.totalorder %s857_s7, %s7095_s23  ;;  %s7100_s19 = sshll.u32 %s7401_s1, 4  ;;  %s7101_s19 = int_to_ptr.vmem [resolvable:$false] %s7100_s19 }
 0x1b8   : > { %s7102_s30 = scalar_lea.vmem %s7101_s19, 128  ;;  %p7103_p3 = scmp.lt.s32.totalorder %s857_s7, %s7101_s19 }
 0x1b9   : > { %p7098_p7 = pnand %p7096_p6, %p9367_p0  ;;  %p7104_p12 = scmp.lt.s32.totalorder %s7102_s30, %s7095_s23 }
 0x1bb   : > { %p7099_p11 = pneg %p7098_p7  ;;  %p7105_p13 = por %p7104_p12, %p7103_p3 }
 0x1bd   : > { %p7106_p4 = pnand %p7105_p13, %p7099_p11 }
 0x1bf   : > { %7109 = shalt.err (!%p7106_p4)
}
 0x1c0   : > { %p9376_p5 = scmp.ne.s32.totalorder %s9333_s27, 0  ;;  %s9377_s13 = scalar_lea.sflag [#allocation18], %s7648_s21 }
 0x1c1   : > { %s9378_s0 = sld [smem:[#allocation68_spill]]  ;;  %s887_s11 = scalar_lea.vmem [#allocation22], %s7631_s18 }
 0x1c2   : > { %6346 = dma.hbm_to_vmem [thread:$0]  (!%p9376_p5), %s8074_s16, 64, %s857_s7, %s9377_s13  }
 0x1c3   : > { %s894_s23 = sshll.u32 %s887_s11, 4  ;;  %s895_s23 = int_to_ptr.vmem [resolvable:$true] %s894_s23 }
 0x1c7   : > { %s9379_s24 = smov %s9378_s0  ;;  %s8101_s15 = scalar_lea.hbm %s9378_s0, %s7748_s12 }
 0x1c8   : > { %s7110_s1 = scalar_lea.hbm %s8101_s15, 16  ;;  %s7115_s16 = scalar_lea.hbm %s9379_s24, 32 }
 0x1c9   : > { %p7111_p13 = scmp.ne.s32.totalorder %s8101_s15, %s7110_s1  ;;  %p7116_p1 = scmp.lt.u32.totalorder %s8101_s15, %s9379_s24 }
 0x1ca   : > { %p7117_p9 = scmp.lt.u32.totalorder %s7115_s16, %s7110_s1  ;;  %p7119_p6 = scmp.lt.u32.totalorder %s7110_s1, %s8101_s15 }
 0x1cb   : > { %p7113_p10 = pnand %p7111_p13, %p9367_p0 }
 0x1cc   : > { %p7118_p2 = por %p7117_p9, %p7116_p1 }
 0x1cd   : > { %p7114_p8 = pneg %p7113_p10 }
 0x1ce   : > { %p7120_p7 = por %p7119_p6, %p7118_p2 }
 0x1d0   : > { %p7121_p11 = pnand %p7120_p7, %p7114_p8 }
 0x1d2   : > { %7124 = shalt.err (!%p7121_p11)
}
 0x1d3   : > { %s7125_s10 = scalar_lea.vmem %s895_s23, 16  ;;  %s7402_s2 = smov [#allocation22]  }
 0x1d4   : > { %p7126_p3 = scmp.ne.s32.totalorder %s895_s23, %s7125_s10  ;;  %s7130_s0 = sshll.u32 %s7402_s2, 4  ;;  %s7131_s0 = int_to_ptr.vmem [resolvable:$false] %s7130_s0 }
 0x1d5   : > { %s7132_s11 = scalar_lea.vmem %s7131_s0, 32  ;;  %p7133_p13 = scmp.lt.s32.totalorder %s895_s23, %s7131_s0 }
 0x1d6   : > { %p7128_p12 = pnand %p7126_p3, %p9367_p0  ;;  %p7134_p10 = scmp.lt.s32.totalorder %s7132_s11, %s7125_s10 }
 0x1d8   : > { %p7129_p4 = pneg %p7128_p12  ;;  %p7135_p5 = por %p7134_p10, %p7133_p13 }
 0x1da   : > { %p7136_p1 = pnand %p7135_p5, %p7129_p4 }
 0x1dc   : > { %7139 = shalt.err (!%p7136_p1)
}
 0x1dd   : > { %p9380_p9 = scmp.ne.s32.totalorder %s9333_s27, 0  ;;  %s9381_s1 = scalar_lea.sflag [#allocation21], %s7648_s21 }
 0x1de   : > { %s9382_s16 = sld [smem:[#allocation70_spill]]  ;;  %s921_s13 = scalar_lea.vmem [#allocation25], %s7631_s18 }
 0x1df   : > { %6352 = dma.hbm_to_vmem [thread:$0]  (!%p9380_p9), %s8101_s15, 16, %s895_s23, %s9381_s1  }
 0x1e0   : > { %s928_s10 = sshll.u32 %s921_s13, 4  ;;  %s929_s10 = int_to_ptr.vmem [resolvable:$true] %s928_s10 }
 0x1e4   : > { %s8127_s7 = scalar_lea.hbm %s9382_s16, %s7748_s12  ;;  %s7145_s15 = scalar_lea.hbm %s9382_s16, 32 }
 0x1e5   : > { %s7140_s2 = scalar_lea.hbm %s8127_s7, 16  ;;  %p7146_p6 = scmp.lt.u32.totalorder %s8127_s7, %s9382_s16 }
 0x1e6   : > { %p7141_p5 = scmp.ne.s32.totalorder %s8127_s7, %s7140_s2  ;;  %p7147_p7 = scmp.lt.u32.totalorder %s7145_s15, %s7140_s2 }
 0x1e7   : > { %p7149_p3 = scmp.lt.u32.totalorder %s7140_s2, %s8127_s7 }
 0x1e8   : > { %p7143_p8 = pnand %p7141_p5, %p9367_p0  ;;  %p7148_p11 = por %p7147_p7, %p7146_p6 }
 0x1ea   : > { %p7144_p2 = pneg %p7143_p8  ;;  %p7150_p12 = por %p7149_p3, %p7148_p11 }
 0x1ec   : > { %p7151_p4 = pnand %p7150_p12, %p7144_p2 }
 0x1ee   : > { %7154 = shalt.err (!%p7151_p4)
}
 0x1ef   : > { %s7155_s18 = scalar_lea.vmem %s929_s10, 16  ;;  %s7403_s12 = smov [#allocation25]  }
 0x1f0   : > { %p7156_p13 = scmp.ne.s32.totalorder %s929_s10, %s7155_s18  ;;  %s7160_s19 = sshll.u32 %s7403_s12, 4  ;;  %s7161_s19 = int_to_ptr.vmem [resolvable:$false] %s7160_s19 }
 0x1f1   : > { %s7162_s30 = scalar_lea.vmem %s7161_s19, 32  ;;  %p7163_p5 = scmp.lt.s32.totalorder %s929_s10, %s7161_s19 }
 0x1f2   : > { %p7158_p10 = pnand %p7156_p13, %p9367_p0  ;;  %p7164_p8 = scmp.lt.s32.totalorder %s7162_s30, %s7155_s18 }
 0x1f4   : > { %p7159_p1 = pneg %p7158_p10  ;;  %p7165_p9 = por %p7164_p8, %p7163_p5 }
 0x1f6   : > { %p7166_p6 = pnand %p7165_p9, %p7159_p1 }
 0x1f8   : > { %7169 = shalt.err (!%p7166_p6)
}
 0x1f9   : > { %p9383_p7 = scmp.ne.s32.totalorder %s9333_s27, 0  ;;  %s9384_s13 = scalar_lea.sflag [#allocation24], %s7648_s21 }
 0x1fa   : > { %s9385_s2 = sld [smem:[#allocation50_spill]] }
 0x1fb   : > { %6358 = dma.hbm_to_vmem [thread:$0]  (!%p9383_p7), %s8127_s7, 16, %s929_s10, %s9384_s13  }
 0x200   : > { %p9386_p2 = scmp.ne.s32.totalorder %s9385_s2, 0 }
 0x201   : > { %s9387_s20 = sld [smem:[#allocation47_spill]] (!%p9386_p2)  ;;  %s8152_s0 = sand.u32 (!%p9386_p2), 1, %s7356_s3  }
 0x202   : > { %937 = sbr.rel (%p9386_p2) target bundleno = 4400 (0x1130), region = 96  ;;  %s8155_s11 = sshll.u32 (!%p9386_p2), %s8152_s0, 1 }
 0x203   : > { %s940_s15 = scalar_lea.sflag (!%p9386_p2), [#allocation3], %s8152_s0 }
 0x207   : > { %p9388_p0 = scmp.ne.s32.totalorder (!%p9386_p2), %s9387_s20, 0 }
 0x209   : > { %7299 = dma.done.wait (%p9388_p0), %s940_s15, 32  }
 0x20a   : > { %7301 = vsyncadd (%p9388_p0), %s940_s15, 4294967264  ;;  %p9389_p9 = scmp.eq.s32.totalorder %s7585_s22, 0 }
 0x20c   : > { %7303 = dma.done.wait (%p9389_p9), [#allocation6], 32   ;;  %p9390_p11 = pmov %p9389_p9 }
 0x20d   : > { %s9391_s27 = sld [smem:[#allocation40_spill]]  ;;  %s9392_s21 = sld [smem:[#allocation48_spill]] }
 0x20e   : > { %7305 = vsyncadd (%p9390_p11), [#allocation6], 4294967264  ;;  %s8168_s7 = sand.u32 1, %s7585_s22  }
 0x20f   : > { %s957_s18 = scalar_lea.sflag [#allocation9], %s8168_s7 }
 0x213   : > { %s8171_s10 = sand.u32 1, %s9391_s27   ;;  %p9393_p3 = scmp.ne.s32.totalorder %s9392_s21, 0 }
 0x214   : > { %s6270_s1 = smul.u32 192, %s8171_s10 }
 0x216   : > { %s8175_s12 = scalar_lea.vmem [#allocation8], %s6270_s1 }
 0x217   : > { %7307 = dma.done.wait (%p9393_p3), %s957_s18, 3120  }
 0x218   : > { %7309 = vsyncadd (%p9393_p3), %s957_s18, 4294964176  ;;  %s6271_s19 = smul.u32 3, %s8171_s10  ;;  %s5864_s22 = sshll.u32 %s8171_s10, 6 }
 0x219   : > { %s975_s13 = scalar_lea.sflag [#allocation12], %s8168_s7  ;;  %s8186_s2 = scalar_lea.vmem [#allocation11], %s5864_s22 }
 0x21a   : > { %s8183_s30 = scalar_lea.vmem [#allocation10], %s6271_s19 }
 0x21b   : > { %7311 = dma.done.wait (%p9393_p3), %s975_s13, 1040  }
 0x21c   : > { %7313 = vsyncadd (%p9393_p3), %s975_s13, 4294966256  ;;  %s992_s15 = scalar_lea.sflag [#allocation15], %s8168_s7 }
 0x21d   : > { %7315 = dma.done.wait (%p9393_p3), %s992_s15, 32  }
 0x21e   : > { %7317 = vsyncadd (%p9393_p3), %s992_s15, 4294967264  ;;  %s5865_s1 = sshll.u32 %s8171_s10, 8  ;;  %s1008_s19 = scalar_lea.sflag [#allocation18], %s8168_s7 }
 0x21f   : > { %s8202_s22 = scalar_lea.vmem [#allocation17], %s5865_s1 }
 0x220   : > { %7319 = dma.done.wait (%p9393_p3), %s1008_s19, 4160  }
 0x221   : > { %7321 = vsyncadd (%p9393_p3), %s1008_s19, 4294963136  ;;  %s5866_s13 = sshll.u32 %s8171_s10, 2  ;;  %s1026_s15 = scalar_lea.sflag [#allocation21], %s8168_s7 }
 0x222   : > { %s8209_s27 = scalar_lea.vmem [#allocation19], %s5866_s13  ;;  %s8212_s20 = scalar_lea.vmem [#allocation20], %s5865_s1 }
 0x223   : > { %7323 = dma.done.wait (%p9393_p3), %s1026_s15, 4112  }
 0x224   : > { %7325 = vsyncadd (%p9393_p3), %s1026_s15, 4294963184  ;;  %s1043_s19 = scalar_lea.sflag [#allocation24], %s8168_s7 }
 0x225   : > { %7327 = dma.done.wait (%p9393_p3), %s1043_s19, 32  }
 0x226   : > { %7329 = vsyncadd (%p9393_p3), %s1043_s19, 4294967264  ;;  %s9394_s1 = sld [smem:[#allocation44_spill]]  ;;  %s5868_s13 = sshll.u32 %s8152_s0, 5 }
 0x227   : > { %s9395_s18 = sld [smem:[#allocation54_spill]]  ;;  %s9396_s24 = sld [smem:[#allocation56_spill]] }
 0x228   : > { %s1053_s21 = scalar_lea.vmem [#allocation25], %s8171_s10  ;;  %s8236_s19 = scalar_lea.vmem [#allocation26], %s5868_s13 }
 0x229   : > { %s8239_s9 = scalar_lea.vmem [#allocation27], %s8155_s11  ;;  %s8242_s28 = scalar_lea.vmem [#allocation29], %s8155_s11 }
 0x22c   : > { %s5871_s6 = sshll.u32 %s9394_s1, 1  ;;  %s9397_s1 = sld [smem:[#allocation43_spill]] }
 0x22d   : > { %p1189_p12 = scmp.lt.s32.totalorder %s5871_s6, 3 }
 0x22f   : > { %s9438_s6 = smov (!%p1189_p12, %s5871_s6), 3 }
 0x230   : > { %s6051_s15 = sshll.u32 %s9438_s6, 4 }
 0x231   : > { %s1193_s16 = scalar_lea.vmem %s9395_s18, %s6051_s15  ;;  %s8233_s4 = scalar_lea.vmem %s9396_s24, %s6051_s15 }
 0x232   : > { %p5877_p4 = scmp.ne.s32.totalorder %s9397_s1, 0 }
 0x233   : > { %v1211_v0 = vld [vmem:[%s1193_s16] sm:$0xff] (!%p5877_p4)  ;;  %v1213_v1 = vld [vmem:[%s1193_s16 + $0x10] sm:$0xff] (!%p5877_p4)  ;;  %v1212_v2 = vld [vmem:[%s1193_s16 + $0x8] sm:$0xff] (!%p5877_p4) }
 0x234   : > { %1210 = sbr.rel (%p5877_p4) target bundleno = 884 (0x374), region = 160  ;;  %1217 = vadd.xlane.f32.xlu0 (!%p5877_p4), %v1211_v0  ;;  %1221 = vadd.xlane.f32.xlu1 (!%p5877_p4), %v1213_v1  ;;  %v1214_v3 = vld [vmem:[%s1193_s16 + $0x18] sm:$0xff] (!%p5877_p4)  ;;  %v5878_v33 = vld [vmem:[#allocation5] ss:$0 sm:$0xff] (!%p5877_p4)  ;;  %v5879_v35 = vld [vmem:[#allocation7] ss:$0 sm:$0xff] (!%p5877_p4) }
 0x238   : > { %1219 = vadd.xlane.f32.xlu0 (!%p5877_p4), %v1212_v2  ;;  %1223 = vadd.xlane.f32.xlu1 (!%p5877_p4), %v1214_v3 }
 0x2c1   : > { %v1218_v4 = vpop.xlane.xlu0 %1217  ;;  %v1222_v5 = vpop.xlane.xlu1 %1221 }
 0x2c2   : > { %v1226_v6 = vmul.f32 0.0078125, %v1218_v4  ;;  %v1228_v7 = vmul.f32 0.0078125, %v1222_v5 }
 0x2c4   : > { %v1230_v8 = vsub.f32 %v1211_v0, %v1226_v6  ;;  %v1232_v9 = vsub.f32 %v1213_v1, %v1228_v7 }
 0x2c5   : > { %v1220_v10 = vpop.xlane.xlu0 %1219  ;;  %v1224_v11 = vpop.xlane.xlu1 %1223 }
 0x2c6   : > { %v1227_v12 = vmul.f32 0.0078125, %v1220_v10  ;;  %v1234_v13 = vmul.f32 %v1230_v8, %v1230_v8  ;;  %v1229_v14 = vmul.f32 0.0078125, %v1224_v11  ;;  %v1236_v17 = vmul.f32 %v1232_v9, %v1232_v9 }
 0x2c8   : > { %v1231_v15 = vsub.f32 %v1212_v2, %v1227_v12  ;;  %1238 = vadd.xlane.f32.xlu0 %v1234_v13  ;;  %v1233_v16 = vsub.f32 %v1214_v3, %v1229_v14 }
 0x2ca   : > { %v1235_v18 = vmul.f32 %v1231_v15, %v1231_v15  ;;  %v1237_v19 = vmul.f32 %v1233_v16, %v1233_v16 }
 0x2cc   : > { %1242 = vadd.xlane.f32.xlu0 %v1236_v17  ;;  %1240 = vadd.xlane.f32.xlu1 %v1235_v18 }
 0x2d0   : > { %1244 = vadd.xlane.f32.xlu1 %v1237_v19 }
 0x355   : > { %v1239_v20 = vpop.xlane.xlu0 %1238 }
 0x356   : > { %v1246_v21 = vmul.f32 0.0078125, %v1239_v20 }
 0x358   : > { %v1250_v22 = vadd.f32 1e-12, %v1246_v21 }
 0x359   : > { %v1241_v23 = vpop.xlane.xlu1 %1240  ;;  %v1243_v24 = vpop.xlane.xlu0 %1242 }
 0x35a   : > { %6486 = vrsqrt.f32 %v1250_v22  ;;  %v1247_v25 = vmul.f32 0.0078125, %v1241_v23  ;;  %v1248_v26 = vmul.f32 0.0078125, %v1243_v24 }
 0x35c   : > { %v1251_v27 = vadd.f32 1e-12, %v1247_v25  ;;  %v1252_v28 = vadd.f32 1e-12, %v1248_v26 }
 0x35d   : > { %v1245_v29 = vpop.xlane.xlu1 %1244 }
 0x35e   : > { %6488 = vrsqrt.f32 %v1251_v27  ;;  %v1249_v30 = vmul.f32 0.0078125, %v1245_v29 }
 0x35f   : > { %6490 = vrsqrt.f32 %v1252_v28 }
 0x360   : > { %v1253_v31 = vadd.f32 1e-12, %v1249_v30 }
 0x362   : > { %6492 = vrsqrt.f32 %v1253_v31 }
 0x364   : > { %v6487_v32 = vpop.eup %6486 }
 0x365   : > { %v1258_v34 = vmul.f32 %v6487_v32, %v1230_v8 }
 0x367   : > { %v1268_v36 = vmul.f32 %v5878_v33, %v1258_v34 }
 0x368   : > { %v6489_v37 = vpop.eup %6488 }
 0x369   : > { %v6491_v38 = vpop.eup %6490  ;;  %v1278_v39 = vadd.f32 %v5879_v35, %v1268_v36  ;;  %v1259_v40 = vmul.f32 %v6489_v37, %v1231_v15 }
 0x36a   : > { %v1260_v41 = vmul.f32 %v6491_v38, %v1232_v9 }
 0x36b   : > { %1282 = vst [vmem:[%s8236_s19] sm:$0xff] %v1278_v39  ;;  %v1269_v42 = vmul.f32 %v5878_v33, %v1259_v40 }
 0x36c   : > { %v6493_v43 = vpop.eup %6492  ;;  %v1270_v44 = vmul.f32 %v5878_v33, %v1260_v41 }
 0x36d   : > { %v1279_v45 = vadd.f32 %v5879_v35, %v1269_v42  ;;  %v1261_v46 = vmul.f32 %v6493_v43, %v1233_v16 }
 0x36e   : > { %v1280_v47 = vadd.f32 %v5879_v35, %v1270_v44 }
 0x36f   : > { %1283 = vst [vmem:[%s8236_s19 + $0x8] sm:$0xff] %v1279_v45  ;;  %v1271_v48 = vmul.f32 %v5878_v33, %v1261_v46 }
 0x370   : > { %1284 = vst [vmem:[%s8236_s19 + $0x10] sm:$0xff] %v1280_v47 }
 0x371   : > { %v1281_v49 = vadd.f32 %v5879_v35, %v1271_v48 }
 0x373   : > { %1285 = vst [vmem:[%s8236_s19 + $0x18] sm:$0xff] %v1281_v49 }
 0x374 PF: > { %v6504_v50 = vld [vmem:[%s8175_s12 + $0x4] ss:$12 sps:$4 sm:$0xff]   ;;  %v6506_v51 = vld [vmem:[%s8175_s12] ss:$12 sps:$4 sm:$0xff]   ;;  %v7404_v52 = vmov 0   ;;  %v7405_v6 = vmov 0.0   ;;  %v1332_v7 = vlaneseq }
 0x375   : > { %1507 = vmatprep.mubr.bf16.mxu0 %v7404_v52  ;;  %1475 = vmatprep.subr.bf16.mxu0 %v6504_v50  ;;  %v6507_v53 = vld [vmem:[%s8175_s12 + $0x1c] ss:$12 sps:$4 sm:$0xff]   ;;  %v6509_v54 = vld [vmem:[%s8175_s12 + $0x18] ss:$12 sps:$4 sm:$0xff]   ;;  %v6510_v55 = vld [vmem:[%s8175_s12 + $0x34] ss:$12 sps:$4 sm:$0xff]  }
 0x376   : > { %1476 = vmatpush1.bf16.msra.mxu0 %v6506_v51  ;;  %v6512_v56 = vld [vmem:[%s8175_s12 + $0x30] ss:$12 sps:$4 sm:$0xff]   ;;  %v6513_v57 = vld [vmem:[%s8175_s12 + $0x4c] ss:$12 sps:$4 sm:$0xff]   ;;  %v6515_v58 = vld [vmem:[%s8175_s12 + $0x48] ss:$12 sps:$4 sm:$0xff]  }
 0x377   : > { %1477 = vmatprep.subr.bf16.mxu0 %v6507_v53  ;;  %v1286_v59 = vld [vmem:[%s8236_s19] sm:$0xff]  ;;  %v6516_v60 = vld [vmem:[%s8175_s12 + $0x64] ss:$12 sps:$4 sm:$0xff]   ;;  %v6527_v5 = vld [vmem:[%s8175_s12 + $0xa8] ss:$12 sps:$4 sm:$0xff]   ;;  %v8270_v8 = vshrl.u32 %v1332_v7, 7 }
 0x378   : > { %v1287_v61 = vld [vmem:[%s8236_s19 + $0x8] sm:$0xff]  ;;  %v6524_v3 = vld [vmem:[%s8175_s12 + $0x90] ss:$12 sps:$4 sm:$0xff]   ;;  %v6525_v4 = vld [vmem:[%s8175_s12 + $0xac] ss:$12 sps:$4 sm:$0xff]   ;;  %s7406_s14 = smov 64  }
 0x379   : > { %v1328_v62 = vpack.c.bf16 %v1287_v61, %v1286_v59  ;;  %v6518_v63 = vld [vmem:[%s8175_s12 + $0x60] ss:$12 sps:$4 sm:$0xff]   ;;  %v6519_v0 = vld [vmem:[%s8175_s12 + $0x7c] ss:$12 sps:$4 sm:$0xff]   ;;  %v6521_v1 = vld [vmem:[%s8175_s12 + $0x78] ss:$12 sps:$4 sm:$0xff]  }
 0x37a   : > { %1478 = vmatpush1.bf16.msra.mxu0 %v6509_v54  ;;  %v6522_v2 = vld [vmem:[%s8175_s12 + $0x94] ss:$12 sps:$4 sm:$0xff]   ;;  %v8273_v9 = vsub.s32 0, %v8270_v8  ;;  %v1338_v11 = vsub.s32 1, %v8270_v8  ;;  %v1288_v23 = vld [vmem:[%s8236_s19 + $0x10] sm:$0xff]  ;;  %vm7407_vm0 = vmmov 0  }
 0x37b   : > { %1479 = vmatprep.subr.bf16.mxu0 %v6510_v55  ;;  %6174 = vmatprep.mubr.bf16.mxu1 %v1328_v62  ;;  %v8276_v10 = vld [vmem:[%s8183_s30] sm:$0x7]  ;;  %v6528_v22 = vld [vmem:[%s8175_s12 + $0x8] ss:$12 sps:$4 sm:$0xff]   ;;  %v6531_v28 = vld [vmem:[%s8175_s12 + $0x50] ss:$12 sps:$4 sm:$0xff]  }
 0x37c   : > { %v8281_v12 = vrot.slane %v8276_v10, %v8273_v9  ;;  %v8286_v13 = vrot.slane %v8276_v10, %v1338_v11  ;;  %v1289_v24 = vld [vmem:[%s8236_s19 + $0x18] sm:$0xff]  ;;  %v6529_v26 = vld [vmem:[%s8175_s12 + $0x20] ss:$12 sps:$4 sm:$0xff]   ;;  %6158 = vmatprep.subr.bf16.mxu1 %v6528_v22  ;;  %v7408_v33 = vmov 1983009808   ;;  %vm2723_vm1 = vcmask 523264  }
 0x37d   : > { %v1329_v25 = vpack.c.bf16 %v1289_v24, %v1288_v23  ;;  %6159 = vmatpush3.bf16.msra.mxu1 %v6528_v22  ;;  %v6530_v27 = vld [vmem:[%s8175_s12 + $0x38] ss:$12 sps:$4 sm:$0xff]   ;;  %v6532_v29 = vld [vmem:[%s8175_s12 + $0x68] ss:$12 sps:$4 sm:$0xff]   ;;  %v6533_v30 = vld [vmem:[%s8175_s12 + $0x80] ss:$12 sps:$4 sm:$0xff]   ;;  %v1595_v34 = vunpack.c.l.s4 %v7408_v33 }
 0x37e   : > { %1480 = vmatpush1.bf16.msra.mxu0 %v6512_v56  ;;  %6160 = vmatprep.subr.bf16.mxu1 %v6529_v26  ;;  %v6534_v31 = vld [vmem:[%s8175_s12 + $0x98] ss:$12 sps:$4 sm:$0xff]   ;;  %v6535_v32 = vld [vmem:[%s8175_s12 + $0xb0] ss:$12 sps:$4 sm:$0xff]   ;;  %v7409_v35 = vmov 1934713408  }
 0x37f   : > { %1481 = vmatprep.subr.bf16.mxu0 %v6513_v57  ;;  %v1626_v36 = vunpack.c.l.s4 %v7409_v35  ;;  %v1596_v37 = vunpack.c.0.s8 %v1595_v34  ;;  %s9398_s8 = scalar_lea.vmem [#allocation2], %s8155_s11  ;;  %vm2832_vm2 = vcmask 130048   ;;  %s9400_s6 = scalar_lea.vmem [#allocation13], %s8171_s10 }
 0x380   : > { %s9399_s17 = smov %s9398_s8  ;;  %s9401_s24 = scalar_lea.vmem [#allocation14], %s8171_s10 }
 0x381   : > { %6161 = vmatpush3.bf16.msra.mxu1 %v6529_v26  ;;  %v1627_v38 = vunpack.c.0.s8 %v1626_v36  ;;  %v8318_v39 = vsub.s32 %v1596_v37, %v8270_v8  ;;  %s9402_s16 = scalar_lea.vmem [#allocation16], %s8171_s10  ;;  %s9403_s11 = scalar_lea.vmem [#allocation22], %s8171_s10 }
 0x382   : > { %1482 = vmatpush1.bf16.msra.mxu0 %v6515_v58  ;;  %6162 = vmatprep.subr.bf16.mxu1 %v6530_v27  ;;  %s9404_s23 = scalar_lea.vmem [#allocation23], %s8171_s10  ;;  %s9405_s10 = sld [smem:[#allocation43_spill]] }
 0x383   : > { %1483 = vmatprep.subr.bf16.mxu0 %v6516_v60  ;;  %v8323_v42 = vsub.s32 %v1627_v38, %v8270_v8 }
 0x385   : > { %6163 = vmatpush3.bf16.msra.mxu1 %v6530_v27 }
 0x386   : > { %1484 = vmatpush1.bf16.msra.mxu0 %v6518_v63  ;;  %6164 = vmatprep.subr.bf16.mxu1 %v6531_v28 }
 0x387   : > { %1485 = vmatprep.subr.bf16.mxu0 %v6519_v0 }
 0x388   : > { %p6022_p13 = scmp.ne.s32.totalorder %s9405_s10, 1 }
 0x389   : > { %6165 = vmatpush3.bf16.msra.mxu1 %v6531_v28  ;;  %vm7411_vm3 = vmmov (!%p6022_p13), 0   ;;  %vm5309_vm4 = vcmask (!%p6022_p13), 7168   ;;  %vm5147_vm5 = vcmask (!%p6022_p13), 1041409   ;;  %s9408_s10 = sld [smem:[#allocation72_spill]] (!%p6022_p13) }
 0x38a   : > { %1486 = vmatpush1.bf16.msra.mxu0 %v6521_v1  ;;  %6166 = vmatprep.subr.bf16.mxu1 %v6532_v29 }
 0x38b   : > { %1487 = vmatprep.subr.bf16.mxu0 %v6522_v2 }
 0x38d   : > { %6167 = vmatpush3.bf16.msra.mxu1 %v6532_v29 }
 0x38e   : > { %1488 = vmatpush1.bf16.msra.mxu0 %v6524_v3  ;;  %6168 = vmatprep.subr.bf16.mxu1 %v6533_v30 }
 0x38f   : > { %1489 = vmatprep.subr.bf16.mxu0 %v6525_v4 }
 0x391   : > { %6169 = vmatpush3.bf16.msra.mxu1 %v6533_v30 }
 0x392   : > { %1490 = vmatpush1.bf16.msra.mxu0 %v6527_v5  ;;  %6170 = vmatprep.subr.bf16.mxu1 %v6534_v31 }
 0x393   : > { %6178 = vmatprep.subr.bf16.mxu0 %v7405_v6 }
 0x395   : > { %1508 = vmatmul.mubr.bf16.vlgmr.msra.gmra.mrb[0].mxu0 %v1328_v62  ;;  %6171 = vmatpush3.bf16.msra.mxu1 %v6534_v31 }
 0x396   : > { %1517 = vmatprep.mubr.bf16.mxu0 %v7404_v52  ;;  %6172 = vmatprep.subr.bf16.mxu1 %v6535_v32 }
 0x399   : > { %6173 = vmatpush3.bf16.msra.mxu1 %v6535_v32 }
 0x39a   : > { %6190 = vmatprep.subr.bf16.mxu1 %v7405_v6 }
 0x39c   : > { %6175 = vmatmul.mubr.bf16.vlgmr.msra.gmra.mrb[0].mxu1 %v1329_v25 }
 0x39d   : > { %1518 = vmatmul.mubr.bf16.gmra.mrb[4].mxu0 %v1329_v25  ;;  %6192 = vmatprep.mubr.msk.bf16.mxu1 %vm7407_vm0, %v7405_v6 }
 0x39e   : > { %6180 = vmatprep.mubr.msk.bf16.mxu0 %vm7407_vm0, %v7405_v6 }
 0x468   : > { %v1509_v14 = vpop.f32.mrb[0].mxu0 }
 0x469   : > { %v1510_v15 = vadd.f32 %v1509_v14, %v8281_v12  ;;  %v1511_v16 = vpop.f32.mrb[1].mxu0 }
 0x46a   : > { %v1512_v17 = vadd.f32 %v1511_v16, %v8286_v13  ;;  %v1513_v18 = vpop.f32.mrb[2].mxu0 }
 0x46b   : > { %v1515_v19 = vpop.f32.mrb[3].mxu0  ;;  %1581 = vrot.lane.b32.xlu1 %v1510_v15, %s7406_s14  ;;  %v8293_v20 = vadd.f32 %v1513_v18, %v8281_v12  ;;  %v1593_v40 = vcombine.high %v1510_v15, %v7405_v6  ;;  %v1600_v44 = vrot.slane %v1510_v15, %v8318_v39 }
 0x46c   : > { %1861 = vrot.lane.b32.xlu0 %v1512_v17, %s7406_s14  ;;  %v8296_v21 = vadd.f32 %v1515_v19, %v8286_v13  ;;  %v1873_v41 = vcombine.high %v1512_v17, %v7405_v6  ;;  %v1880_v45 = vrot.slane %v1512_v17, %v8318_v39 }
 0x46d   : > { %v1607_v49 = vrot.slane %v1593_v40, %v8318_v39  ;;  %v1659_v50 = vcombine.high %v8293_v20, %v7405_v6  ;;  %v1666_v24 = vrot.slane %v8293_v20, %v8318_v39 }
 0x46e   : > { %v1887_v54 = vrot.slane %v1873_v41, %v8318_v39  ;;  %v1939_v58 = vcombine.high %v8296_v21, %v7405_v6  ;;  %v1946_v29 = vrot.slane %v8296_v21, %v8318_v39 }
 0x46f   : > { %1583 = vrot.lane.b32.xlu1 %v8293_v20, %s7406_s14  ;;  %v1673_v28 = vrot.slane %v1659_v50, %v8318_v39 }
 0x470   : > { %1863 = vrot.lane.b32.xlu0 %v8296_v21, %s7406_s14  ;;  %v1953_v32 = vrot.slane %v1939_v58, %v8318_v39 }
 0x4dd   : > { %v1582_v43 = vpop.permute.xlu1 %1581 }
 0x4de   : > { %v1608_v46 = vcombine.high %v1582_v43, %v7405_v6  ;;  %v1615_v47 = vrot.slane %v1582_v43, %v8318_v39  ;;  %v1862_v48 = vpop.permute.xlu0 %1861 }
 0x4df   : > { %v1888_v51 = vcombine.high %v1862_v48, %v7405_v6  ;;  %v1895_v53 = vrot.slane %v1862_v48, %v8318_v39 }
 0x4e0   : > { %v1622_v55 = vrot.slane %v1608_v46, %v8318_v39  ;;  %v1623_v56 = vcombine.low %v1600_v44, %v1615_v47  ;;  %v1624_v57 = vcombine.high %v1600_v44, %v1615_v47 }
 0x4e1   : > { %v1902_v59 = vrot.slane %v1888_v51, %v8318_v39  ;;  %v1903_v60 = vcombine.low %v1880_v45, %v1895_v53  ;;  %v1904_v61 = vcombine.high %v1880_v45, %v1895_v53  ;;  %v1584_v23 = vpop.permute.xlu1 %1583 }
 0x4e2   : > { %v1631_v62 = vrot.slane %v1623_v56, %v8323_v42  ;;  %v1638_v63 = vrot.slane %v1624_v57, %v8323_v42  ;;  %v1639_v0 = vcombine.low %v1607_v49, %v1622_v55  ;;  %v1640_v1 = vcombine.high %v1607_v49, %v1622_v55  ;;  %v1864_v27 = vpop.permute.xlu0 %1863 }
 0x4e3   : > { %v1911_v2 = vrot.slane %v1903_v60, %v8323_v42  ;;  %v1918_v3 = vrot.slane %v1904_v61, %v8323_v42  ;;  %v1919_v4 = vcombine.low %v1887_v54, %v1902_v59  ;;  %v1920_v5 = vcombine.high %v1887_v54, %v1902_v59 }
 0x4e4   : > { %v1647_v7 = vrot.slane %v1639_v0, %v8323_v42  ;;  %v1654_v14 = vrot.slane %v1640_v1, %v8323_v42  ;;  %v2417_v15 = vcombine.low %v1631_v62, %v1638_v63  ;;  %v5904_v16 = vcombine.high %v1631_v62, %v1638_v63 }
 0x4e5   : > { %v1927_v17 = vrot.slane %v1919_v4, %v8323_v42  ;;  %v1934_v18 = vrot.slane %v1920_v5, %v8323_v42  ;;  %v2519_v19 = vcombine.low %v1911_v2, %v1918_v3  ;;  %v5908_v22 = vcombine.high %v1911_v2, %v1918_v3 }
 0x4e6   : > { %v2433_v25 = vcombine.low %v1647_v7, %v1654_v14  ;;  %v5905_v26 = vcombine.high %v1647_v7, %v1654_v14  ;;  %v2424_v30 = vrot.slane %v2417_v15, %v8318_v39  ;;  %v2432_v31 = vrot.slane %v5904_v16, %v8318_v39 }
 0x4e7   : > { %v8356_v33 = vrot.slane %v2519_v19, %v8318_v39  ;;  %v2535_v34 = vcombine.low %v1927_v17, %v1934_v18  ;;  %v1674_v20 = vcombine.high %v1584_v23, %v7405_v6  ;;  %v2534_v35 = vrot.slane %v5908_v22, %v8318_v39 }
 0x4e8   : > { %v5909_v36 = vcombine.high %v1927_v17, %v1934_v18  ;;  %v1681_v37 = vrot.slane %v1584_v23, %v8318_v39  ;;  %v1954_v38 = vcombine.high %v1864_v27, %v7405_v6  ;;  %v2440_v21 = vrot.slane %v2433_v25, %v8318_v39 }
 0x4e9   : > { %v2448_v40 = vrot.slane %v5905_v26, %v8318_v39  ;;  %v1688_v41 = vrot.slane %v1674_v20, %v8318_v39  ;;  %v1961_v43 = vrot.slane %v1864_v27, %v8318_v39  ;;  %v2449_v44 = vcombine.low %v2424_v30, %v2432_v31 }
 0x4ea   : > { %v1689_v45 = vcombine.low %v1666_v24, %v1681_v37  ;;  %v1690_v46 = vcombine.high %v1666_v24, %v1681_v37  ;;  %v1968_v47 = vrot.slane %v1954_v38, %v8318_v39  ;;  %v2542_v48 = vrot.slane %v2535_v34, %v8318_v39 }
 0x4eb   : > { %v1705_v49 = vcombine.low %v1673_v28, %v1688_v41  ;;  %v1706_v50 = vcombine.high %v1673_v28, %v1688_v41  ;;  %v1969_v51 = vcombine.low %v1946_v29, %v1961_v43  ;;  %v1970_v55 = vcombine.high %v1946_v29, %v1961_v43 }
 0x4ec   : > { %v1697_v53 = vrot.slane %v1689_v45, %v8323_v42  ;;  %v1704_v54 = vrot.slane %v1690_v46, %v8323_v42  ;;  %v1985_v56 = vcombine.low %v1953_v32, %v1968_v47  ;;  %v2550_v57 = vrot.slane %v5909_v36, %v8318_v39 }
 0x4ed   : > { %v1713_v58 = vrot.slane %v1705_v49, %v8323_v42  ;;  %v1720_v59 = vrot.slane %v1706_v50, %v8323_v42  ;;  %v1977_v60 = vrot.slane %v1969_v51, %v8323_v42  ;;  %v1984_v63 = vrot.slane %v1970_v55, %v8323_v42 }
 0x4ee   : > { %v2467_v61 = vcombine.low %v1697_v53, %v1704_v54  ;;  %v5906_v62 = vcombine.high %v1697_v53, %v1704_v54  ;;  %v1986_v0 = vcombine.high %v1953_v32, %v1968_v47  ;;  %v2457_v1 = vcombine.low %v2440_v21, %v2448_v40 }
 0x4ef   : > { %v2483_v2 = vcombine.low %v1713_v58, %v1720_v59  ;;  %v5907_v3 = vcombine.high %v1713_v58, %v1720_v59  ;;  %v1993_v4 = vrot.slane %v1985_v56, %v8323_v42  ;;  %v2569_v15 = vcombine.low %v1977_v60, %v1984_v63  ;;  %v8404_v56 = vpop.f32.mrb[4].mxu0 }
 0x4f0   : > { %v2474_v5 = vrot.slane %v2467_v61, %v8318_v39  ;;  %v2482_v7 = vrot.slane %v5906_v62, %v8318_v39  ;;  %v2000_v14 = vrot.slane %v1986_v0, %v8323_v42  ;;  %v5910_v18 = vcombine.high %v1977_v60, %v1984_v63  ;;  %v6176_v62 = vpop.f32.mrb[0].mxu1 }
 0x4f1   : > { %v2490_v16 = vrot.slane %v2483_v2, %v8318_v39  ;;  %v2498_v17 = vrot.slane %v5907_v3, %v8318_v39  ;;  %v2559_v19 = vcombine.low %v2542_v48, %v2550_v57  ;;  %v2576_v23 = vrot.slane %v2569_v15, %v8318_v39  ;;  %v1521_v57 = vpop.f32.mrb[5].mxu0  ;;  %v1562_v0 = vpop.f32.mrb[1].mxu1 }
 0x4f2   : > { %v2499_v22 = vcombine.low %v2474_v5, %v2482_v7  ;;  %v2585_v24 = vcombine.low %v1993_v4, %v2000_v14  ;;  %v5911_v25 = vcombine.high %v1993_v4, %v2000_v14  ;;  %v2464_v26 = vrot.slane %v2457_v1, %v8323_v42  ;;  %v8406_v58 = vpop.f32.mrb[6].mxu0  ;;  %v6177_v1 = vpop.f32.mrb[2].mxu1  ;;  %v1290_v4 = vld [vmem:[%s9398_s8] sm:$0x1] }
 0x4f3   : > { %v2507_v27 = vcombine.low %v2490_v16, %v2498_v17  ;;  %v2584_v28 = vrot.slane %v5910_v18, %v8318_v39  ;;  %v2551_v31 = vcombine.low %v8356_v33, %v2534_v35  ;;  %v2456_v32 = vrot.slane %v2449_v44, %v8323_v42  ;;  %v1525_v59 = vpop.f32.mrb[7].mxu0  ;;  %v1565_v3 = vpop.f32.mrb[3].mxu1 }
 0x4f4   : > { %v2592_v29 = vrot.slane %v2585_v24, %v8318_v39  ;;  %v2600_v30 = vrot.slane %v5911_v25, %v8318_v39  ;;  %v2506_v34 = vrot.slane %v2499_v22, %v8323_v42  ;;  %v2566_v37 = vrot.slane %v2559_v19, %v8323_v42 }
 0x4f5   : > { %v2514_v20 = vrot.slane %v2507_v27, %v8323_v42  ;;  %v2601_v36 = vcombine.low %v2576_v23, %v2584_v28  ;;  %v2465_v21 = vcombine.low %v2456_v32, %v2464_v26  ;;  %v2466_v41 = vcombine.high %v2456_v32, %v2464_v26 }
 0x4f6   : > { %v2609_v38 = vcombine.low %v2592_v29, %v2600_v30  ;;  %v2558_v45 = vrot.slane %v2551_v31, %v8323_v42  ;;  %v1342_v60 = vsub.s32 2, %v8270_v8  ;;  %v1292_v5 = vsub.f32 1.0, %v1290_v4 }
 0x4f7   : > { %v2515_v40 = vcombine.low %v2506_v34, %v2514_v20  ;;  %v2516_v43 = vcombine.high %v2506_v34, %v2514_v20  ;;  %v2608_v46 = vrot.slane %v2601_v36, %v8323_v42 }
 0x4f8   : > { %v2616_v33 = vrot.slane %v2609_v38, %v8323_v42  ;;  %v2567_v47 = vcombine.low %v2558_v45, %v2566_v37  ;;  %v2568_v49 = vcombine.high %v2558_v45, %v2566_v37  ;;  %v1343_v61 = vrot.slane %v8276_v10, %v1342_v60 }
 0x4f9   : > { %v2517_v35 = vpack.c.bf16 %v2515_v40, %v2465_v21  ;;  %v2518_v44 = vpack.c.bf16 %v2516_v43, %v2466_v41  ;;  %v1294_v7 = vmul.f32 -1e+09, %v1292_v5  ;;  %v8425_v38 = vadd.f32 %v1521_v57, %v8286_v13 }
 0x4fa   : > { %v2617_v48 = vcombine.low %v2608_v46, %v2616_v33  ;;  %v2618_v50 = vcombine.high %v2608_v46, %v2616_v33  ;;  %v8412_v63 = vadd.f32 %v6176_v62, %v1343_v61  ;;  %v8414_v2 = vadd.f32 %v6177_v1, %v1343_v61 }
 0x4fb   : > { %v2826_v14 = vrot.slane %v1294_v7, %v8273_v9  ;;  %v1563_v37 = vadd.f32 %v1562_v0, %v1343_v61  ;;  %v8430_v21 = vadd.f32 %v1525_v59, %v8286_v13  ;;  %v1566_v40 = vadd.f32 %v1565_v3, %v1343_v61 }
 0x4fc   : > { %v2619_v51 = vpack.c.bf16 %v2617_v48, %v2567_v47  ;;  %v2620_v53 = vpack.c.bf16 %v2618_v50, %v2568_v49 }
 0x4fd   : > { %v2153_v47 = vcombine.high %v1563_v37, %v7405_v6  ;;  %v2160_v49 = vrot.slane %v1563_v37, %v8318_v39  ;;  %v2219_v7 = vcombine.high %v1566_v40, %v7405_v6 }
 0x4fe   : > { %v2728_v54 = vsel %vm2723_vm1, %v2619_v51, 0  ;;  %v2775_v55 = vsel %vm2723_vm1, %v2620_v53, 0 }
 0x4ff   : > { %6179 = vmatpush3.bf16.xpose.msra.mxu0 %v2728_v54 }
 0x500   : > { %6184 = vmatprep.subr.bf16.mxu0 %v7405_v6 }
 0x506   : > { %6181 = vmatmul.mubr.msk.bf16.vlgmr.msra.gmra.mrb[8].mxu0 %vm2723_vm1, %v2517_v35 }
 0x507   : > { %6185 = vmatpush3.bf16.xpose.msra.mxu0 %v2775_v55  ;;  %6186 = vmatprep.mubr.msk.bf16.mxu0 %vm7407_vm0, %v7405_v6  ;;  %v2167_v55 = vrot.slane %v2153_v47, %v8318_v39 }
 0x508   : > { %6196 = vmatprep.subr.bf16.mxu0 %v7405_v6 }
 0x50e   : > { %6187 = vmatmul.mubr.msk.bf16.vlgmr.msra.gmra.mrb[12].mxu0 %vm2723_vm1, %v2518_v44 }
 0x50f   : > { %6198 = vmatprep.mubr.msk.bf16.mxu0 %vm7407_vm0, %v7405_v6 }
 0x5d9   : > { %v2764_v15 = vpop.f32.mrb[8].mxu0 }
 0x5da   : > { %v2818_v16 = vmul.f32 0.125, %v2764_v15  ;;  %v6182_v17 = vpop.f32.mrb[9].mxu0 }
 0x5db   : > { %v2767_v18 = vpop.f32.mrb[10].mxu0 }
 0x5dc   : > { %v2819_v10 = vmul.f32 0.125, %v2767_v18  ;;  %v6183_v19 = vpop.f32.mrb[11].mxu0  ;;  %v2828_v22 = vadd.f32 %v2826_v14, %v2818_v16 }
 0x5dd   : > { %v2226_v19 = vrot.slane %v1566_v40, %v8318_v39 }
 0x5de   : > { %v2833_v23 = vsel %vm2832_vm2, %v2828_v22, -inf  ;;  %v2829_v24 = vadd.f32 %v2826_v14, %v2819_v10 }
 0x5df   : > { %2834 = vmax.xlane.f32.xlu0 %v2833_v23 }
 0x5e0   : > { %v2836_v25 = vsel %vm2832_vm2, %v2829_v24, -inf }
 0x5e1   : > { %2837 = vmax.xlane.f32.xlu1 %v2836_v25  ;;  %v2811_v26 = vpop.f32.mrb[12].mxu0 }
 0x5e2   : > { %v2820_v27 = vmul.f32 0.125, %v2811_v26  ;;  %v6188_v28 = vpop.f32.mrb[13].mxu0 }
 0x5e3   : > { %v2814_v29 = vpop.f32.mrb[14].mxu0 }
 0x5e4   : > { %v2821_v30 = vmul.f32 0.125, %v2814_v29  ;;  %v6189_v31 = vpop.f32.mrb[15].mxu0  ;;  %v2830_v32 = vadd.f32 %v2826_v14, %v2820_v27 }
 0x5e6   : > { %v2839_v34 = vsel %vm2832_vm2, %v2830_v32, -inf  ;;  %v2831_v20 = vadd.f32 %v2826_v14, %v2821_v30 }
 0x5e7   : > { %2840 = vmax.xlane.f32.xlu0 %v2839_v34 }
 0x5e8   : > { %v2842_v36 = vsel %vm2832_vm2, %v2831_v20, -inf }
 0x5eb   : > { %2843 = vmax.xlane.f32.xlu0 %v2842_v36 }
 0x5f2   : > { %2141 = vrot.lane.b32.xlu1 %v1563_v37, %s7406_s14 }
 0x5f6   : > { %1865 = vrot.lane.b32.xlu1 %v8425_v38, %s7406_s14 }
 0x5fa   : > { %1867 = vrot.lane.b32.xlu1 %v8430_v21, %s7406_s14 }
 0x601   : > { %2143 = vrot.lane.b32.xlu0 %v1566_v40, %s7406_s14 }
 0x66c   : > { %v2835_v43 = vpop.xlane.xlu0 %2834 }
 0x66d   : > { %v2845_v46 = vsub.f32 %v2828_v22, %v2835_v43  ;;  %v2233_v22 = vrot.slane %v2219_v7, %v8318_v39 }
 0x66e   : > { %v2838_v41 = vpop.xlane.xlu1 %2837 }
 0x66f   : > { %v2846_v35 = vsub.f32 %v2829_v24, %v2838_v41  ;;  %v2849_v50 = vmul.f32 1.442695, %v2845_v46 }
 0x671   : > { %v2851_v53 = vmul.f32 1.442695, %v2846_v35  ;;  %6624 = vpow2.f32 %v2849_v50 }
 0x672   : > { %v2142_v45 = vpop.permute.xlu1 %2141 }
 0x673   : > { %v2168_v33 = vcombine.high %v2142_v45, %v7405_v6  ;;  %v2175_v48 = vrot.slane %v2142_v45, %v8318_v39  ;;  %6626 = vpow2.f32 %v2851_v53 }
 0x674   : > { %v2841_v44 = vpop.xlane.xlu0 %2840 }
 0x675   : > { %v2847_v13 = vsub.f32 %v2830_v32, %v2841_v44  ;;  %v2182_v51 = vrot.slane %v2168_v33, %v8318_v39  ;;  %v2183_v57 = vcombine.low %v2160_v49, %v2175_v48  ;;  %v2184_v59 = vcombine.high %v2160_v49, %v2175_v48 }
 0x677   : > { %v2853_v61 = vmul.f32 1.442695, %v2847_v13  ;;  %v2199_v62 = vcombine.low %v2167_v55, %v2182_v51  ;;  %v2200_v0 = vcombine.high %v2167_v55, %v2182_v51  ;;  %v2191_v3 = vrot.slane %v2183_v57, %v8323_v42 }
 0x678   : > { %v2844_v54 = vpop.xlane.xlu0 %2843  ;;  %v2198_v4 = vrot.slane %v2184_v59, %v8323_v42 }
 0x679   : > { %v2848_v5 = vsub.f32 %v2831_v20, %v2844_v54  ;;  %6628 = vpow2.f32 %v2853_v61  ;;  %v2207_v14 = vrot.slane %v2199_v62, %v8323_v42  ;;  %v2214_v15 = vrot.slane %v2200_v0, %v8323_v42 }
 0x67a   : > { %v2621_v18 = vcombine.low %v2191_v3, %v2198_v4  ;;  %v5912_v10 = vcombine.high %v2191_v3, %v2198_v4 }
 0x67b   : > { %v2855_v16 = vmul.f32 1.442695, %v2848_v5  ;;  %v2637_v25 = vcombine.low %v2207_v14, %v2214_v15  ;;  %v5913_v26 = vcombine.high %v2207_v14, %v2214_v15  ;;  %v8451_v31 = vpop.eup %6624 }
 0x67c   : > { %v2144_v1 = vpop.permute.xlu0 %2143  ;;  %v2628_v32 = vrot.slane %v2621_v18, %v8318_v39  ;;  %v2636_v34 = vrot.slane %v5912_v10, %v8318_v39  ;;  %v2857_v13 = vsel %vm2832_vm2, %v8451_v31, 0.0  ;;  %v8487_v10 = vadd.f32 %v8406_v58, %v8281_v12 }
 0x67d   : > { %v2234_v17 = vcombine.high %v2144_v1, %v7405_v6  ;;  %6630 = vpow2.f32 %v2855_v16  ;;  %v2241_v23 = vrot.slane %v2144_v1, %v8318_v39  ;;  %v8455_v20 = vpop.eup %6626  ;;  %v2644_v43 = vrot.slane %v2637_v25, %v8318_v39  ;;  %2858 = vadd.xlane.f32.xlu1 %v2857_v13 }
 0x67e   : > { %v2652_v45 = vrot.slane %v5913_v26, %v8318_v39  ;;  %v2653_v48 = vcombine.low %v2628_v32, %v2636_v34  ;;  %v2860_v49 = vsel %vm2832_vm2, %v8455_v20, 0.0  ;;  %v2071_v25 = vcombine.high %v8430_v21, %v7405_v6 }
 0x67f   : > { %v2248_v24 = vrot.slane %v2234_v17, %v8318_v39  ;;  %v2249_v27 = vcombine.low %v2226_v19, %v2241_v23  ;;  %v2250_v28 = vcombine.high %v2226_v19, %v2241_v23  ;;  %2861 = vadd.xlane.f32.xlu0 %v2860_v49  ;;  %v8493_v19 = vadd.f32 %v8404_v56, %v8281_v12 }
 0x680   : > { %v2661_v59 = vcombine.low %v2644_v43, %v2652_v45  ;;  %v2660_v3 = vrot.slane %v2653_v48, %v8323_v42  ;;  %v2005_v26 = vcombine.high %v8425_v38, %v7405_v6  ;;  %v2085_v12 = vrot.slane %v2071_v25, %v8318_v39 }
 0x681   : > { %v2265_v29 = vcombine.low %v2233_v22, %v2248_v24  ;;  %v2266_v30 = vcombine.high %v2233_v22, %v2248_v24  ;;  %v2257_v36 = vrot.slane %v2249_v27, %v8323_v42  ;;  %v2264_v37 = vrot.slane %v2250_v28, %v8323_v42  ;;  %v1866_v22 = vpop.permute.xlu1 %1865 }
 0x682   : > { %v2668_v1 = vrot.slane %v2661_v59, %v8323_v42  ;;  %v2020_v58 = vcombine.high %v1866_v22, %v7405_v6  ;;  %v2027_v32 = vrot.slane %v1866_v22, %v8318_v39 }
 0x683   : > { %v2273_v40 = vrot.slane %v2265_v29, %v8323_v42  ;;  %v2280_v41 = vrot.slane %v2266_v30, %v8323_v42  ;;  %v8463_v46 = vpop.eup %6628  ;;  %v2671_v33 = vcombine.low %v2257_v36, %v2264_v37  ;;  %v5914_v35 = vcombine.high %v2257_v36, %v2264_v37 }
 0x684   : > { %v2863_v57 = vsel %vm2832_vm2, %v8463_v46, 0.0  ;;  %v2669_v7 = vcombine.low %v2660_v3, %v2668_v1  ;;  %v2670_v15 = vcombine.high %v2660_v3, %v2668_v1  ;;  %v2034_v56 = vrot.slane %v2020_v58, %v8318_v39 }
 0x685   : > { %v2687_v44 = vcombine.low %v2273_v40, %v2280_v41  ;;  %v5915_v47 = vcombine.high %v2273_v40, %v2280_v41  ;;  %v2678_v50 = vrot.slane %v2671_v33, %v8318_v39  ;;  %v2686_v51 = vrot.slane %v5914_v35, %v8318_v39  ;;  %2864 = vadd.xlane.f32.xlu1 %v2863_v57  ;;  %v1868_v23 = vpop.permute.xlu1 %1867 }
 0x686   : > { %v2086_v24 = vcombine.high %v1868_v23, %v7405_v6  ;;  %v2093_v28 = vrot.slane %v1868_v23, %v8318_v39  ;;  %v2019_v29 = vrot.slane %v2005_v26, %v8318_v39  ;;  %v2078_v30 = vrot.slane %v8430_v21, %v8318_v39 }
 0x687   : > { %v2694_v53 = vrot.slane %v2687_v44, %v8318_v39  ;;  %v2702_v54 = vrot.slane %v5915_v47, %v8318_v39  ;;  %v8473_v55 = vpop.eup %6630  ;;  %v2703_v61 = vcombine.low %v2678_v50, %v2686_v51  ;;  %v2012_v37 = vrot.slane %v8425_v38, %v8318_v39 }
 0x688   : > { %v2866_v62 = vsel %vm2832_vm2, %v8473_v55, 0.0  ;;  %v2100_v27 = vrot.slane %v2086_v24, %v8318_v39  ;;  %v2051_v40 = vcombine.low %v2019_v29, %v2034_v56  ;;  %v2052_v41 = vcombine.high %v2019_v29, %v2034_v56 }
 0x689   : > { %v2711_v0 = vcombine.low %v2694_v53, %v2702_v54  ;;  %v2710_v4 = vrot.slane %v2703_v61, %v8323_v42  ;;  %2867 = vadd.xlane.f32.xlu0 %v2866_v62  ;;  %v2101_v43 = vcombine.low %v2078_v30, %v2093_v28  ;;  %v2102_v45 = vcombine.high %v2078_v30, %v2093_v28 }
 0x68a   : > { %v2117_v34 = vcombine.low %v2085_v12, %v2100_v27  ;;  %v2118_v36 = vcombine.high %v2085_v12, %v2100_v27  ;;  %v2035_v33 = vcombine.low %v2012_v37, %v2027_v32  ;;  %v2036_v35 = vcombine.high %v2012_v37, %v2027_v32 }
 0x68b   : > { %v2718_v5 = vrot.slane %v2711_v0, %v8323_v42  ;;  %v2059_v48 = vrot.slane %v2051_v40, %v8323_v42  ;;  %v2066_v21 = vrot.slane %v2052_v41, %v8323_v42  ;;  %v2109_v13 = vrot.slane %v2101_v43, %v8323_v42 }
 0x68c   : > { %v2125_v44 = vrot.slane %v2117_v34, %v8323_v42  ;;  %v2132_v47 = vrot.slane %v2118_v36, %v8323_v42  ;;  %v2116_v49 = vrot.slane %v2102_v45, %v8323_v42  ;;  %v2043_v38 = vrot.slane %v2035_v33, %v8323_v42 }
 0x68d   : > { %v2719_v14 = vcombine.low %v2710_v4, %v2718_v5  ;;  %v2720_v16 = vcombine.high %v2710_v4, %v2718_v5  ;;  %v2050_v50 = vrot.slane %v2036_v35, %v8323_v42  ;;  %v3327_v54 = vcombine.low %v2059_v48, %v2066_v21 }
 0x68e   : > { %v3377_v51 = vcombine.low %v2125_v44, %v2132_v47  ;;  %v5931_v53 = vcombine.high %v2125_v44, %v2132_v47  ;;  %v5929_v57 = vcombine.high %v2059_v48, %v2066_v21  ;;  %v3361_v59 = vcombine.low %v2109_v13, %v2116_v49 }
 0x68f   : > { %v2721_v17 = vpack.c.bf16 %v2719_v14, %v2669_v7  ;;  %v2722_v18 = vpack.c.bf16 %v2720_v16, %v2670_v15  ;;  %v5930_v61 = vcombine.high %v2109_v13, %v2116_v49  ;;  %v3311_v62 = vcombine.low %v2043_v38, %v2050_v50 }
 0x690   : > { %v5928_v0 = vcombine.high %v2043_v38, %v2050_v50  ;;  %v3384_v1 = vrot.slane %v3377_v51, %v8318_v39  ;;  %v3392_v3 = vrot.slane %v5931_v53, %v8318_v39  ;;  %v3334_v4 = vrot.slane %v3327_v54, %v8318_v39 }
 0x691   : > { %6191 = vmatpush3.bf16.msra.mxu1 %v2721_v17  ;;  %6197 = vmatpush3.bf16.msra.mxu0 %v2722_v18  ;;  %v3342_v5 = vrot.slane %v5929_v57, %v8318_v39  ;;  %v3368_v7 = vrot.slane %v3361_v59, %v8318_v39  ;;  %v3376_v14 = vrot.slane %v5930_v61, %v8318_v39 }
 0x692   : > { %6202 = vmatprep.subr.bf16.mxu1 %v7405_v6  ;;  %6208 = vmatprep.subr.bf16.mxu0 %v7405_v6  ;;  %v3318_v15 = vrot.slane %v3311_v62, %v8318_v39  ;;  %v3326_v16 = vrot.slane %v5928_v0, %v8318_v39  ;;  %v3401_v17 = vcombine.low %v3384_v1, %v3392_v3 }
 0x693   : > { %v3351_v22 = vcombine.low %v3334_v4, %v3342_v5  ;;  %v3393_v23 = vcombine.low %v3368_v7, %v3376_v14  ;;  %v1725_v26 = vcombine.high %v8493_v19, %v7405_v6  ;;  %v1791_v29 = vcombine.high %v8487_v10, %v7405_v6 }
 0x694   : > { %v3343_v25 = vcombine.low %v3318_v15, %v3326_v16  ;;  %v3408_v58 = vrot.slane %v3401_v17, %v8323_v42  ;;  %v1732_v36 = vrot.slane %v8493_v19, %v8318_v39  ;;  %v1798_v43 = vrot.slane %v8487_v10, %v8318_v39 }
 0x695   : > { %v3358_v12 = vrot.slane %v3351_v22, %v8323_v42  ;;  %v3400_v56 = vrot.slane %v3393_v23, %v8323_v42  ;;  %v1739_v37 = vrot.slane %v1725_v26, %v8318_v39  ;;  %v1805_v47 = vrot.slane %v1791_v29, %v8318_v39 }
 0x696   : > { %1587 = vrot.lane.b32.xlu1 %v8487_v10, %s7406_s14  ;;  %v3350_v30 = vrot.slane %v3343_v25, %v8323_v42 }
 0x697   : > { %v3409_v32 = vcombine.low %v3400_v56, %v3408_v58  ;;  %v3410_v34 = vcombine.high %v3400_v56, %v3408_v58 }
 0x698   : > { %v3359_v41 = vcombine.low %v3350_v30, %v3358_v12  ;;  %v3360_v44 = vcombine.high %v3350_v30, %v3358_v12 }
 0x69a   : > { %v3412_v51 = vpack.c.bf16 %v3410_v34, %v3360_v44 }
 0x69c   : > { %v3566_v44 = vsel %vm2723_vm1, %v3412_v51, 0 }
 0x69f   : > { %1585 = vrot.lane.b32.xlu0 %v8493_v19, %s7406_s14  ;;  %v3411_v19 = vpack.c.bf16 %v3409_v32, %v3359_v41 }
 0x70a   : > { %v2859_v18 = vpop.xlane.xlu1 %2858 }
 0x70b   : > { %6632 = vrcp.f32 %v2859_v18 }
 0x70c   : > { %v2862_v24 = vpop.xlane.xlu0 %2861 }
 0x70d   : > { %6634 = vrcp.f32 %v2862_v24 }
 0x712   : > { %v2865_v27 = vpop.xlane.xlu1 %2864 }
 0x713   : > { %6636 = vrcp.f32 %v2865_v27 }
 0x715   : > { %v6633_v13 = vpop.eup %6632 }
 0x716   : > { %v2868_v28 = vpop.xlane.xlu0 %2867  ;;  %v1588_v40 = vpop.permute.xlu1 %1587  ;;  %v2873_v53 = vmul.f32 %v6633_v13, %v8451_v31 }
 0x717   : > { %6638 = vrcp.f32 %v2868_v28  ;;  %v1806_v45 = vcombine.high %v1588_v40, %v7405_v6  ;;  %v1813_v33 = vrot.slane %v1588_v40, %v8318_v39  ;;  %v6635_v10 = vpop.eup %6634 }
 0x718   : > { %v2874_v61 = vmul.f32 %v6635_v10, %v8455_v20 }
 0x719   : > { %v1820_v49 = vrot.slane %v1806_v45, %v8318_v39  ;;  %v1821_v38 = vcombine.low %v1798_v43, %v1813_v33  ;;  %v1822_v50 = vcombine.high %v1798_v43, %v1813_v33  ;;  %v3519_v45 = vsel %vm2723_vm1, %v3411_v19, 0 }
 0x71a   : > { %v1586_v35 = vpop.permute.xlu0 %1585  ;;  %v2877_v32 = vpack.c.bf16 %v2874_v61, %v2873_v53 }
 0x71b   : > { %v1740_v48 = vcombine.high %v1586_v35, %v7405_v6  ;;  %v1747_v21 = vrot.slane %v1586_v35, %v8318_v39  ;;  %v1829_v62 = vrot.slane %v1821_v38, %v8323_v42  ;;  %v1836_v0 = vrot.slane %v1822_v50, %v8323_v42 }
 0x71c   : > { %v1837_v1 = vcombine.low %v1805_v47, %v1820_v49  ;;  %v1838_v3 = vcombine.high %v1805_v47, %v1820_v49  ;;  %6193 = vmatmul.mubr.msk.bf16.vlgmr.msra.gmra.mrb[4].mxu1 %vm2832_vm2, %v2877_v32 }
 0x71d   : > { %v1754_v54 = vrot.slane %v1740_v48, %v8318_v39  ;;  %v1755_v57 = vcombine.low %v1732_v36, %v1747_v21  ;;  %v1756_v59 = vcombine.high %v1732_v36, %v1747_v21  ;;  %v6637_v14 = vpop.eup %6636  ;;  %v3259_v15 = vcombine.low %v1829_v62, %v1836_v0  ;;  %6203 = vmatpush3.bf16.xpose.msra.mxu1 %v3519_v45 }
 0x71e   : > { %v1845_v31 = vrot.slane %v1837_v1, %v8323_v42  ;;  %v5926_v16 = vcombine.high %v1829_v62, %v1836_v0  ;;  %v2875_v20 = vmul.f32 %v6637_v14, %v8463_v46  ;;  %v1852_v22 = vrot.slane %v1838_v3, %v8323_v42  ;;  %6204 = vmatprep.mubr.msk.bf16.mxu1 %vm7407_vm0, %v7405_v6 }
 0x71f   : > { %v1763_v4 = vrot.slane %v1755_v57, %v8323_v42  ;;  %v1770_v5 = vrot.slane %v1756_v59, %v8323_v42  ;;  %v1771_v7 = vcombine.low %v1739_v37, %v1754_v54  ;;  %v1772_v17 = vcombine.high %v1739_v37, %v1754_v54  ;;  %6214 = vmatprep.subr.bf16.mxu1 %v7405_v6  ;;  %v1291_v54 = vld [vmem:[%s9399_s17 + $0x1] sm:$0x1] }
 0x720   : > { %v3266_v25 = vrot.slane %v3259_v15, %v8318_v39  ;;  %v3274_v58 = vrot.slane %v5926_v16, %v8318_v39  ;;  %v3275_v12 = vcombine.low %v1845_v31, %v1852_v22  ;;  %v5927_v56 = vcombine.high %v1845_v31, %v1852_v22 }
 0x721   : > { %v6639_v18 = vpop.eup %6638  ;;  %v1779_v23 = vrot.slane %v1771_v7, %v8323_v42  ;;  %v3209_v24 = vcombine.low %v1763_v4, %v1770_v5  ;;  %v1786_v27 = vrot.slane %v1772_v17, %v8323_v42  ;;  %v5924_v29 = vcombine.high %v1763_v4, %v1770_v5 }
 0x722   : > { %v2876_v26 = vmul.f32 %v6639_v18, %v8473_v55  ;;  %v3282_v34 = vrot.slane %v3275_v12, %v8318_v39  ;;  %v3290_v36 = vrot.slane %v5927_v56, %v8318_v39  ;;  %v3291_v41 = vcombine.low %v3266_v25, %v3274_v58 }
 0x723   : > { %v3216_v28 = vrot.slane %v3209_v24, %v8318_v39  ;;  %v3225_v30 = vcombine.low %v1779_v23, %v1786_v27  ;;  %v5925_v46 = vcombine.high %v1779_v23, %v1786_v27  ;;  %v3224_v37 = vrot.slane %v5924_v29, %v8318_v39 }
 0x724   : > { %v2878_v40 = vpack.c.bf16 %v2876_v26, %v2875_v20  ;;  %v3299_v33 = vcombine.low %v3282_v34, %v3290_v36  ;;  %v3298_v21 = vrot.slane %v3291_v41, %v8323_v42  ;;  %v1293_v57 = vsub.f32 1.0, %v1291_v54 }
 0x725   : > { %v3232_v55 = vrot.slane %v3225_v30, %v8318_v39  ;;  %v3240_v43 = vrot.slane %v5925_v46, %v8318_v39  ;;  %v3241_v35 = vcombine.low %v3216_v28, %v3224_v37 }
 0x726   : > { %6199 = vmatmul.mubr.msk.bf16.vlgmr.msra.gmra.mrb[16].mxu0 %vm2832_vm2, %v2878_v40  ;;  %v3306_v48 = vrot.slane %v3299_v33, %v8323_v42  ;;  %v1295_v1 = vmul.f32 -1e+09, %v1293_v57 }
 0x727   : > { %v3249_v47 = vcombine.low %v3232_v55, %v3240_v43  ;;  %6209 = vmatpush3.bf16.xpose.msra.mxu0 %v3566_v44  ;;  %6210 = vmatprep.mubr.msk.bf16.mxu0 %vm7407_vm0, %v7405_v6  ;;  %v3248_v19 = vrot.slane %v3241_v35, %v8323_v42 }
 0x728   : > { %6220 = vmatprep.subr.bf16.mxu0 %v7405_v6  ;;  %v3307_v38 = vcombine.low %v3298_v21, %v3306_v48  ;;  %v3308_v51 = vcombine.high %v3298_v21, %v3306_v48  ;;  %v8602_v26 = vrot.slane %v1295_v1, %v8273_v9 }
 0x729   : > { %v3256_v13 = vrot.slane %v3249_v47, %v8323_v42 }
 0x72b   : > { %v3257_v49 = vcombine.low %v3248_v19, %v3256_v13  ;;  %v3258_v50 = vcombine.high %v3248_v19, %v3256_v13 }
 0x72d   : > { %v3309_v10 = vpack.c.bf16 %v3307_v38, %v3257_v49  ;;  %v3310_v53 = vpack.c.bf16 %v3308_v51, %v3258_v50 }
 0x72f   : > { %6205 = vmatmul.mubr.msk.bf16.vlgmr.msra.gmra.mrb[8].mxu1 %vm2723_vm1, %v3309_v10  ;;  %6211 = vmatmul.mubr.msk.bf16.vlgmr.msra.gmra.mrb[20].mxu0 %vm2723_vm1, %v3310_v53 }
 0x730   : > { %6216 = vmatprep.mubr.msk.bf16.mxu1 %vm7407_vm0, %v7405_v6  ;;  %6222 = vmatprep.mubr.msk.bf16.mxu0 %vm7407_vm0, %v7405_v6 }
 0x7ef   : > { %v2916_v59 = vpop.f32.mrb[4].mxu1 }
 0x7f0   : > { %v2967_v61 = vcombine.high %v2916_v59, %v7405_v6  ;;  %v6194_v62 = vpop.f32.mrb[5].mxu1  ;;  %v2974_v3 = vrot.slane %v2916_v59, %v8318_v39 }
 0x7f1   : > { %v2919_v4 = vpop.f32.mrb[6].mxu1 }
 0x7f2   : > { %v2981_v31 = vrot.slane %v2967_v61, %v8318_v39  ;;  %v3033_v15 = vcombine.high %v2919_v4, %v7405_v6  ;;  %v6195_v16 = vpop.f32.mrb[7].mxu1  ;;  %v3040_v25 = vrot.slane %v2919_v4, %v8318_v39 }
 0x7f4   : > { %v3047_v29 = vrot.slane %v3033_v15, %v8318_v39 }
 0x7f9   : > { %v2960_v0 = vpop.f32.mrb[16].mxu0 }
 0x7fa   : > { %v2982_v5 = vcombine.high %v2960_v0, %v7405_v6  ;;  %v2989_v7 = vrot.slane %v2960_v0, %v8318_v39  ;;  %v6200_v14 = vpop.f32.mrb[17].mxu0 }
 0x7fb   : > { %v2963_v17 = vpop.f32.mrb[18].mxu0 }
 0x7fc   : > { %v2996_v18 = vrot.slane %v2982_v5, %v8318_v39  ;;  %v2997_v20 = vcombine.low %v2974_v3, %v2989_v7  ;;  %v2998_v22 = vcombine.high %v2974_v3, %v2989_v7  ;;  %v3048_v23 = vcombine.high %v2963_v17, %v7405_v6  ;;  %v6201_v24 = vpop.f32.mrb[19].mxu0 }
 0x7fd   : > { %v3055_v58 = vrot.slane %v2963_v17, %v8318_v39 }
 0x7fe   : > { %v3005_v27 = vrot.slane %v2997_v20, %v8323_v42  ;;  %v3012_v12 = vrot.slane %v2998_v22, %v8323_v42  ;;  %v3013_v56 = vcombine.low %v2981_v31, %v2996_v18  ;;  %v3014_v28 = vcombine.high %v2981_v31, %v2996_v18 }
 0x7ff   : > { %v3062_v30 = vrot.slane %v3048_v23, %v8318_v39  ;;  %v3063_v46 = vcombine.low %v3040_v25, %v3055_v58  ;;  %v3064_v32 = vcombine.high %v3040_v25, %v3055_v58 }
 0x800   : > { %v3021_v34 = vrot.slane %v3013_v56, %v8323_v42  ;;  %v3028_v36 = vrot.slane %v3014_v28, %v8323_v42  ;;  %v3099_v37 = vcombine.low %v3005_v27, %v3012_v12  ;;  %v5920_v40 = vcombine.high %v3005_v27, %v3012_v12 }
 0x801   : > { %v3071_v41 = vrot.slane %v3063_v46, %v8323_v42  ;;  %v3078_v55 = vrot.slane %v3064_v32, %v8323_v42  ;;  %v3079_v43 = vcombine.low %v3047_v29, %v3062_v30  ;;  %v3080_v45 = vcombine.high %v3047_v29, %v3062_v30 }
 0x802   : > { %v3106_v33 = vrot.slane %v3099_v37, %v8318_v39  ;;  %v3114_v35 = vrot.slane %v5920_v40, %v8318_v39  ;;  %v3115_v44 = vcombine.low %v3021_v34, %v3028_v36  ;;  %v5921_v47 = vcombine.high %v3021_v34, %v3028_v36  ;;  %v3555_v48 = vpop.f32.mrb[8].mxu1  ;;  %v3602_v21 = vpop.f32.mrb[20].mxu0 }
 0x803   : > { %v3087_v19 = vrot.slane %v3079_v43, %v8323_v42  ;;  %v3094_v13 = vrot.slane %v3080_v45, %v8323_v42  ;;  %v3149_v49 = vcombine.low %v3071_v41, %v3078_v55  ;;  %v5922_v38 = vcombine.high %v3071_v41, %v3078_v55  ;;  %v6206_v50 = vpop.f32.mrb[9].mxu1  ;;  %v6212_v51 = vpop.f32.mrb[21].mxu0 }
 0x804   : > { %v3122_v10 = vrot.slane %v3115_v44, %v8318_v39  ;;  %v3130_v53 = vrot.slane %v5921_v47, %v8318_v39  ;;  %v3609_v54 = vmul.f32 0.125, %v3555_v48  ;;  %v3611_v57 = vmul.f32 0.125, %v3602_v21  ;;  %v3558_v59 = vpop.f32.mrb[10].mxu1  ;;  %v3605_v61 = vpop.f32.mrb[22].mxu0 }
 0x805   : > { %v3156_v62 = vrot.slane %v3149_v49, %v8318_v39  ;;  %v3164_v0 = vrot.slane %v5922_v38, %v8318_v39  ;;  %v3165_v1 = vcombine.low %v3087_v19, %v3094_v13  ;;  %v5923_v3 = vcombine.high %v3087_v19, %v3094_v13  ;;  %v6207_v4 = vpop.f32.mrb[11].mxu1  ;;  %v6213_v5 = vpop.f32.mrb[23].mxu0 }
 0x806   : > { %v3610_v7 = vmul.f32 0.125, %v3558_v59  ;;  %v3619_v14 = vadd.f32 %v8602_v26, %v3609_v54  ;;  %v3131_v16 = vcombine.low %v3106_v33, %v3114_v35  ;;  %v3139_v17 = vcombine.low %v3122_v10, %v3130_v53 }
 0x807   : > { %v3172_v31 = vrot.slane %v3165_v1, %v8318_v39  ;;  %v3180_v15 = vrot.slane %v5923_v3, %v8318_v39  ;;  %v3612_v18 = vmul.f32 0.125, %v3605_v61  ;;  %v3621_v23 = vadd.f32 %v8602_v26, %v3611_v57 }
 0x808   : > { %v3623_v20 = vsel %vm2832_vm2, %v3619_v14, -inf  ;;  %v3620_v22 = vadd.f32 %v8602_v26, %v3610_v7  ;;  %v8627_v24 = vrot.slane %v3131_v16, %v8323_v42  ;;  %v8630_v25 = vrot.slane %v3139_v17, %v8323_v42 }
 0x809   : > { %3624 = vmax.xlane.f32.xlu0 %v3623_v20  ;;  %v3181_v58 = vcombine.low %v3156_v62, %v3164_v0  ;;  %v3189_v27 = vcombine.low %v3172_v31, %v3180_v15  ;;  %v3629_v46 = vsel %vm2832_vm2, %v3621_v23, -inf  ;;  %v3622_v32 = vadd.f32 %v8602_v26, %v3612_v18 }
 0x80a   : > { %v3626_v12 = vsel %vm2832_vm2, %v3620_v22, -inf  ;;  %v3148_v56 = vcombine.high %v8627_v24, %v8630_v25  ;;  %v3147_v30 = vcombine.low %v8627_v24, %v8630_v25  ;;  %v2285_v62 = vcombine.high %v8412_v63, %v7405_v6 }
 0x80b   : > { %3627 = vmax.xlane.f32.xlu1 %v3626_v12  ;;  %v8636_v28 = vrot.slane %v3181_v58, %v8323_v42  ;;  %v8639_v29 = vrot.slane %v3189_v27, %v8323_v42  ;;  %v3632_v40 = vsel %vm2832_vm2, %v3622_v32, -inf  ;;  %v2292_v3 = vrot.slane %v8412_v63, %v8318_v39 }
 0x80c   : > { %v2351_v7 = vcombine.high %v8414_v2, %v7405_v6  ;;  %v2358_v58 = vrot.slane %v8414_v2, %v8318_v39 }
 0x80d   : > { %3630 = vmax.xlane.f32.xlu0 %v3629_v46  ;;  %v3198_v34 = vcombine.high %v8636_v28, %v8639_v29  ;;  %v3197_v36 = vcombine.low %v8636_v28, %v8639_v29 }
 0x80e   : > { %v2365_v27 = vrot.slane %v2351_v7, %v8318_v39 }
 0x80f   : > { %v6494_v37 = vpack.i.bf16 %v3198_v34, %v3148_v56 }
 0x811   : > { %3633 = vmax.xlane.f32.xlu0 %v3632_v40 }
 0x896   : > { %v3625_v41 = vpop.xlane.xlu0 %3624 }
 0x897   : > { %v3635_v55 = vsub.f32 %v3619_v14, %v3625_v41  ;;  %v2299_v14 = vrot.slane %v2285_v62, %v8318_v39 }
 0x898   : > { %v3628_v43 = vpop.xlane.xlu1 %3627 }
 0x899   : > { %v3639_v45 = vmul.f32 1.442695, %v3635_v55  ;;  %v3636_v33 = vsub.f32 %v3620_v22, %v3628_v43 }
 0x89a   : > { %v3631_v35 = vpop.xlane.xlu0 %3630 }
 0x89b   : > { %6640 = vpow2.f32 %v3639_v45  ;;  %v3641_v44 = vmul.f32 1.442695, %v3636_v33  ;;  %v3637_v26 = vsub.f32 %v3621_v23, %v3631_v35 }
 0x89d   : > { %6642 = vpow2.f32 %v3641_v44  ;;  %v3643_v47 = vmul.f32 1.442695, %v3637_v26 }
 0x89e   : > { %v3634_v48 = vpop.xlane.xlu0 %3633 }
 0x89f   : > { %6644 = vpow2.f32 %v3643_v47  ;;  %v3638_v21 = vsub.f32 %v3622_v32, %v3634_v48 }
 0x8a1   : > { %v3645_v19 = vmul.f32 1.442695, %v3638_v21 }
 0x8a3   : > { %6646 = vpow2.f32 %v3645_v19 }
 0x8a5   : > { %v8650_v13 = vpop.eup %6640 }
 0x8a6   : > { %v3647_v49 = vsel %vm2832_vm2, %v8650_v13, 0.0 }
 0x8a7   : > { %v8654_v38 = vpop.eup %6642  ;;  %3648 = vadd.xlane.f32.xlu1 %v3647_v49 }
 0x8a8   : > { %v3650_v50 = vsel %vm2832_vm2, %v8654_v38, 0.0 }
 0x8a9   : > { %v8658_v51 = vpop.eup %6644  ;;  %3651 = vadd.xlane.f32.xlu0 %v3650_v50 }
 0x8aa   : > { %v3653_v10 = vsel %vm2832_vm2, %v8658_v51, 0.0 }
 0x8ab   : > { %3654 = vadd.xlane.f32.xlu1 %v3653_v10 }
 0x8ad   : > { %v8662_v53 = vpop.eup %6646 }
 0x8ae   : > { %v3656_v54 = vsel %vm2832_vm2, %v8662_v53, 0.0 }
 0x8af   : > { %3657 = vadd.xlane.f32.xlu0 %v3656_v54 }
 0x8bc   : > { %2145 = vrot.lane.b32.xlu1 %v8412_v63, %s7406_s14 }
 0x8c0   : > { %6495 = vrot.lane.b32.xlu1 %v6494_v37, %s7406_s14 }
 0x8c5   : > { %2147 = vrot.lane.b32.xlu0 %v8414_v2, %s7406_s14 }
 0x934   : > { %v3649_v57 = vpop.xlane.xlu1 %3648 }
 0x935   : > { %6648 = vrcp.f32 %v3649_v57 }
 0x936   : > { %v3652_v59 = vpop.xlane.xlu0 %3651 }
 0x937   : > { %6650 = vrcp.f32 %v3652_v59 }
 0x938   : > { %v3655_v61 = vpop.xlane.xlu1 %3654 }
 0x93c   : > { %v2146_v0 = vpop.permute.xlu1 %2145  ;;  %v3658_v1 = vpop.xlane.xlu0 %3657 }
 0x93d   : > { %v2300_v4 = vcombine.high %v2146_v0, %v7405_v6  ;;  %v2307_v5 = vrot.slane %v2146_v0, %v8318_v39  ;;  %6652 = vrcp.f32 %v3658_v1 }
 0x93e   : > { %6654 = vrcp.f32 %v3655_v61 }
 0x93f   : > { %v2314_v31 = vrot.slane %v2300_v4, %v8318_v39  ;;  %v2315_v15 = vcombine.low %v2292_v3, %v2307_v5  ;;  %v2316_v16 = vcombine.high %v2292_v3, %v2307_v5  ;;  %v6649_v3 = vpop.eup %6648 }
 0x940   : > { %v6496_v17 = vpop.permute.xlu1 %6495  ;;  %v2148_v18 = vpop.permute.xlu0 %2147 }
 0x941   : > { %v2323_v20 = vrot.slane %v2315_v15, %v8323_v42  ;;  %v2330_v22 = vrot.slane %v2316_v16, %v8323_v42  ;;  %v2331_v63 = vcombine.low %v2299_v14, %v2314_v31  ;;  %v2332_v23 = vcombine.high %v2299_v14, %v2314_v31  ;;  %v6651_v14 = vpop.eup %6650 }
 0x942   : > { %v2366_v12 = vcombine.high %v2148_v18, %v7405_v6  ;;  %v6497_v32 = vunpack.i.l.bf16 %v6496_v17  ;;  %v6498_v34 = vunpack.i.h.bf16 %v6496_v17  ;;  %v2373_v37 = vrot.slane %v2148_v18, %v8318_v39 }
 0x943   : > { %v2339_v56 = vrot.slane %v2331_v63, %v8323_v42  ;;  %v2346_v46 = vrot.slane %v2332_v23, %v8323_v42  ;;  %v3413_v41 = vcombine.low %v2323_v20, %v2330_v22  ;;  %v5932_v55 = vcombine.high %v2323_v20, %v2330_v22 }
 0x944   : > { %v2380_v40 = vrot.slane %v2366_v12, %v8318_v39  ;;  %v2381_v45 = vcombine.low %v2358_v58, %v2373_v37  ;;  %v2382_v33 = vcombine.high %v2358_v58, %v2373_v37  ;;  %v3207_v48 = vsel %vm2723_vm1, %v3147_v30, %v6497_v32 }
 0x945   : > { %v3429_v43 = vcombine.low %v2339_v56, %v2346_v46  ;;  %v5933_v2 = vcombine.high %v2339_v56, %v2346_v46  ;;  %v3420_v50 = vrot.slane %v3413_v41, %v8318_v39  ;;  %v3428_v10 = vrot.slane %v5932_v55, %v8318_v39  ;;  %v6541_v41 = vld [vmem:[%s8186_s2 + $0x28] sm:$0xff]   ;;  %v6542_v55 = vld [vmem:[%s8186_s2 + $0x30] sm:$0xff]  }
 0x946   : > { %v2397_v35 = vcombine.low %v2365_v27, %v2380_v40  ;;  %v2398_v44 = vcombine.high %v2365_v27, %v2380_v40  ;;  %v2389_v21 = vrot.slane %v2381_v45, %v8323_v42  ;;  %v2396_v19 = vrot.slane %v2382_v33, %v8323_v42  ;;  %v6540_v40 = vld [vmem:[%s8186_s2 + $0x20] sm:$0xff]  }
 0x947   : > { %v3436_v26 = vrot.slane %v3429_v43, %v8318_v39  ;;  %v3444_v47 = vrot.slane %v5933_v2, %v8318_v39  ;;  %v3208_v24 = vsel %vm2723_vm1, %v3197_v36, %v6498_v34  ;;  %v3445_v4 = vcombine.low %v3420_v50, %v3428_v10  ;;  %v6653_v31 = vpop.eup %6652 }
 0x948   : > { %v2405_v49 = vrot.slane %v2397_v35, %v8323_v42  ;;  %v2412_v54 = vrot.slane %v2398_v44, %v8323_v42  ;;  %v3463_v25 = vcombine.low %v2389_v21, %v2396_v19  ;;  %v5934_v30 = vcombine.high %v2389_v21, %v2396_v19  ;;  %v6655_v18 = vpop.eup %6654 }
 0x949   : > { %v4015_v57 = vpack.c.bf16 %v3208_v24, %v3207_v48  ;;  %v3453_v62 = vcombine.low %v3436_v26, %v3444_v47  ;;  %v3452_v15 = vrot.slane %v3445_v4, %v8323_v42  ;;  %v3664_v58 = vmul.f32 %v6651_v14, %v8654_v38  ;;  %v6536_v38 = vld [vmem:[%s8186_s2] sm:$0xff]  }
 0x94a   : > { %v3479_v59 = vcombine.low %v2405_v49, %v2412_v54  ;;  %v5935_v61 = vcombine.high %v2405_v49, %v2412_v54  ;;  %v3470_v0 = vrot.slane %v3463_v25, %v8318_v39  ;;  %v3478_v1 = vrot.slane %v5934_v30, %v8318_v39 }
 0x94b   : > { %v3460_v29 = vrot.slane %v3453_v62, %v8323_v42  ;;  %v3666_v27 = vmul.f32 %v6653_v31, %v8662_v53  ;;  %v3663_v46 = vmul.f32 %v6649_v3, %v8650_v13  ;;  %v3665_v32 = vmul.f32 %v6655_v18, %v8658_v51  ;;  %v6537_v53 = vld [vmem:[%s8186_s2 + $0x8] sm:$0xff]   ;;  %v6538_v13 = vld [vmem:[%s8186_s2 + $0x10] sm:$0xff]   ;;  %v6539_v51 = vld [vmem:[%s8186_s2 + $0x18] sm:$0xff]  }
 0x94c   : > { %v3486_v5 = vrot.slane %v3479_v59, %v8318_v39  ;;  %v3494_v7 = vrot.slane %v5935_v61, %v8318_v39  ;;  %v3495_v28 = vcombine.low %v3470_v0, %v3478_v1 }
 0x94d   : > { %v3461_v20 = vcombine.low %v3452_v15, %v3460_v29  ;;  %v3462_v63 = vcombine.high %v3452_v15, %v3460_v29  ;;  %v3667_v34 = vpack.c.bf16 %v3664_v58, %v3663_v46  ;;  %v3668_v37 = vpack.c.bf16 %v3666_v27, %v3665_v32 }
 0x94e   : > { %v3503_v36 = vcombine.low %v3486_v5, %v3494_v7  ;;  %v3502_v16 = vrot.slane %v3495_v28, %v8323_v42 }
 0x950   : > { %v3510_v17 = vrot.slane %v3503_v36, %v8323_v42 }
 0x952   : > { %v3511_v22 = vcombine.low %v3502_v16, %v3510_v17  ;;  %v3512_v23 = vcombine.high %v3502_v16, %v3510_v17 }
 0x954   : > { %v3513_v12 = vpack.c.bf16 %v3511_v22, %v3461_v20  ;;  %v3514_v56 = vpack.c.bf16 %v3512_v23, %v3462_v63 }
 0x956   : > { %6215 = vmatpush3.bf16.msra.mxu1 %v3513_v12  ;;  %6221 = vmatpush3.bf16.msra.mxu0 %v3514_v56 }
 0x957   : > { %6226 = vmatprep.subr.bf16.mxu1 %v6536_v38 }
 0x959   : > { %6217 = vmatmul.mubr.msk.bf16.vlgmr.msra.gmra.mrb[12].mxu1 %vm2832_vm2, %v3667_v34  ;;  %6223 = vmatmul.mubr.msk.bf16.vlgmr.msra.gmra.mrb[24].mxu0 %vm2832_vm2, %v3668_v37 }
 0x95a   : > { %6242 = vmatprep.mubr.bf16.mxu1 %v4015_v57  ;;  %4444 = vmatprep.mubr.bf16.mxu0 %v7404_v52 }
 0x95b   : > { %6227 = vmatpush3.bf16.msra.mxu1 %v6536_v38 }
 0x95c   : > { %6228 = vmatprep.subr.bf16.mxu1 %v6537_v53 }
 0x95f   : > { %6229 = vmatpush3.bf16.msra.mxu1 %v6537_v53 }
 0x960   : > { %6230 = vmatprep.subr.bf16.mxu1 %v6538_v13 }
 0x963   : > { %6231 = vmatpush3.bf16.msra.mxu1 %v6538_v13 }
 0x964   : > { %6232 = vmatprep.subr.bf16.mxu1 %v6539_v51 }
 0x967   : > { %6233 = vmatpush3.bf16.msra.mxu1 %v6539_v51 }
 0x968   : > { %6234 = vmatprep.subr.bf16.mxu1 %v6540_v40 }
 0x96b   : > { %6235 = vmatpush3.bf16.msra.mxu1 %v6540_v40 }
 0x96c   : > { %6236 = vmatprep.subr.bf16.mxu1 %v6541_v41 }
 0x96f   : > { %6237 = vmatpush3.bf16.msra.mxu1 %v6541_v41  ;;  %v6543_v41 = vld [vmem:[%s8186_s2 + $0x38] sm:$0xff]   ;;  %s9406_s2 = sld [smem:[#allocation71_spill]] (!%p6022_p13) }
 0x970   : > { %6238 = vmatprep.subr.bf16.mxu1 %v6542_v55 }
 0x973   : > { %6239 = vmatpush3.bf16.msra.mxu1 %v6542_v55 }
 0x974   : > { %6240 = vmatprep.subr.bf16.mxu1 %v6543_v41 }
 0x977   : > { %6241 = vmatpush3.bf16.msra.mxu1 %v6543_v41  ;;  %v6561_v41 = vld [vmem:[%s8202_s22 + $0x4c] ss:$16 sps:$4 sm:$0xff]  }
 0xa2c   : > { %v3706_v43 = vpop.f32.mrb[12].mxu1  ;;  %v3750_v2 = vpop.f32.mrb[24].mxu0 }
 0xa2d   : > { %v3757_v45 = vcombine.high %v3706_v43, %v7405_v6  ;;  %v3764_v33 = vrot.slane %v3706_v43, %v8318_v39  ;;  %v3772_v35 = vcombine.high %v3750_v2, %v7405_v6  ;;  %v3779_v44 = vrot.slane %v3750_v2, %v8318_v39  ;;  %v6218_v26 = vpop.f32.mrb[13].mxu1  ;;  %v6224_v47 = vpop.f32.mrb[25].mxu0 }
 0xa2e   : > { %v3709_v48 = vpop.f32.mrb[14].mxu1  ;;  %v3753_v21 = vpop.f32.mrb[26].mxu0 }
 0xa2f   : > { %v3771_v19 = vrot.slane %v3757_v45, %v8318_v39  ;;  %v3786_v49 = vrot.slane %v3772_v35, %v8318_v39  ;;  %v3787_v50 = vcombine.low %v3764_v33, %v3779_v44  ;;  %v3788_v10 = vcombine.high %v3764_v33, %v3779_v44  ;;  %v6219_v54 = vpop.f32.mrb[15].mxu1  ;;  %v6225_v24 = vpop.f32.mrb[27].mxu0 }
 0xa30   : > { %v3823_v25 = vcombine.high %v3709_v48, %v7405_v6  ;;  %v3830_v30 = vrot.slane %v3709_v48, %v8318_v39  ;;  %v3838_v57 = vcombine.high %v3753_v21, %v7405_v6  ;;  %v3845_v59 = vrot.slane %v3753_v21, %v8318_v39  ;;  %v5952_v24 = vld [vmem:[%s9400_s6] ss:$0 sm:$0xff] }
 0xa31   : > { %v3795_v61 = vrot.slane %v3787_v50, %v8323_v42  ;;  %v3802_v62 = vrot.slane %v3788_v10, %v8323_v42  ;;  %v3803_v0 = vcombine.low %v3771_v19, %v3786_v49  ;;  %v3804_v1 = vcombine.high %v3771_v19, %v3786_v49 }
 0xa32   : > { %v3837_v3 = vrot.slane %v3823_v25, %v8318_v39  ;;  %v3852_v4 = vrot.slane %v3838_v57, %v8318_v39  ;;  %v3853_v5 = vcombine.low %v3830_v30, %v3845_v59  ;;  %v3854_v7 = vcombine.high %v3830_v30, %v3845_v59  ;;  %v6704_v25 = vld [vmem:[%s8236_s19] sm:$0xff] }
 0xa33   : > { %v3811_v14 = vrot.slane %v3803_v0, %v8323_v42  ;;  %v3818_v28 = vrot.slane %v3804_v1, %v8323_v42  ;;  %v3889_v29 = vcombine.low %v3795_v61, %v3802_v62  ;;  %v5940_v6 = vcombine.high %v3795_v61, %v3802_v62  ;;  %v6705_v61 = vld [vmem:[%s8236_s19 + $0x10] sm:$0xff]  ;;  %v6706_v0 = vld [vmem:[%s8236_s19 + $0x8] sm:$0xff] }
 0xa34   : > { %v3861_v36 = vrot.slane %v3853_v5, %v8323_v42  ;;  %v3868_v31 = vrot.slane %v3854_v7, %v8323_v42  ;;  %v3869_v15 = vcombine.low %v3837_v3, %v3852_v4  ;;  %v3870_v16 = vcombine.high %v3837_v3, %v3852_v4  ;;  %v6707_v5 = vld [vmem:[%s8236_s19 + $0x18] sm:$0xff] }
 0xa35   : > { %v3896_v17 = vrot.slane %v3889_v29, %v8318_v39  ;;  %v3904_v18 = vrot.slane %v5940_v6, %v8318_v39  ;;  %v3905_v20 = vcombine.low %v3811_v14, %v3818_v28  ;;  %v5941_v22 = vcombine.high %v3811_v14, %v3818_v28  ;;  %v6544_v29 = vld [vmem:[%s8202_s22] ss:$16 sps:$4 sm:$0xff]   ;;  %v6546_v6 = vld [vmem:[%s8202_s22 + $0x4] ss:$16 sps:$4 sm:$0xff]  }
 0xa36   : > { %v3877_v63 = vrot.slane %v3869_v15, %v8323_v42  ;;  %v3884_v23 = vrot.slane %v3870_v16, %v8323_v42  ;;  %v3939_v58 = vcombine.low %v3861_v36, %v3868_v31  ;;  %v5942_v27 = vcombine.high %v3861_v36, %v3868_v31  ;;  %v6547_v36 = vld [vmem:[%s8202_s22 + $0x8] ss:$16 sps:$4 sm:$0xff]   ;;  %v6549_v31 = vld [vmem:[%s8202_s22 + $0xc] ss:$16 sps:$4 sm:$0xff]   ;;  %v6552_v15 = vld [vmem:[%s8202_s22 + $0x24] ss:$16 sps:$4 sm:$0xff]   ;;  %4412 = vmatprep.subr.bf16.mxu0 %v6546_v6 }
 0xa37   : > { %v3912_v12 = vrot.slane %v3905_v20, %v8318_v39  ;;  %v3920_v56 = vrot.slane %v5941_v22, %v8318_v39  ;;  %v3921_v46 = vcombine.low %v3896_v17, %v3904_v18  ;;  %v6555_v16 = vld [vmem:[%s8202_s22 + $0x2c] ss:$16 sps:$4 sm:$0xff]   ;;  %4465 = vmatprep.subr.bf16.mxu1 %v6549_v31  ;;  %4413 = vmatpush1.bf16.msra.mxu0 %v6544_v29  ;;  %v6550_v17 = vld [vmem:[%s8202_s22 + $0x20] ss:$16 sps:$4 sm:$0xff]   ;;  %v6553_v18 = vld [vmem:[%s8202_s22 + $0x28] ss:$16 sps:$4 sm:$0xff]  }
 0xa38   : > { %v3946_v32 = vrot.slane %v3939_v58, %v8318_v39  ;;  %v3954_v34 = vrot.slane %v5942_v27, %v8318_v39  ;;  %v3955_v37 = vcombine.low %v3877_v63, %v3884_v23  ;;  %v5943_v38 = vcombine.high %v3877_v63, %v3884_v23  ;;  %4414 = vmatprep.subr.bf16.mxu0 %v6552_v15 }
 0xa39   : > { %v3929_v53 = vcombine.low %v3912_v12, %v3920_v56  ;;  %v3928_v55 = vrot.slane %v3921_v46, %v8323_v42 }
 0xa3a   : > { %v3962_v13 = vrot.slane %v3955_v37, %v8318_v39  ;;  %v3970_v51 = vrot.slane %v5943_v38, %v8318_v39  ;;  %v3971_v40 = vcombine.low %v3946_v32, %v3954_v34 }
 0xa3b   : > { %v3936_v43 = vrot.slane %v3929_v53, %v8323_v42  ;;  %4415 = vmatpush1.bf16.msra.mxu0 %v6550_v17 }
 0xa3c   : > { %v3979_v2 = vcombine.low %v3962_v13, %v3970_v51  ;;  %v3978_v35 = vrot.slane %v3971_v40, %v8323_v42  ;;  %v6558_v40 = vld [vmem:[%s8202_s22 + $0x44] ss:$16 sps:$4 sm:$0xff]  }
 0xa3d   : > { %v3937_v45 = vcombine.low %v3928_v55, %v3936_v43  ;;  %v3938_v33 = vcombine.high %v3928_v55, %v3936_v43  ;;  %v6556_v55 = vld [vmem:[%s8202_s22 + $0x40] ss:$16 sps:$4 sm:$0xff]   ;;  %v6559_v43 = vld [vmem:[%s8202_s22 + $0x48] ss:$16 sps:$4 sm:$0xff]   ;;  %4416 = vmatprep.subr.bf16.mxu0 %v6558_v40 }
 0xa3e   : > { %v3986_v44 = vrot.slane %v3979_v2, %v8323_v42  ;;  %v6564_v2 = vld [vmem:[%s8202_s22 + $0x64] ss:$16 sps:$4 sm:$0xff]   ;;  %v6595_v40 = vld [vmem:[%s8212_s20 + $0x80] sm:$0xff]  }
 0xa3f   : > { %4417 = vmatpush1.bf16.msra.mxu0 %v6556_v55  ;;  %v6598_v55 = vld [vmem:[%s8212_s20 + $0x8] sm:$0xff]  }
 0xa40   : > { %v3988_v26 = vcombine.high %v3978_v35, %v3986_v44  ;;  %v3987_v47 = vcombine.low %v3978_v35, %v3986_v44  ;;  %v6565_v35 = vld [vmem:[%s8202_s22 + $0x68] ss:$16 sps:$4 sm:$0xff]   ;;  %4418 = vmatprep.subr.bf16.mxu0 %v6564_v2  ;;  %v6570_v44 = vld [vmem:[%s8202_s22 + $0x84] ss:$16 sps:$4 sm:$0xff]  }
 0xa41   : > { %v6600_v2 = vld [vmem:[%s8212_s20 + $0x50] sm:$0xff]  }
 0xa42   : > { %v6499_v39 = vpack.i.bf16 %v3988_v26, %v3938_v33  ;;  %v6562_v33 = vld [vmem:[%s8202_s22 + $0x60] ss:$16 sps:$4 sm:$0xff]   ;;  %v6573_v26 = vld [vmem:[%s8202_s22 + $0x8c] ss:$16 sps:$4 sm:$0xff]  }
 0xa43   : > { %4419 = vmatpush1.bf16.msra.mxu0 %v6562_v33  ;;  %v6602_v33 = vld [vmem:[%s8212_s20 + $0x10] sm:$0xff]  }
 0xa44   : > { %6500 = vrot.lane.b32.xlu1 %v6499_v39, %s7406_s14  ;;  %v6571_v39 = vld [vmem:[%s8202_s22 + $0x88] ss:$16 sps:$4 sm:$0xff]   ;;  %4420 = vmatprep.subr.bf16.mxu0 %v6570_v44  ;;  %v6604_v44 = vld [vmem:[%s8212_s20 + $0x58] sm:$0xff]  }
 0xab6   : > { %v6501_v48 = vpop.permute.xlu1 %6500 }
 0xab7   : > { %v6503_v21 = vunpack.i.h.bf16 %v6501_v48  ;;  %v6502_v19 = vunpack.i.l.bf16 %v6501_v48  ;;  %v6574_v48 = vld [vmem:[%s8202_s22 + $0xa0] ss:$16 sps:$4 sm:$0xff]  }
 0xab9   : > { %v3997_v49 = vsel %vm2723_vm1, %v3937_v45, %v6502_v19  ;;  %v3998_v50 = vsel %vm2723_vm1, %v3987_v47, %v6503_v21  ;;  %v6567_v45 = vld [vmem:[%s8202_s22 + $0x6c] ss:$16 sps:$4 sm:$0xff]   ;;  %v6568_v47 = vld [vmem:[%s8202_s22 + $0x80] ss:$16 sps:$4 sm:$0xff]   ;;  %v6576_v21 = vld [vmem:[%s8202_s22 + $0xa4] ss:$16 sps:$4 sm:$0xff]  }
 0xaba   : > { %v4016_v10 = vpack.c.bf16 %v3998_v50, %v3997_v49  ;;  %4421 = vmatpush1.bf16.msra.mxu0 %v6568_v47  ;;  %v6577_v19 = vld [vmem:[%s8202_s22 + $0xa8] ss:$16 sps:$4 sm:$0xff]   ;;  %v6579_v49 = vld [vmem:[%s8202_s22 + $0xac] ss:$16 sps:$4 sm:$0xff]   ;;  %v6582_v50 = vld [vmem:[%s8202_s22 + $0xc4] ss:$16 sps:$4 sm:$0xff]  }
 0xabb   : > { %4422 = vmatprep.subr.bf16.mxu0 %v6576_v21  ;;  %v6606_v47 = vld [vmem:[%s8212_s20 + $0x18] sm:$0xff]   ;;  %v6609_v21 = vld [vmem:[%s8212_s20 + $0xe0] sm:$0xff]  }
 0xabc   : > { %6243 = vmatmul.mubr.bf16.vlgmr.msra.gmra.mrb[16].mxu1 %v4016_v10  ;;  %v6585_v10 = vld [vmem:[%s8202_s22 + $0xcc] ss:$16 sps:$4 sm:$0xff]  }
 0xabd   : > { %4497 = vmatprep.mubr.bf16.mxu1 %v7404_v52  ;;  %4466 = vmatpush1.bf16.msra.mxu1 %v6547_v36  ;;  %v5953_v36 = vld [vmem:[%s9401_s24] ss:$0 sm:$0xff] }
 0xabe   : > { %4467 = vmatprep.subr.bf16.mxu1 %v6555_v16  ;;  %4423 = vmatpush1.bf16.msra.mxu0 %v6574_v48  ;;  %v6608_v48 = vld [vmem:[%s8212_s20 + $0x60] sm:$0xff]  }
 0xabf   : > { %4424 = vmatprep.subr.bf16.mxu0 %v6582_v50  ;;  %v6612_v50 = vld [vmem:[%s8212_s20 + $0x68] sm:$0xff]  }
 0xac1   : > { %4468 = vmatpush1.bf16.msra.mxu1 %v6553_v18 }
 0xac2   : > { %4469 = vmatprep.subr.bf16.mxu1 %v6561_v41  ;;  %v6597_v41 = vld [vmem:[%s8212_s20 + $0xc8] sm:$0xff]  }
 0xac5   : > { %4470 = vmatpush1.bf16.msra.mxu1 %v6559_v43  ;;  %v6599_v43 = vld [vmem:[%s8212_s20 + $0x88] sm:$0xff]  }
 0xac6   : > { %4471 = vmatprep.subr.bf16.mxu1 %v6567_v45  ;;  %v6601_v45 = vld [vmem:[%s8212_s20 + $0xd0] sm:$0xff]  }
 0xac9   : > { %4472 = vmatpush1.bf16.msra.mxu1 %v6565_v35  ;;  %v6603_v35 = vld [vmem:[%s8212_s20 + $0x90] sm:$0xff]  }
 0xaca   : > { %4473 = vmatprep.subr.bf16.mxu1 %v6573_v26  ;;  %v6605_v26 = vld [vmem:[%s8212_s20 + $0xd8] sm:$0xff]  }
 0xacd   : > { %4474 = vmatpush1.bf16.msra.mxu1 %v6571_v39  ;;  %v6607_v39 = vld [vmem:[%s8212_s20 + $0x98] sm:$0xff]  }
 0xace   : > { %4475 = vmatprep.subr.bf16.mxu1 %v6579_v49  ;;  %v6611_v49 = vld [vmem:[%s8212_s20 + $0xa0] sm:$0xff]  }
 0xad1   : > { %4476 = vmatpush1.bf16.msra.mxu1 %v6577_v19  ;;  %v6610_v19 = vld [vmem:[%s8212_s20 + $0x20] sm:$0xff]  }
 0xad2   : > { %4477 = vmatprep.subr.bf16.mxu1 %v6585_v10  ;;  %v6613_v10 = vld [vmem:[%s8212_s20 + $0xe8] sm:$0xff]  }
 0xb8f   : > { %v6244_v42 = vpop.f32.mrb[16].mxu1 }
 0xb90   : > { %v4099_v54 = vpop.f32.mrb[17].mxu1  ;;  %v4116_v62 = vadd.f32 %v6705_v61, %v6244_v42  ;;  %v6580_v42 = vld [vmem:[%s8202_s22 + $0xc0] ss:$16 sps:$4 sm:$0xff]  }
 0xb91   : > { %v4114_v30 = vadd.f32 %v6704_v25, %v4099_v54  ;;  %v6245_v57 = vpop.f32.mrb[18].mxu1  ;;  %v6583_v54 = vld [vmem:[%s8202_s22 + $0xc8] ss:$16 sps:$4 sm:$0xff]   ;;  %v6591_v25 = vld [vmem:[%s8202_s22 + $0xec] ss:$16 sps:$4 sm:$0xff]   ;;  %4425 = vmatpush1.bf16.msra.mxu0 %v6580_v42  ;;  %v6614_v42 = vld [vmem:[%s8212_s20 + $0x28] sm:$0xff]  }
 0xb92   : > { %v4102_v59 = vpop.f32.mrb[19].mxu1  ;;  %v4117_v7 = vadd.f32 %v6707_v5, %v6245_v57  ;;  %v4127_v14 = vadd.f32 %v5952_v24, %v4116_v62  ;;  %4478 = vmatpush1.bf16.msra.mxu1 %v6583_v54  ;;  %v6589_v57 = vld [vmem:[%s8202_s22 + $0xe8] ss:$16 sps:$4 sm:$0xff]   ;;  %v6615_v54 = vld [vmem:[%s8212_s20 + $0xa8] sm:$0xff]  }
 0xb93   : > { %v4115_v1 = vadd.f32 %v6706_v0, %v4102_v59  ;;  %v4125_v3 = vadd.f32 %v5952_v24, %v4114_v30  ;;  %v6586_v30 = vld [vmem:[%s8202_s22 + $0xe0] ss:$16 sps:$4 sm:$0xff]   ;;  %4479 = vmatprep.subr.bf16.mxu1 %v6591_v25  ;;  %v6617_v25 = vld [vmem:[%s8212_s20 + $0xf0] sm:$0xff]  }
 0xb94   : > { %v4128_v28 = vadd.f32 %v5952_v24, %v4117_v7 }
 0xb95   : > { %4131 = vadd.xlane.f32.xlu0 %v4125_v3  ;;  %v4126_v4 = vadd.f32 %v5952_v24, %v4115_v1  ;;  %v6588_v24 = vld [vmem:[%s8202_s22 + $0xe4] ss:$16 sps:$4 sm:$0xff]  }
 0xb96   : > { %4426 = vmatprep.subr.bf16.mxu0 %v6588_v24  ;;  %4480 = vmatpush1.bf16.msra.mxu1 %v6589_v57  ;;  %v6616_v24 = vld [vmem:[%s8212_s20 + $0x70] sm:$0xff]  }
 0xb97   : > { %4133 = vadd.xlane.f32.xlu1 %v4126_v4  ;;  %4427 = vmatpush1.bf16.msra.mxu0 %v6586_v30  ;;  %v6618_v30 = vld [vmem:[%s8212_s20 + $0x30] sm:$0xff]  }
 0xb98   : > { %v6619_v57 = vld [vmem:[%s8212_s20 + $0xb0] sm:$0xff]  }
 0xb99   : > { %4135 = vadd.xlane.f32.xlu0 %v4127_v14 }
 0xb9d   : > { %4137 = vadd.xlane.f32.xlu0 %v4128_v28 }
 0xc22   : > { %v4132_v20 = vpop.xlane.xlu0 %4131 }
 0xc23   : > { %v4140_v22 = vmul.f32 0.0078125, %v4132_v20  ;;  %v5954_v20 = vld [vmem:[%s9402_s16] ss:$0 sm:$0xff] }
 0xc24   : > { %v4134_v63 = vpop.xlane.xlu1 %4133 }
 0xc25   : > { %v8780_v23 = vsub.f32 %v4125_v3, %v4140_v22  ;;  %v4141_v58 = vmul.f32 0.0078125, %v4134_v63 }
 0xc26   : > { %v4136_v27 = vpop.xlane.xlu0 %4135 }
 0xc27   : > { %v8782_v12 = vsub.f32 %v4126_v4, %v4141_v58  ;;  %v4142_v56 = vmul.f32 0.0078125, %v4136_v27  ;;  %v4148_v46 = vmul.f32 %v8780_v23, %v8780_v23 }
 0xc29   : > { %v8786_v32 = vsub.f32 %v4127_v14, %v4142_v56  ;;  %4152 = vadd.xlane.f32.xlu1 %v4148_v46  ;;  %v4149_v34 = vmul.f32 %v8782_v12, %v8782_v12 }
 0xc2a   : > { %v4138_v37 = vpop.xlane.xlu0 %4137 }
 0xc2b   : > { %v4143_v38 = vmul.f32 0.0078125, %v4138_v37  ;;  %4154 = vadd.xlane.f32.xlu0 %v4149_v34  ;;  %v4150_v53 = vmul.f32 %v8786_v32, %v8786_v32 }
 0xc2d   : > { %v8792_v13 = vsub.f32 %v4128_v28, %v4143_v38  ;;  %4156 = vadd.xlane.f32.xlu1 %v4150_v53  ;;  %v6592_v53 = vld [vmem:[%s8212_s20 + $0x40] sm:$0xff]  }
 0xc2e   : > { %6093 = vmatprep.subr.bf16.mxu0 %v6592_v53 }
 0xc2f   : > { %v4151_v51 = vmul.f32 %v8792_v13, %v8792_v13 }
 0xc31   : > { %4158 = vadd.xlane.f32.xlu0 %v4151_v51  ;;  %v6594_v51 = vld [vmem:[%s8212_s20] sm:$0xff]  }
 0xcb6   : > { %v4153_v59 = vpop.xlane.xlu1 %4152 }
 0xcb7   : > { %v4160_v61 = vmul.f32 0.0078125, %v4153_v59  ;;  %v6620_v59 = vld [vmem:[%s8212_s20 + $0x78] sm:$0xff]  }
 0xcb8   : > { %v4155_v62 = vpop.xlane.xlu0 %4154 }
 0xcb9   : > { %v4164_v0 = vadd.f32 1e-12, %v4160_v61  ;;  %v4161_v1 = vmul.f32 0.0078125, %v4155_v62  ;;  %v6621_v61 = vld [vmem:[%s8212_s20 + $0xf8] sm:$0xff]  }
 0xcba   : > { %v4157_v3 = vpop.xlane.xlu1 %4156  ;;  %v6622_v62 = vld [vmem:[%s8212_s20 + $0x38] sm:$0xff]  }
 0xcbb   : > { %6656 = vrsqrt.f32 %v4164_v0  ;;  %v4165_v4 = vadd.f32 1e-12, %v4161_v1  ;;  %v4162_v5 = vmul.f32 0.0078125, %v4157_v3  ;;  %v6623_v0 = vld [vmem:[%s8212_s20 + $0xb8] sm:$0xff]  }
 0xcbc   : > { %v4230_v1 = vld [vmem:[%s8209_s27] sm:$0xf] }
 0xcbd   : > { %6658 = vrsqrt.f32 %v4165_v4  ;;  %v4166_v7 = vadd.f32 1e-12, %v4162_v5  ;;  %v8876_v3 = vrot.slane %v4230_v1, %v8273_v9  ;;  %v8880_v4 = vrot.slane %v4230_v1, %v1342_v60 }
 0xcbe   : > { %v4159_v14 = vpop.xlane.xlu0 %4158  ;;  %v4246_v5 = vsub.s32 3, %v8270_v8 }
 0xcbf   : > { %6660 = vrsqrt.f32 %v4166_v7  ;;  %v4163_v28 = vmul.f32 0.0078125, %v4159_v14 }
 0xcc0   : > { %v8889_v9 = vrot.slane %v4230_v1, %v4246_v5 }
 0xcc1   : > { %v4167_v29 = vadd.f32 1e-12, %v4163_v28  ;;  %v8885_v28 = vrot.slane %v4230_v1, %v1338_v11 }
 0xcc3   : > { %6662 = vrsqrt.f32 %v4167_v29 }
 0xcc5   : > { %v6657_v6 = vpop.eup %6656 }
 0xcc6   : > { %v4172_v31 = vmul.f32 %v6657_v6, %v8780_v23 }
 0xcc7   : > { %v6659_v15 = vpop.eup %6658 }
 0xcc8   : > { %v4173_v16 = vmul.f32 %v6659_v15, %v8782_v12  ;;  %v4182_v17 = vmul.f32 %v5953_v36, %v4172_v31 }
 0xcc9   : > { %v6661_v18 = vpop.eup %6660 }
 0xcca   : > { %v4183_v22 = vmul.f32 %v5953_v36, %v4173_v16  ;;  %v8826_v63 = vadd.f32 %v5954_v20, %v4182_v17  ;;  %v4174_v27 = vmul.f32 %v6661_v18, %v8786_v32 }
 0xccc   : > { %v8828_v58 = vadd.f32 %v5954_v20, %v4183_v22  ;;  %v4184_v46 = vmul.f32 %v5953_v36, %v4174_v27 }
 0xccd   : > { %v6663_v56 = vpop.eup %6662 }
 0xcce   : > { %v4228_v23 = vpack.c.bf16 %v8828_v58, %v8826_v63  ;;  %v4175_v12 = vmul.f32 %v6663_v56, %v8792_v13  ;;  %v8838_v37 = vadd.f32 %v5954_v20, %v4184_v46  ;;  %v6593_v13 = vld [vmem:[%s8212_s20 + $0xc0] sm:$0xff]  }
 0xccf   : > { %6121 = vmatprep.subr.bf16.mxu1 %v6593_v13 }
 0xcd0   : > { %4445 = vmatmul.mubr.bf16.vlgmr.msra.gmra.mrb[28].mxu0 %v4228_v23  ;;  %4498 = vmatmul.mubr.bf16.vlgmr.msra.gmra.mrb[20].mxu1 %v4228_v23  ;;  %v4185_v34 = vmul.f32 %v5953_v36, %v4175_v12 }
 0xcd1   : > { %4454 = vmatprep.mubr.bf16.mxu0 %v7404_v52  ;;  %4507 = vmatprep.mubr.bf16.mxu1 %v7404_v52  ;;  %v6596_v52 = vld [vmem:[%s8212_s20 + $0x48] sm:$0xff]   ;;  %s9407_s20 = smov (!%p6022_p13), %s9406_s2 }
 0xcd2   : > { %v8836_v32 = vadd.f32 %v5954_v20, %v4185_v34  ;;  %6094 = vmatpush3.bf16.msra.mxu0 %v6594_v51  ;;  %6122 = vmatpush3.bf16.msra.mxu1 %v6595_v40 }
 0xcd3   : > { %6095 = vmatprep.subr.bf16.mxu0 %v6596_v52  ;;  %6123 = vmatprep.subr.bf16.mxu1 %v6597_v41 }
 0xcd4   : > { %v4229_v38 = vpack.c.bf16 %v8836_v32, %v8838_v37 }
 0xcd6   : > { %6096 = vmatpush3.bf16.msra.mxu0 %v6598_v55  ;;  %6124 = vmatpush3.bf16.msra.mxu1 %v6599_v43 }
 0xcd7   : > { %6097 = vmatprep.subr.bf16.mxu0 %v6600_v2  ;;  %6125 = vmatprep.subr.bf16.mxu1 %v6601_v45 }
 0xcd8   : > { %4455 = vmatmul.mubr.bf16.gmra.mrb[32].mxu0 %v4229_v38  ;;  %4508 = vmatmul.mubr.bf16.gmra.mrb[24].mxu1 %v4229_v38 }
 0xcda   : > { %6098 = vmatpush3.bf16.msra.mxu0 %v6602_v33  ;;  %6126 = vmatpush3.bf16.msra.mxu1 %v6603_v35 }
 0xcdb   : > { %6099 = vmatprep.subr.bf16.mxu0 %v6604_v44  ;;  %6127 = vmatprep.subr.bf16.mxu1 %v6605_v26 }
 0xcde   : > { %6100 = vmatpush3.bf16.msra.mxu0 %v6606_v47  ;;  %6128 = vmatpush3.bf16.msra.mxu1 %v6607_v39 }
 0xcdf   : > { %6101 = vmatprep.subr.bf16.mxu0 %v6608_v48  ;;  %6129 = vmatprep.subr.bf16.mxu1 %v6609_v21 }
 0xce2   : > { %6102 = vmatpush3.bf16.msra.mxu0 %v6610_v19  ;;  %6130 = vmatpush3.bf16.msra.mxu1 %v6611_v49 }
 0xce3   : > { %6103 = vmatprep.subr.bf16.mxu0 %v6612_v50  ;;  %6131 = vmatprep.subr.bf16.mxu1 %v6613_v10 }
 0xce6   : > { %6104 = vmatpush3.bf16.msra.mxu0 %v6614_v42  ;;  %6132 = vmatpush3.bf16.msra.mxu1 %v6615_v54 }
 0xce7   : > { %6105 = vmatprep.subr.bf16.mxu0 %v6616_v24  ;;  %6133 = vmatprep.subr.bf16.mxu1 %v6617_v25 }
 0xcea   : > { %6106 = vmatpush3.bf16.msra.mxu0 %v6618_v30  ;;  %6134 = vmatpush3.bf16.msra.mxu1 %v6619_v57 }
 0xceb   : > { %6107 = vmatprep.subr.bf16.mxu0 %v6620_v59  ;;  %6135 = vmatprep.subr.bf16.mxu1 %v6621_v61 }
 0xcee   : > { %6108 = vmatpush3.bf16.msra.mxu0 %v6622_v62  ;;  %6136 = vmatpush3.bf16.msra.mxu1 %v6623_v0 }
 0xda3   : > { %v4446_v7 = vpop.f32.mrb[28].mxu0  ;;  %v4499_v14 = vpop.f32.mrb[20].mxu1 }
 0xda4   : > { %v4447_v29 = vadd.f32 %v4446_v7, %v8876_v3  ;;  %v4500_v6 = vadd.f32 %v4499_v14, %v8880_v4  ;;  %v4448_v36 = vpop.f32.mrb[29].mxu0  ;;  %v4501_v31 = vpop.f32.mrb[21].mxu1 }
 0xda5   : > { %v4450_v15 = vpop.f32.mrb[30].mxu0  ;;  %v4503_v16 = vpop.f32.mrb[22].mxu1  ;;  %v8892_v18 = vadd.f32 %v4448_v36, %v8885_v28  ;;  %v8902_v46 = vadd.f32 %v4501_v31, %v8889_v9 }
 0xda6   : > { %v4534_v60 = vmul.f32 0.044715, %v4447_v29  ;;  %v4536_v17 = vmul.f32 0.044715, %v4500_v6  ;;  %v4451_v20 = vadd.f32 %v4450_v15, %v8876_v3  ;;  %v8896_v11 = vadd.f32 %v4503_v16, %v8880_v4  ;;  %v4452_v22 = vpop.f32.mrb[31].mxu0  ;;  %v4505_v27 = vpop.f32.mrb[23].mxu1 }
 0xda7   : > { %v8899_v12 = vadd.f32 %v4452_v22, %v8885_v28  ;;  %v8905_v38 = vadd.f32 %v4505_v27, %v8889_v9  ;;  %v8907_v53 = vmul.f32 0.5, %v4447_v29  ;;  %v4535_v52 = vmul.f32 0.044715, %v8892_v18 }
 0xda8   : > { %v4550_v56 = vmul.f32 %v4534_v60, %v4447_v29  ;;  %v4552_v23 = vmul.f32 %v4536_v17, %v4500_v6  ;;  %v4538_v34 = vmul.f32 0.044715, %v4451_v20  ;;  %v4540_v40 = vmul.f32 0.044715, %v8896_v11 }
 0xda9   : > { %v4539_v55 = vmul.f32 0.044715, %v8899_v12  ;;  %v8912_v33 = vmul.f32 0.5, %v4500_v6  ;;  %v4537_v39 = vmul.f32 0.044715, %v8902_v46  ;;  %v4551_v30 = vmul.f32 %v4535_v52, %v8892_v18 }
 0xdaa   : > { %v4566_v13 = vmul.f32 %v4550_v56, %v4447_v29  ;;  %v4568_v51 = vmul.f32 %v4552_v23, %v4500_v6  ;;  %v4554_v41 = vmul.f32 %v4538_v34, %v4451_v20  ;;  %v4556_v44 = vmul.f32 %v4540_v40, %v8896_v11 }
 0xdab   : > { %v4456_v43 = vpop.f32.mrb[32].mxu0  ;;  %v4509_v2 = vpop.f32.mrb[24].mxu1  ;;  %v4541_v21 = vmul.f32 0.044715, %v8905_v38  ;;  %v4555_v59 = vmul.f32 %v4539_v55, %v8899_v12  ;;  %v4553_v5 = vmul.f32 %v4537_v39, %v8902_v46  ;;  %v4567_v15 = vmul.f32 %v4551_v30, %v8892_v18 }
 0xdac   : > { %v4582_v45 = vadd.f32 %v4566_v13, %v4447_v29  ;;  %v4584_v35 = vadd.f32 %v4568_v51, %v4500_v6  ;;  %v4458_v26 = vpop.f32.mrb[33].mxu0  ;;  %v4511_v47 = vpop.f32.mrb[25].mxu1  ;;  %v4570_v48 = vmul.f32 %v4554_v41, %v4451_v20  ;;  %v8918_v19 = vadd.f32 %v4456_v43, %v8876_v3 }
 0xdad   : > { %v4460_v49 = vpop.f32.mrb[34].mxu0  ;;  %v4513_v50 = vpop.f32.mrb[26].mxu1  ;;  %v4572_v54 = vmul.f32 %v4556_v44, %v8896_v11  ;;  %v8924_v61 = vadd.f32 %v4509_v2, %v8880_v4  ;;  %v8929_v1 = vadd.f32 %v4458_v26, %v8885_v28  ;;  %v4557_v14 = vmul.f32 %v4541_v21, %v8905_v38 }
 0xdae   : > { %v4598_v10 = vmul.f32 0.7978846, %v4582_v45  ;;  %v4600_v42 = vmul.f32 0.7978846, %v4584_v35  ;;  %v4462_v24 = vpop.f32.mrb[35].mxu0  ;;  %v4515_v25 = vpop.f32.mrb[27].mxu1  ;;  %v4586_v57 = vadd.f32 %v4570_v48, %v4451_v20  ;;  %v8935_v36 = vadd.f32 %v4511_v47, %v8889_v9 }
 0xdaf   : > { %v4588_v62 = vadd.f32 %v4572_v54, %v8896_v11  ;;  %v4542_v0 = vmul.f32 0.044715, %v8918_v19  ;;  %v4543_v6 = vmul.f32 0.044715, %v8929_v1  ;;  %v8938_v31 = vadd.f32 %v4460_v49, %v8876_v3 }
 0xdb0   : > { %6664 = vtanh.f32 %v4598_v10  ;;  %v4602_v7 = vmul.f32 0.7978846, %v4586_v57  ;;  %v4571_v16 = vmul.f32 %v4555_v59, %v8899_v12  ;;  %v8943_v60 = vadd.f32 %v4513_v50, %v8880_v4 }
 0xdb1   : > { %6666 = vtanh.f32 %v4600_v42  ;;  %v4604_v29 = vmul.f32 0.7978846, %v4588_v62  ;;  %v4558_v17 = vmul.f32 %v4542_v0, %v8918_v19  ;;  %v4544_v22 = vmul.f32 0.044715, %v8924_v61 }
 0xdb2   : > { %6668 = vtanh.f32 %v4602_v7  ;;  %v4545_v27 = vmul.f32 0.044715, %v8935_v36  ;;  %v4522_v56 = vmul.f32 0.5, %v4451_v20  ;;  %v4559_v23 = vmul.f32 %v4543_v6, %v8929_v1 }
 0xdb3   : > { %6670 = vtanh.f32 %v4604_v29  ;;  %v8950_v3 = vadd.f32 %v4462_v24, %v8885_v28  ;;  %v8953_v34 = vadd.f32 %v4515_v25, %v8889_v9  ;;  %v4569_v13 = vmul.f32 %v4553_v5, %v8902_v46 }
 0xdb4   : > { %v4573_v4 = vmul.f32 %v4557_v14, %v8905_v38  ;;  %v4546_v51 = vmul.f32 0.044715, %v8938_v31  ;;  %v4548_v40 = vmul.f32 0.044715, %v8943_v60  ;;  %v4561_v52 = vmul.f32 %v4545_v27, %v8935_v36 }
 0xdb5   : > { %v4547_v20 = vmul.f32 0.044715, %v8950_v3  ;;  %v4549_v41 = vmul.f32 0.044715, %v8953_v34  ;;  %v4583_v28 = vadd.f32 %v4567_v15, %v8892_v18  ;;  %v4524_v55 = vmul.f32 0.5, %v8896_v11 }
 0xdb6   : > { %v4574_v9 = vmul.f32 %v4558_v17, %v8918_v19  ;;  %v4560_v43 = vmul.f32 %v4544_v22, %v8924_v61  ;;  %v4587_v2 = vadd.f32 %v4571_v16, %v8899_v12  ;;  %v4575_v45 = vmul.f32 %v4559_v23, %v8929_v1 }
 0xdb7   : > { %v4563_v35 = vmul.f32 %v4547_v20, %v8950_v3  ;;  %v4565_v44 = vmul.f32 %v4549_v41, %v8953_v34  ;;  %v4599_v26 = vmul.f32 0.7978846, %v4583_v28  ;;  %v4562_v39 = vmul.f32 %v4546_v51, %v8938_v31 }
 0xdb8   : > { %v4603_v48 = vmul.f32 0.7978846, %v4587_v2  ;;  %v4585_v21 = vadd.f32 %v4569_v13, %v8902_v46  ;;  %v4589_v11 = vadd.f32 %v4573_v4, %v8905_v38  ;;  %v4577_v50 = vmul.f32 %v4561_v52, %v8935_v36 }
 0xdb9   : > { %v4564_v10 = vmul.f32 %v4548_v40, %v8943_v60  ;;  %v4579_v42 = vmul.f32 %v4563_v35, %v8950_v3  ;;  %6672 = vtanh.f32 %v4599_v26  ;;  %v4576_v57 = vmul.f32 %v4560_v43, %v8924_v61 }
 0xdba   : > { %v6665_v47 = vpop.eup %6664  ;;  %6674 = vtanh.f32 %v4603_v48  ;;  %v4601_v54 = vmul.f32 0.7978846, %v4585_v21  ;;  %v4605_v24 = vmul.f32 0.7978846, %v4589_v11  ;;  %v4581_v59 = vmul.f32 %v4565_v44, %v8953_v34 }
 0xdbb   : > { %v6667_v49 = vpop.eup %6666  ;;  %v4630_v25 = vadd.f32 1.0, %v6665_v47  ;;  %v4591_v0 = vadd.f32 %v4575_v45, %v8929_v1  ;;  %v4578_v7 = vmul.f32 %v4562_v39, %v8938_v31  ;;  %v4595_v29 = vadd.f32 %v4579_v42, %v8950_v3 }
 0xdbc   : > { %v6669_v30 = vpop.eup %6668  ;;  %v4632_v62 = vadd.f32 1.0, %v6667_v49  ;;  %6676 = vtanh.f32 %v4601_v54  ;;  %v4580_v6 = vmul.f32 %v4564_v10, %v8943_v60  ;;  %v4593_v23 = vadd.f32 %v4577_v50, %v8935_v36 }
 0xdbd   : > { %v6671_v5 = vpop.eup %6670  ;;  %v4634_v14 = vadd.f32 1.0, %v6669_v30  ;;  %6678 = vtanh.f32 %v4605_v24  ;;  %v4607_v16 = vmul.f32 0.7978846, %v4591_v0  ;;  %v4646_v17 = vmul.f32 %v4630_v25, %v8907_v53 }
 0xdbe   : > { %v4636_v15 = vadd.f32 1.0, %v6671_v5  ;;  %v4611_v27 = vmul.f32 0.7978846, %v4595_v29  ;;  %v4648_v13 = vmul.f32 %v4632_v62, %v8912_v33  ;;  %v4597_v51 = vadd.f32 %v4581_v59, %v8953_v34 }
 0xdbf   : > { %v4650_v22 = vmul.f32 %v4634_v14, %v4522_v56  ;;  %6680 = vtanh.f32 %v4607_v16  ;;  %v4609_v52 = vmul.f32 0.7978846, %v4593_v23  ;;  %v4590_v28 = vadd.f32 %v4574_v9, %v8918_v19 }
 0xdc0   : > { %v4652_v4 = vmul.f32 %v4636_v15, %v4524_v55  ;;  %6682 = vtanh.f32 %v4611_v27  ;;  %v4613_v41 = vmul.f32 0.7978846, %v4597_v51  ;;  %v4594_v43 = vadd.f32 %v4578_v7, %v8938_v31 }
 0xdc1   : > { %v4726_v40 = vpack.c.bf16 %v4650_v22, %v4646_v17  ;;  %6684 = vtanh.f32 %v4609_v52  ;;  %v4592_v53 = vadd.f32 %v4576_v57, %v8924_v61  ;;  %v4606_v2 = vmul.f32 0.7978846, %v4590_v28 }
 0xdc2   : > { %v4728_v20 = vpack.c.bf16 %v4652_v4, %v4648_v13  ;;  %6686 = vtanh.f32 %v4613_v41  ;;  %v4610_v33 = vmul.f32 0.7978846, %v4594_v43  ;;  %v4596_v55 = vadd.f32 %v4580_v6, %v8943_v60 }
 0xdc3   : > { %v6673_v56 = vpop.eup %6672  ;;  %v4519_v35 = vmul.f32 0.5, %v8892_v18  ;;  %v4608_v26 = vmul.f32 0.7978846, %v4592_v53  ;;  %v4523_v47 = vmul.f32 0.5, %v8899_v12  ;;  %6688 = vtanh.f32 %v4606_v2 }
 0xdc4   : > { %v6675_v45 = vpop.eup %6674  ;;  %v4631_v44 = vadd.f32 1.0, %v6673_v56  ;;  %v4612_v9 = vmul.f32 0.7978846, %v4596_v55  ;;  %6690 = vtanh.f32 %v4610_v33  ;;  %v4521_v10 = vmul.f32 0.5, %v8902_v46 }
 0xdc5   : > { %v4635_v39 = vadd.f32 1.0, %v6675_v45  ;;  %6692 = vtanh.f32 %v4608_v26  ;;  %v4525_v42 = vmul.f32 0.5, %v8905_v38  ;;  %v4527_v59 = vmul.f32 0.5, %v8929_v1 }
 0xdc6   : > { %v6677_v48 = vpop.eup %6676  ;;  %v4647_v11 = vmul.f32 %v4631_v44, %v4519_v35  ;;  %6694 = vtanh.f32 %v4612_v9  ;;  %v4531_v62 = vmul.f32 0.5, %v8950_v3  ;;  %v4529_v6 = vmul.f32 0.5, %v8935_v36 }
 0xdc7   : > { %v6679_v21 = vpop.eup %6678  ;;  %v4651_v49 = vmul.f32 %v4635_v39, %v4523_v47  ;;  %v4633_v50 = vadd.f32 1.0, %v6677_v48  ;;  %v4533_v15 = vmul.f32 0.5, %v8953_v34  ;;  %v4526_v4 = vmul.f32 0.5, %v8918_v19 }
 0xdc8   : > { %v4637_v54 = vadd.f32 1.0, %v6679_v21  ;;  %v4530_v51 = vmul.f32 0.5, %v8938_v31  ;;  %v4528_v36 = vmul.f32 0.5, %v8924_v61 }
 0xdc9   : > { %v6681_v18 = vpop.eup %6680  ;;  %v4727_v24 = vpack.c.bf16 %v4651_v49, %v4647_v11  ;;  %v4649_v12 = vmul.f32 %v4633_v50, %v4521_v10  ;;  %v6019_v11 = vld [vmem:[%s9403_s11] ss:$0 sm:$0xff] }
 0xdca   : > { %v6683_v25 = vpop.eup %6682  ;;  %v4653_v30 = vmul.f32 %v4637_v54, %v4525_v42  ;;  %v4639_v57 = vadd.f32 1.0, %v6681_v18 }
 0xdcb   : > { %4958 = vmatprep.mubr.bf16.mxu0 %v4727_v24  ;;  %v4643_v0 = vadd.f32 1.0, %v6683_v25  ;;  %v6685_v5 = vpop.eup %6684 }
 0xdcc   : > { %v4729_v7 = vpack.c.bf16 %v4653_v30, %v4649_v12  ;;  %4959 = vmatmul.mubr.bf16.vlgmr.msra.gmra.mrb[36].mxu0 %v4726_v40  ;;  %v6687_v46 = vpop.eup %6686  ;;  %v4655_v14 = vmul.f32 %v4639_v57, %v4527_v59  ;;  %v4641_v29 = vadd.f32 1.0, %v6685_v5 }
 0xdcd   : > { %v4659_v38 = vmul.f32 %v4643_v0, %v4531_v62  ;;  %v4645_v16 = vadd.f32 1.0, %v6687_v46  ;;  %v6689_v17 = vpop.eup %6688 }
 0xdce   : > { %5007 = vmatprep.mubr.bf16.mxu1 %v4729_v7  ;;  %v6691_v1 = vpop.eup %6690  ;;  %v4657_v27 = vmul.f32 %v4641_v29, %v4529_v6  ;;  %v4638_v23 = vadd.f32 1.0, %v6689_v17 }
 0xdcf   : > { %5008 = vmatmul.mubr.bf16.vlgmr.msra.gmra.mrb[28].mxu1 %v4728_v20  ;;  %v4731_v22 = vpack.c.bf16 %v4659_v38, %v4655_v14  ;;  %v4661_v3 = vmul.f32 %v4645_v16, %v4533_v15  ;;  %v6693_v13 = vpop.eup %6692  ;;  %v4642_v40 = vadd.f32 1.0, %v6691_v1  ;;  %v4532_v20 = vmul.f32 0.5, %v8943_v60 }
 0xdd0   : > { %v6695_v52 = vpop.eup %6694  ;;  %v4640_v34 = vadd.f32 1.0, %v6693_v13  ;;  %v4654_v28 = vmul.f32 %v4638_v23, %v4526_v4 }
 0xdd1   : > { %4966 = vmatprep.mubr.bf16.mxu0 %v4731_v22  ;;  %v4733_v41 = vpack.c.bf16 %v4661_v3, %v4657_v27  ;;  %v4658_v43 = vmul.f32 %v4642_v40, %v4530_v51  ;;  %v4644_v53 = vadd.f32 1.0, %v6695_v52 }
 0xdd2   : > { %v4656_v2 = vmul.f32 %v4640_v34, %v4528_v36 }
 0xdd3   : > { %5015 = vmatprep.mubr.bf16.mxu1 %v4733_v41  ;;  %v4730_v56 = vpack.c.bf16 %v4658_v43, %v4654_v28  ;;  %v4660_v33 = vmul.f32 %v4644_v53, %v4532_v20 }
 0xdd5   : > { %4967 = vmatmul.mubr.bf16.gmra.mrb[40].mxu0 %v4730_v56  ;;  %v4732_v19 = vpack.c.bf16 %v4660_v33, %v4656_v2 }
 0xdd7   : > { %5016 = vmatmul.mubr.bf16.gmra.mrb[32].mxu1 %v4732_v19 }
 0xe9f   : > { %v6109_v31 = vpop.f32.mrb[36].mxu0 }
 0xea0   : > { %v6110_v55 = vpop.f32.mrb[37].mxu0 }
 0xea1   : > { %v6111_v45 = vadd.f32 %v6110_v55, %v6109_v31  ;;  %v6112_v35 = vpop.f32.mrb[38].mxu0 }
 0xea2   : > { %v6137_v44 = vpop.f32.mrb[28].mxu1  ;;  %v6113_v61 = vpop.f32.mrb[39].mxu0 }
 0xea3   : > { %v6138_v26 = vpop.f32.mrb[29].mxu1  ;;  %v6114_v47 = vadd.f32 %v6113_v61, %v6112_v35 }
 0xea4   : > { %v6139_v39 = vadd.f32 %v6138_v26, %v6137_v44  ;;  %v6140_v9 = vpop.f32.mrb[30].mxu1  ;;  %v6021_v26 = vld [vmem:[%s1053_s21] ss:$0 sm:$0xff] }
 0xea5   : > { %v6141_v60 = vpop.f32.mrb[31].mxu1 }
 0xea6   : > { %v5010_v48 = vadd.f32 %v6139_v39, %v6111_v45  ;;  %v6142_v21 = vadd.f32 %v6141_v60, %v6140_v9  ;;  %v6020_v45 = vld [vmem:[%s9404_s23] ss:$0 sm:$0xff] }
 0xea8   : > { %v5013_v49 = vadd.f32 %v6142_v21, %v6114_v47  ;;  %v5024_v50 = vadd.f32 %v5010_v48, %v8826_v63  ;;  %v6115_v10 = vpop.f32.mrb[40].mxu0 }
 0xea9   : > { %v6116_v18 = vpop.f32.mrb[41].mxu0 }
 0xeaa   : > { %v5035_v42 = vadd.f32 %v6019_v11, %v5024_v50  ;;  %v5025_v54 = vadd.f32 %v5013_v49, %v8828_v58  ;;  %v6143_v24 = vpop.f32.mrb[32].mxu1  ;;  %v6117_v25 = vadd.f32 %v6116_v18, %v6115_v10  ;;  %v6118_v12 = vpop.f32.mrb[42].mxu0 }
 0xeab   : > { %v6144_v57 = vpop.f32.mrb[33].mxu1  ;;  %v6119_v59 = vpop.f32.mrb[43].mxu0 }
 0xeac   : > { %5041 = vadd.xlane.f32.xlu1 %v5035_v42  ;;  %v5036_v30 = vadd.f32 %v6019_v11, %v5025_v54  ;;  %v6145_v62 = vadd.f32 %v6144_v57, %v6143_v24  ;;  %v6146_v0 = vpop.f32.mrb[34].mxu1  ;;  %v6120_v5 = vadd.f32 %v6119_v59, %v6118_v12  ;;  %v6710_v24 = vld [vmem:[%s9406_s2] sm:$0xff] (!%p6022_p13)   ;;  %v6711_v12 = vld [vmem:[%s9407_s20 + $0x8] sm:$0xff] (!%p6022_p13)   ;;  %v6712_v57 = vld [vmem:[%s9407_s20 + $0x10] sm:$0xff] (!%p6022_p13)  }
 0xead   : > { %v6147_v7 = vpop.f32.mrb[35].mxu1  ;;  %v5269_v59 = vld [vmem:[%s8233_s4 + $0x10] sm:$0xff] (!%p6022_p13) }
 0xeae   : > { %5043 = vadd.xlane.f32.xlu0 %v5036_v30  ;;  %v5018_v46 = vadd.f32 %v6145_v62, %v6117_v25  ;;  %v6148_v14 = vadd.f32 %v6147_v7, %v6146_v0  ;;  %v7410_v25 = vmov (!%p6022_p13), 0.0   ;;  %v5319_v62 = vsel (!%p6022_p13), %vm5309_vm4, %v5269_v59, 0.0  ;;  %v5267_v0 = vld [vmem:[%s8233_s4] sm:$0xff] (!%p6022_p13)  ;;  %v5268_v7 = vld [vmem:[%s8233_s4 + $0x8] sm:$0xff] (!%p6022_p13) }
 0xeaf   : > { %6246 = vmatprep.subr.bf16.mxu0 (!%p6022_p13), %v7410_v25  ;;  %6262 = vmatprep.mubr.msk.bf16.mxu0 (!%p6022_p13), %vm7411_vm3, %v7410_v25 }
 0xeb0   : > { %v5021_v63 = vadd.f32 %v6148_v14, %v6120_v5  ;;  %v5026_v38 = vadd.f32 %v5018_v46, %v8838_v37  ;;  %6247 = vmatpush3.bf16.msra.mxu0 (!%p6022_p13), %v6710_v24  ;;  %v5270_v5 = vld [vmem:[%s8233_s4 + $0x18] sm:$0xff] (!%p6022_p13)  ;;  %v5310_v14 = vsel (!%p6022_p13), %vm5309_vm4, %v5267_v0, 0.0 }
 0xeb1   : > { %6248 = vmatprep.subr.bf16.mxu0 (!%p6022_p13), %v7410_v25  ;;  %v6713_v46 = vld [vmem:[%s9407_s20 + $0x18] sm:$0xff] (!%p6022_p13)  }
 0xeb2   : > { %v5037_v29 = vadd.f32 %v6019_v11, %v5026_v38  ;;  %v5027_v58 = vadd.f32 %v5021_v63, %v8836_v32  ;;  %v5320_v63 = vsel (!%p6022_p13), %vm5309_vm4, %v5270_v5, 0.0  ;;  %v5311_v38 = vsel (!%p6022_p13), %vm5309_vm4, %v5268_v7, 0.0 }
 0xeb4   : > { %5045 = vadd.xlane.f32.xlu1 %v5037_v29  ;;  %v5038_v6 = vadd.f32 %v6019_v11, %v5027_v58  ;;  %6249 = vmatpush3.bf16.msra.mxu0 (!%p6022_p13), %v6711_v12  ;;  %v5321_v58 = vadd.f32 (!%p6022_p13), %v5320_v63, %v5319_v62 }
 0xeb5   : > { %6250 = vmatprep.subr.bf16.mxu0 (!%p6022_p13), %v7410_v25 }
 0xeb6   : > { %5047 = vadd.xlane.f32.xlu0 %v5038_v6 }
 0xeb8   : > { %6251 = vmatpush3.bf16.msra.mxu0 (!%p6022_p13), %v6712_v57 }
 0xeb9   : > { %6252 = vmatprep.subr.bf16.mxu0 (!%p6022_p13), %v7410_v25 }
 0xebc   : > { %6253 = vmatpush3.bf16.msra.mxu0 (!%p6022_p13), %v6713_v46  ;;  %v6023_v46 = vld [vmem:[%s9408_s10] ss:$0 sm:$0xff] (!%p6022_p13) }
 0xebd   : > { %6254 = vmatprep.subr.bf16.mxu0 (!%p6022_p13), %v7410_v25 }
 0xf39   : > { %v5042_v15 = vpop.xlane.xlu1 %5041 }
 0xf3a   : > { %v5049_v16 = vmul.f32 0.0078125, %v5042_v15  ;;  %v5322_v15 = vrot.slane (!%p6022_p13), %v5321_v58, 4 }
 0xf3b   : > { %v5044_v17 = vpop.xlane.xlu0 %5043 }
 0xf3c   : > { %v5053_v22 = vsub.f32 %v5035_v42, %v5049_v16  ;;  %v5050_v1 = vmul.f32 0.0078125, %v5044_v17  ;;  %v6714_v17 = vld [vmem:[%s9407_s20 + $0x20] sm:$0xff] (!%p6022_p13)  }
 0xf3d   : > { %6255 = vmatpush3.bf16.msra.mxu0 (!%p6022_p13), %v6714_v17 }
 0xf3e   : > { %v5054_v27 = vsub.f32 %v5036_v30, %v5050_v1  ;;  %v5057_v3 = vmul.f32 %v5053_v22, %v5053_v22  ;;  %v7412_v30 = vmov (!%p6022_p13), 0   ;;  %6256 = vmatprep.subr.bf16.mxu0 (!%p6022_p13), %v7410_v25 }
 0xf3f   : > { %6709 = vset.pattern.permute.xlu1 (!%p6022_p13), %v7412_v30  ;;  %6708 = vset.pattern.permute.xlu0 (!%p6022_p13), %v7412_v30 }
 0xf40   : > { %5061 = vadd.xlane.f32.xlu1 %v5057_v3  ;;  %v5058_v23 = vmul.f32 %v5054_v27, %v5054_v27 }
 0xf41   : > { %v5046_v13 = vpop.xlane.xlu1 %5045 }
 0xf42   : > { %5063 = vadd.xlane.f32.xlu0 %v5058_v23  ;;  %v5051_v4 = vmul.f32 0.0078125, %v5046_v13 }
 0xf43   : > { %v5048_v51 = vpop.xlane.xlu0 %5047 }
 0xf44   : > { %v5055_v37 = vsub.f32 %v5037_v29, %v5051_v4  ;;  %v5052_v40 = vmul.f32 0.0078125, %v5048_v51  ;;  %v6715_v4 = vld [vmem:[%s9407_s20 + $0x28] sm:$0xff] (!%p6022_p13)  }
 0xf45   : > { %6257 = vmatpush3.bf16.msra.mxu0 (!%p6022_p13), %v6715_v4 }
 0xf46   : > { %v5056_v52 = vsub.f32 %v5038_v6, %v5052_v40  ;;  %v5059_v32 = vmul.f32 %v5055_v37, %v5055_v37  ;;  %v5312_v6 = vadd.f32 (!%p6022_p13), %v5311_v38, %v5310_v14  ;;  %6258 = vmatprep.subr.bf16.mxu0 (!%p6022_p13), %v7410_v25 }
 0xf48   : > { %5065 = vadd.xlane.f32.xlu1 %v5059_v32  ;;  %v5060_v41 = vmul.f32 %v5056_v52, %v5056_v52  ;;  %v5313_v16 = vrot.slane (!%p6022_p13), %v5312_v6, 4 }
 0xf4a   : > { %5067 = vadd.xlane.f32.xlu0 %v5060_v41  ;;  %v5314_v3 = vadd.f32 (!%p6022_p13), %v5313_v16, %v5312_v6 }
 0xf4c   : > { %v5315_v13 = vrot.slane (!%p6022_p13), %v5314_v3, 2 }
 0xf59   : > { %5283 = vperm.xlu1 (!%p6022_p13), %6709, %v5269_v59  }
 0xf5d   : > { %5288 = vperm.xlu1 (!%p6022_p13), %6709, %v5270_v5  }
 0xf60   : > { %5273 = vperm.xlu0 (!%p6022_p13), %6708, %v5267_v0  }
 0xf64   : > { %5278 = vperm.xlu0 (!%p6022_p13), %6708, %v5268_v7  }
 0xfcd   : > { %v5062_v36 = vpop.xlane.xlu1 %5061 }
 0xfce   : > { %v5069_v34 = vmul.f32 0.0078125, %v5062_v36  ;;  %v6716_v36 = vld [vmem:[%s9407_s20 + $0x30] sm:$0xff] (!%p6022_p13)  }
 0xfcf   : > { %v5064_v28 = vpop.xlane.xlu0 %5063  ;;  %6259 = vmatpush3.bf16.msra.mxu0 (!%p6022_p13), %v6716_v36 }
 0xfd0   : > { %v5073_v43 = vadd.f32 1e-12, %v5069_v34  ;;  %v5070_v20 = vmul.f32 0.0078125, %v5064_v28  ;;  %6260 = vmatprep.subr.bf16.mxu0 (!%p6022_p13), %v7410_v25 }
 0xfd2   : > { %6696 = vrsqrt.f32 %v5073_v43  ;;  %v5074_v53 = vadd.f32 1e-12, %v5070_v20 }
 0xfd4   : > { %6698 = vrsqrt.f32 %v5074_v53 }
 0xfd5   : > { %v5066_v56 = vpop.xlane.xlu1 %5065 }
 0xfd6   : > { %v5071_v2 = vmul.f32 0.0078125, %v5066_v56 }
 0xfd7   : > { %v5068_v33 = vpop.xlane.xlu0 %5067 }
 0xfd8   : > { %v5075_v19 = vadd.f32 1e-12, %v5071_v2  ;;  %v5072_v31 = vmul.f32 0.0078125, %v5068_v33  ;;  %v6717_v2 = vld [vmem:[%s9407_s20 + $0x38] sm:$0xff] (!%p6022_p13)  }
 0xfd9   : > { %6261 = vmatpush3.bf16.msra.mxu0 (!%p6022_p13), %v6717_v2 }
 0xfda   : > { %6700 = vrsqrt.f32 %v5075_v19  ;;  %v5076_v35 = vadd.f32 1e-12, %v5072_v31 }
 0xfdc   : > { %v6697_v55 = vpop.eup %6696  ;;  %6702 = vrsqrt.f32 %v5076_v35 }
 0xfdd   : > { %v5081_v44 = vmul.f32 %v6697_v55, %v5053_v22 }
 0xfde   : > { %v6699_v61 = vpop.eup %6698 }
 0xfdf   : > { %v5091_v47 = vmul.f32 %v6020_v45, %v5081_v44  ;;  %v5082_v39 = vmul.f32 %v6699_v61, %v5054_v27  ;;  %v5323_v27 = vadd.f32 (!%p6022_p13), %v5322_v15, %v5321_v58  ;;  %v5274_v35 = vpop.permute.xlu0 (!%p6022_p13), %5273 }
 0xfe1   : > { %v5101_v9 = vadd.f32 %v6021_v26, %v5091_v47  ;;  %v5092_v60 = vmul.f32 %v6020_v45, %v5082_v39  ;;  %v5324_v23 = vrot.slane (!%p6022_p13), %v5323_v27, 2 }
 0xfe3   : > { %5105 = vst [vmem:[%s8236_s19] sm:$0xff] %v5101_v9  ;;  %v5102_v48 = vadd.f32 %v6021_v26, %v5092_v60  ;;  %v5325_v40 = vadd.f32 (!%p6022_p13), %v5324_v23, %v5323_v27  ;;  %v5279_v60 = vpop.permute.xlu0 (!%p6022_p13), %5278 }
 0xfe4   : > { %v6701_v21 = vpop.eup %6700 }
 0xfe5   : > { %5106 = vst [vmem:[%s8236_s19 + $0x8] sm:$0xff] %v5102_v48  ;;  %v5083_v11 = vmul.f32 %v6701_v21, %v5055_v37  ;;  %v5326_v32 = vrot.slane (!%p6022_p13), %v5325_v40, 1 }
 0xfe6   : > { %v6703_v49 = vpop.eup %6702 }
 0xfe7   : > { %v5093_v50 = vmul.f32 %v6020_v45, %v5083_v11  ;;  %v5084_v10 = vmul.f32 %v6703_v49, %v5056_v52  ;;  %5112 = sbr.rel (%p6022_p13) target bundleno = 4322 (0x10e2), region = 164  ;;  %v5316_v52 = vadd.f32 (!%p6022_p13), %v5315_v13, %v5314_v3  ;;  %v5327_v43 = vadd.f32 (!%p6022_p13), %v5326_v32, %v5325_v40 }
 0xfe9   : > { %v5103_v42 = vadd.f32 %v6021_v26, %v5093_v50  ;;  %v5094_v54 = vmul.f32 %v6020_v45, %v5084_v10  ;;  %v5317_v41 = vrot.slane (!%p6022_p13), %v5316_v52, 1  ;;  %v5329_v53 = vmax.f32 (!%p6022_p13), %v5327_v43, 1e-09  ;;  %v5284_v45 = vpop.permute.xlu1 (!%p6022_p13), %5283 }
 0xfea   : > { %v5113_v1 = vld [vmem:[%s8236_s19] sm:$0xff] (!%p6022_p13) }
 0xfeb   : > { %5107 = vst [vmem:[%s8236_s19 + $0x10] sm:$0xff] %v5103_v42  ;;  %v5104_v18 = vadd.f32 %v6021_v26, %v5094_v54  ;;  %v5133_v51 = vpack.c.bf16 (!%p6022_p13), %v5113_v1, %v5113_v1  ;;  %v5318_v20 = vadd.f32 (!%p6022_p13), %v5317_v41, %v5316_v52  ;;  %6718 = vrcp.f32 (!%p6022_p13), %v5329_v53 }
 0xfec   : > { %v5114_v26 = vld [vmem:[%s8236_s19 + $0x8] sm:$0xff] (!%p6022_p13)  ;;  %v5291_v47 = vmul.f32 (!%p6022_p13), %v5274_v35, %v5113_v1 }
 0xfed   : > { %5108 = vst [vmem:[%s8236_s19 + $0x18] sm:$0xff] %v5104_v18  ;;  %v5144_v34 = vunpack.c.l.b16 (!%p6022_p13), %v5133_v51  ;;  %v5328_v56 = vmax.f32 (!%p6022_p13), %v5318_v20, 1e-09  ;;  %v5289_v39 = vpop.permute.xlu1 (!%p6022_p13), %5288  ;;  %v5292_v48 = vmul.f32 (!%p6022_p13), %v5279_v60, %v5114_v26 }
 0xfef   : > { %6720 = vrcp.f32 %v5328_v56  ;;  %v5295_v11 = vadd.f32 %v5292_v48, %v5291_v47 }
 0xff1   : > { %v5296_v50 = vrot.slane %v5295_v11, 4 }
 0xff2   : > { %v5115_v29 = vld [vmem:[%s8236_s19 + $0x10] sm:$0xff] }
 0xff3   : > { %v5134_v22 = vpack.c.bf16 %v5115_v29, %v5115_v29  ;;  %v5293_v61 = vmul.f32 %v5284_v45, %v5115_v29  ;;  %v5297_v42 = vadd.f32 %v5296_v50, %v5295_v11  ;;  %v7413_v29 = vmov 1966171168  }
 0xff4   : > { %v5116_v44 = vld [vmem:[%s8236_s19 + $0x18] sm:$0xff]  ;;  %v5242_v58 = vunpack.c.l.s4 %v7413_v29 }
 0xff5   : > { %v5145_v37 = vunpack.c.l.b16 %v5134_v22  ;;  %v6719_v31 = vpop.eup %6718  ;;  %v5294_v9 = vmul.f32 %v5289_v39, %v5116_v44  ;;  %v5298_v18 = vrot.slane %v5297_v42, 2 }
 0xff6   : > { %5339 = vperm.xlu1 %6709, %v6719_v31   ;;  %v5243_v16 = vunpack.c.0.s8 %v5242_v58 }
 0xff7   : > { %v5146_v28 = vrot.slane %v5145_v37, 7  ;;  %v5302_v21 = vadd.f32 %v5294_v9, %v5293_v61  ;;  %v5299_v25 = vadd.f32 %v5298_v18, %v5297_v42 }
 0xff8   : > { %v5246_v17 = vsub.s32 %v5243_v16, %v8270_v8 }
 0xff9   : > { %v5148_v33 = vsel %vm5147_vm5, %v5146_v28, %v5144_v34  ;;  %v6721_v55 = vpop.eup %6720  ;;  %v5303_v49 = vrot.slane %v5302_v21, 4  ;;  %v5300_v30 = vrot.slane %v5299_v25, 1 }
 0xffa   : > { %v5149_v19 = vpack.c.b16 %v5148_v33, %v5148_v33  ;;  %5334 = vperm.xlu0 %6708, %v6721_v55  }
 0xffb   : > { %v5304_v10 = vadd.f32 %v5303_v49, %v5302_v21  ;;  %v5301_v59 = vadd.f32 %v5300_v30, %v5299_v25 }
 0xffc   : > { %6263 = vmatmul.mubr.bf16.vlgmr.msra.gmra.mrb[0].mxu0 %v5149_v19 }
 0xffd   : > { %v5305_v54 = vrot.slane %v5304_v10, 2 }
 0xfff   : > { %v5306_v24 = vadd.f32 %v5305_v54, %v5304_v10 }
0x1001   : > { %v5307_v12 = vrot.slane %v5306_v24, 1 }
0x1003   : > { %v5308_v57 = vadd.f32 %v5307_v12, %v5306_v24 }
0x1075   : > { %v5340_v62 = vpop.permute.xlu1 %5339 }
0x1076   : > { %v5343_v0 = vmul.f32 %v5340_v62, %v5308_v57 }
0x1078   : > { %5345 = vst [vmem:[%s8242_s28 + $0x1] sm:$0x1] %v5343_v0 }
0x1079   : > { %v5335_v5 = vpop.permute.xlu0 %5334 }
0x107a   : > { %v5342_v7 = vmul.f32 %v5335_v5, %v5301_v59 }
0x107c   : > { %5344 = vst [vmem:[%s8242_s28] sm:$0x1] %v5342_v7 }
0x10cf   : > { %v5233_v14 = vpop.f32.mrb[0].mxu0 }
0x10d0   : > { %v5234_v63 = vadd.f32 %v6023_v46, %v5233_v14  ;;  %v6264_v38 = vpop.f32.mrb[1].mxu0 }
0x10d1   : > { %v5236_v6 = vpop.f32.mrb[2].mxu0 }
0x10d2   : > { %6722 = vtanh.f32 %v5234_v63  ;;  %v6265_v15 = vpop.f32.mrb[3].mxu0 }
0x10dc   : > { %v6723_v22 = vpop.eup %6722 }
0x10dd   : > { %v5247_v1 = vrot.slane %v6723_v22, %v5246_v17 }
0x10df   : > { %v5248_v27 = vcombine.high %v5247_v1, %v5247_v1  ;;  %6032 = vst.sshfl [vmem:[%s8239_s9] sm:$0x1 pattern:$0x73625140] %v5247_v1 }
0x10e1   : > { %6033 = vst.sshfl [vmem:[%s8239_s9 + $0x1] sm:$0x1 pattern:$0x73625140] %v5248_v27 }
0x10e2 PF: > { %s9409_s12 = sld [smem:[#allocation44_spill]]  ;;  %s9410_s18 = sld [smem:[#allocation74_spill]] }
0x10e3   : > { %s5387_s13 = sshll.u32 %s8239_s9, 4  ;;  %s9411_s4 = sld [smem:[#allocation75_spill]]  ;;  %s9073_s13 = int_to_ptr.vmem [resolvable:$true] %s5387_s13 }
0x10e4   : > { %s5352_s8 = scalar_lea.sflag [#allocation28], %s8168_s7  ;;  %s7170_s17 = scalar_lea.vmem %s9073_s13, 32 }
0x10e5   : > { %p7171_p10 = scmp.ne.s32.totalorder %s9073_s13, %s7170_s17  ;;  %p9413_p1 = scmp.ne.s32.totalorder %s9357_s29, 0 }
0x10e6   : > { %s7414_s6 = smov [#allocation27]  }
0x10e7   : > { %p7172_p5 = pnand %p7171_p10, %p9413_p1  ;;  %s7174_s24 = sshll.u32 %s7414_s6, 4  ;;  %s7175_s24 = int_to_ptr.vmem [resolvable:$false] %s7174_s24 }
0x10e8   : > { %s6055_s30 = sshll.u32 %s9409_s12, 5  ;;  %s7176_s9 = scalar_lea.vmem %s7175_s24, 64 }
0x10e9   : > { %s9070_s22 = scalar_lea.hbm %s9410_s18, %s6055_s30  ;;  %s9412_s1 = smov %s9411_s4 }
0x10ea   : > { %s9078_s14 = scalar_lea.hbm %s9411_s4, %s6055_s30  ;;  %p7173_p8 = pneg %p7172_p5 }
0x10eb   : > { %p7177_p6 = scmp.lt.s32.totalorder %s9073_s13, %s7175_s24  ;;  %p7178_p7 = scmp.lt.s32.totalorder %s7176_s9, %s7170_s17 }
0x10ed   : > { %p7179_p2 = por %p7178_p7, %p7177_p6 }
0x10ef   : > { %p7180_p0 = pnand %p7179_p2, %p7173_p8 }
0x10f1   : > { %7183 = shalt.err (!%p7180_p0)
}
0x10f2   : > { %s7184_s16 = scalar_lea.hbm %s9070_s22, 32  ;;  %s7188_s10 = scalar_lea.hbm %s9410_s18, 64 }
0x10f3   : > { %p7185_p9 = scmp.ne.s32.totalorder %s9070_s22, %s7184_s16  ;;  %p7189_p12 = scmp.lt.u32.totalorder %s9070_s22, %s9410_s18 }
0x10f4   : > { %p7190_p4 = scmp.lt.u32.totalorder %s7188_s10, %s7184_s16  ;;  %p7192_p10 = scmp.lt.u32.totalorder %s7184_s16, %s9070_s22 }
0x10f5   : > { %p7186_p11 = pnand %p7185_p9, %p9413_p1 }
0x10f6   : > { %p7191_p13 = por %p7190_p4, %p7189_p12 }
0x10f7   : > { %p7187_p3 = pneg %p7186_p11 }
0x10f8   : > { %p7193_p5 = por %p7192_p10, %p7191_p13 }
0x10fa   : > { %p7194_p8 = pnand %p7193_p5, %p7187_p3 }
0x10fc   : > { %7197 = shalt.err (!%p7194_p8)
}
0x10fd   : > { %s7415_s27 = smov 16   ;;  %s7416_s15 = smov 1  }
0x10fe   : > { %6307 = dma.vmem_to_hbm [thread:$0]  (%p9413_p1), %s9073_s13, 32, %s9070_s22, %s5352_s8, %s7415_s27, %s7415_s27, %s7416_s15  }
0x10ff   : > { %s6054_s21 = sshll.u32 %s9409_s12, 9  ;;  %s9414_s6 = sld [smem:[#allocation73_spill]] }
0x1100   : > { %s5371_s9 = sshll.u32 %s8236_s19, 4  ;;  %s5403_s16 = sshll.u32 %s8242_s28, 4  ;;  %s9114_s9 = int_to_ptr.vmem [resolvable:$true] %s5371_s9  ;;  %s9143_s16 = int_to_ptr.vmem [resolvable:$true] %s5403_s16 }
0x1101   : > { %s5347_s11 = scalar_lea.sflag [#allocation4], %s8152_s0  ;;  %s7198_s23 = scalar_lea.vmem %s9114_s9, 512 }
0x1102   : > { %p7199_p6 = scmp.ne.s32.totalorder %s9114_s9, %s7198_s23  ;;  %s7417_s22 = smov [#allocation26]  }
0x1103   : > { %s7202_s12 = sshll.u32 %s7417_s22, 4  ;;  %s7203_s12 = int_to_ptr.vmem [resolvable:$false] %s7202_s12 }
0x1104   : > { %p7200_p7 = pnand %p7199_p6, %p9413_p1  ;;  %s7204_s13 = scalar_lea.vmem %s7203_s12, 1024 }
0x1105   : > { %s9111_s24 = scalar_lea.hbm %s9414_s6, %s6054_s21  ;;  %p7205_p0 = scmp.lt.s32.totalorder %s9114_s9, %s7203_s12 }
0x1106   : > { %p7201_p2 = pneg %p7200_p7  ;;  %p7206_p9 = scmp.lt.s32.totalorder %s7204_s13, %s7198_s23 }
0x1108   : > { %p7207_p11 = por %p7206_p9, %p7205_p0 }
0x110a   : > { %p7208_p3 = pnand %p7207_p11, %p7201_p2 }
0x110c   : > { %7211 = shalt.err (!%p7208_p3)
}
0x110d   : > { %s7212_s19 = scalar_lea.hbm %s9111_s24, 512  ;;  %s7216_s2 = scalar_lea.hbm %s9414_s6, 1024 }
0x110e   : > { %p7213_p12 = scmp.ne.s32.totalorder %s9111_s24, %s7212_s19  ;;  %p7217_p10 = scmp.lt.u32.totalorder %s9111_s24, %s9414_s6 }
0x110f   : > { %p7218_p5 = scmp.lt.u32.totalorder %s7216_s2, %s7212_s19  ;;  %p7220_p6 = scmp.lt.u32.totalorder %s7212_s19, %s9111_s24 }
0x1110   : > { %p7214_p4 = pnand %p7213_p12, %p9413_p1 }
0x1111   : > { %p7219_p8 = por %p7218_p5, %p7217_p10 }
0x1112   : > { %p7215_p13 = pneg %p7214_p4 }
0x1113   : > { %p7221_p7 = por %p7220_p6, %p7219_p8 }
0x1115   : > { %p7222_p2 = pnand %p7221_p7, %p7215_p13 }
0x1117   : > { %7225 = shalt.err (!%p7222_p2)
}
0x1118   : > { %s7418_s17 = smov 128   ;;  %s7419_s23 = smov 8  }
0x1119   : > { %6306 = dma.vmem_to_hbm [thread:$0]  (%p9413_p1), %s9114_s9, 512, %s9111_s24, %s5347_s11, %s7418_s17, %s7418_s17, %s7419_s23  }
0x111a   : > { %s7226_s22 = scalar_lea.vmem %s9143_s16, 32  ;;  %s7420_s12 = smov [#allocation29]  }
0x111b   : > { %p7227_p0 = scmp.ne.s32.totalorder %s9143_s16, %s7226_s22  ;;  %s7230_s13 = sshll.u32 %s7420_s12, 4  ;;  %s7231_s13 = int_to_ptr.vmem [resolvable:$false] %s7230_s13 }
0x111c   : > { %s7232_s19 = scalar_lea.vmem %s7231_s13, 64  ;;  %p7233_p3 = scmp.lt.s32.totalorder %s9143_s16, %s7231_s13 }
0x111d   : > { %p7228_p9 = pnand %p7227_p0, %p9413_p1  ;;  %p7234_p12 = scmp.lt.s32.totalorder %s7232_s19, %s7226_s22 }
0x111f   : > { %p7229_p11 = pneg %p7228_p9  ;;  %p7235_p4 = por %p7234_p12, %p7233_p3 }
0x1121   : > { %p7236_p13 = pnand %p7235_p4, %p7229_p11 }
0x1123   : > { %7239 = shalt.err (!%p7236_p13)
}
0x1124   : > { %s7240_s28 = scalar_lea.hbm %s9078_s14, 32  ;;  %s7244_s9 = scalar_lea.hbm %s9412_s1, 64 }
0x1125   : > { %p7241_p10 = scmp.ne.s32.totalorder %s9078_s14, %s7240_s28  ;;  %p7245_p6 = scmp.lt.u32.totalorder %s9078_s14, %s9412_s1 }
0x1126   : > { %p7246_p7 = scmp.lt.u32.totalorder %s7244_s9, %s7240_s28  ;;  %p7248_p0 = scmp.lt.u32.totalorder %s7240_s28, %s9078_s14 }
0x1127   : > { %p7242_p5 = pnand %p7241_p10, %p9413_p1 }
0x1128   : > { %p7247_p2 = por %p7246_p7, %p7245_p6 }
0x1129   : > { %p7243_p8 = pneg %p7242_p5 }
0x112a   : > { %p7249_p9 = por %p7248_p0, %p7247_p2 }
0x112c   : > { %p7250_p11 = pnand %p7249_p9, %p7243_p8 }
0x112e   : > { %7253 = shalt.err (!%p7250_p11)
}
0x112f   : > { %6308 = dma.vmem_to_hbm [thread:$0]  (%p9413_p1), %s9143_s16, 32, %s9078_s14, %s5352_s8, %s7415_s27, %s7415_s27, %s7416_s15  }
0x1130 PF: > { %s9415_s30 = sld [smem:[#allocation41_spill]]  ;;  %s9416_s2 = sld [smem:[#allocation49_spill]] }
0x1131   : > { %p6374_p3 = scmp.ge.s32.totalorder %s7380_s5, 2 }
0x1136   : > { %s5418_s21 = sand.u32 1, %s9415_s30   ;;  %p9417_p12 = scmp.ne.s32.totalorder %s9416_s2, 0 }
0x1137   : > { %s5419_s4 = scalar_lea.sflag [#allocation4], %s5418_s21 }
0x1138   : > { %p6360_p4 = pnand %p6374_p3, %p9417_p12 }
0x113a   : > { %7331 = dma.done.wait (!%p6360_p4), %s5419_s4, 512  }
0x113b   : > { %7333 = vsyncadd (!%p6360_p4), %s5419_s4, 4294966784  ;;  %s9418_s29 = sadd.s32 4294967294, %s7380_s5  }
0x113c   : > { %s5427_s17 = sand.u32 1, %s9418_s29  }
0x113d   : > { %s5428_s23 = scalar_lea.sflag [#allocation28], %s5427_s17 }
0x113e   : > { %7335 = dma.done.wait (!%p6360_p4), %s5428_s23, 64  }
0x113f   : > { %7337 = vsyncadd (!%p6360_p4), %s5428_s23, 4294967232  ;;  %s60_s5 = sadd.s32 1, %s7380_s5   ;;  %s9419_s2 = sld [smem:[#allocation40_spill]] }
0x1140   : > { %p57_p1 = scmp.ge.s32.totalorder %s60_s5, 6   ;;  %s9420_s7 = smov %s7928_s25 }
0x1141   : > { %s9421_s14 = sld [smem:[#allocation42_spill]]  ;;  %s9422_s28 = sld [smem:[#allocation53_spill]] }
0x1142   : > { %s9423_s29 = sld [smem:[#allocation45_spill]]  ;;  %s9424_s0 = sld [smem:[#allocation46_spill]] }
0x1143   : > { %s9425_s4 = sld [smem:[#allocation51_spill]]  ;;  %s9426_s30 = sld [smem:[#allocation52_spill]] }
0x1144   : > { %s9427_s25 = smov %s7348_s26  ;;  %s9428_s26 = smov %s9420_s7 }
0x1145   : > { %s9429_s27 = smov %s7356_s3  ;;  %59 = sbr.rel (!%p57_p1) target bundleno = 47 (0x2f), region = 339 }
0x1147   : > { %s9430_s3 = smov %s9421_s14 }
0x114c   :  { %5442 = vsyncpa [#allocation3], 1 }
0x114d   :  { %5444 = vsyncpa [#allocation3 + $0x1], 1 }
0x114e   :  { %5445 = vsyncpa [#allocation6], 1 }
0x114f   :  { %5446 = vsyncpa [#allocation9], 1 }
0x1150   :  { %5448 = vsyncpa [#allocation9 + $0x1], 1 }
0x1151   :  { %5449 = vsyncpa [#allocation12], 1 }
0x1152   :  { %5451 = vsyncpa [#allocation12 + $0x1], 1 }
0x1153   :  { %5452 = vsyncpa [#allocation15], 1 }
0x1154   :  { %5454 = vsyncpa [#allocation15 + $0x1], 1 }
0x1155   :  { %5455 = vsyncpa [#allocation18], 1 }
0x1156   :  { %5457 = vsyncpa [#allocation18 + $0x1], 1 }
0x1157   :  { %5458 = vsyncpa [#allocation21], 1 }
0x1158   :  { %5460 = vsyncpa [#allocation21 + $0x1], 1 }
0x1159   :  { %5461 = vsyncpa [#allocation24], 1 }
0x115a   :  { %5463 = vsyncpa [#allocation24 + $0x1], 1 }
0x115b   :  { %5464 = vsyncpa [#allocation4], 1 }
0x115c   :  { %5466 = vsyncpa [#allocation4 + $0x1], 1 }
0x115d   :  { %5467 = vsyncpa [#allocation28], 1 }
0x115e   :  { %5469 = vsyncpa [#allocation28 + $0x1], 1 }

</bundles_post_ra>
